<compile_context>
chip_gen: v5e
topology: v5e:2x2
jax: 0.10.0
libtpu: 0.0.40
codegen_flags: <defaults>
</compile_context>

<pallas_src>
import functools

import jax
import jax.numpy as jnp
from jax import lax
from jax.experimental import pallas as pl
from jax.experimental.pallas import tpu as pltpu


# ---------------------------------------------------------------------------
# Fused kernel: all layers, both directions, input projection, recurrence,
# encoding and decoder.  No grid -- a single invocation, all refs in VMEM.
# ---------------------------------------------------------------------------
def make_birnn_kernel(num_layers, seq, batch, hidden):
    H = hidden
    G = 4 * H          # gates per direction
    n_in = 3 + 3 * num_layers   # x, (wih, whh, bias) per layer, wdec, bdec

    def kernel(*refs):
        x_ref = refs[0]                         # (seq*batch, embed)   bf16
        wdec_ref = refs[n_in - 2]               # (4H, 128)            bf16 (padded)
        bdec_ref = refs[n_in - 1]               # (1, 2)               f32
        out_ref = refs[n_in]                    # (batch, 2)           f32
        gxf_ref, gxr_ref, hf_ref, hr_ref = refs[n_in + 1:n_in + 5]

        for layer in range(num_layers):
            wih = refs[1 + 3 * layer][...]      # (in, 2G) bf16  [fwd | rev] along N
            whh = refs[2 + 3 * layer][...]      # (H, 2G)  bf16  [fwd | rev] along N
            bias = refs[3 + 3 * layer][...]     # (1, 2G)  f32   [b_f | b_r]

            # ---- Hoisted input projection: both directions in one N=2G=256
            # matmul, stored to VMEM scratch (never touches HBM).
            if layer == 0:
                # One big M = seq*batch matmul for the embedding inputs.
                g_all = jnp.dot(x_ref[...], wih,
                                preferred_element_type=jnp.float32) + bias
                for t in range(seq):
                    blk = g_all[t * batch:(t + 1) * batch]
                    gxf_ref[t] = blk[:, 0:G]
                    gxr_ref[t] = blk[:, G:2 * G]
            else:
                # Layer input is [h_fwd | h_rev] of the previous layer; split
                # the K dimension instead of concatenating features.
                for t in range(seq):
                    hf = hf_ref[t].astype(jnp.bfloat16)
                    hr = hr_ref[t].astype(jnp.bfloat16)
                    g = (jnp.dot(hf, wih[0:H, :],
                                 preferred_element_type=jnp.float32)
                         + jnp.dot(hr, wih[H:2 * H, :],
                                   preferred_element_type=jnp.float32)
                         + bias)
                    gxf_ref[t] = g[:, 0:G]
                    gxr_ref[t] = g[:, G:2 * G]

            # ---- Recurrence: forward and reverse chains interleaved in one
            # loop; one combined (2*batch, H) @ (H, 2G) MXU pass per step.
            def cell(gates, c):
                # Gate order pre-permuted offline to (i, f, o, g):
                sg = jax.nn.sigmoid(gates[:, 0:3 * H])   # i, f, o in one pass
                gg = jnp.tanh(gates[:, 3 * H:4 * H])     # g
                i_ = sg[:, 0:H]
                f_ = sg[:, H:2 * H]
                o_ = sg[:, 2 * H:3 * H]
                c_new = f_ * c + i_ * gg
                h_new = o_ * jnp.tanh(c_new)
                return h_new, c_new

            def step(t, carry):
                h_f, c_f, h_r, c_r = carry               # (batch, H) f32 each
                t_r = seq - 1 - t
                h_cat = jnp.concatenate([h_f, h_r], axis=0).astype(jnp.bfloat16)
                gh = jnp.dot(h_cat, whh,
                             preferred_element_type=jnp.float32)   # (2B, 2G)
                gates_f = gxf_ref[t] + gh[0:batch, 0:G]
                gates_r = gxr_ref[t_r] + gh[batch:2 * batch, G:2 * G]
                h_f_new, c_f_new = cell(gates_f, c_f)
                h_r_new, c_r_new = cell(gates_r, c_r)
                hf_ref[t] = h_f_new        # write back at original time index
                hr_ref[t_r] = h_r_new
                return h_f_new, c_f_new, h_r_new, c_r_new

            zeros = jnp.zeros((batch, H), jnp.float32)
            lax.fori_loop(0, seq, step, (zeros, zeros, zeros, zeros),
                          unroll=min(seq, 8))

        # ---- Encoding = cat(outputs[0], outputs[-1]) and decoder.  The lane
        # concat is avoided by splitting the decoder matmul into four K=H
        # blocks; wdec is lane-padded to 128 so the matmul stays MXU-native.
        wdec = wdec_ref[...]                          # (4H, 128) bf16
        acc = jnp.zeros((batch, wdec.shape[1]), jnp.float32)
        for hpart, r0 in ((hf_ref[0], 0),             # fwd hidden at t=0
                          (hr_ref[0], H),             # rev hidden at t=0
                          (hf_ref[seq - 1], 2 * H),   # fwd hidden at t=T-1
                          (hr_ref[seq - 1], 3 * H)):  # rev hidden at t=T-1
            acc = acc + jnp.dot(hpart.astype(jnp.bfloat16),
                                wdec[r0:r0 + H, :],
                                preferred_element_type=jnp.float32)
        out_ref[...] = acc[:, 0:2] + bdec_ref[...]

    return kernel


# ---------------------------------------------------------------------------
# Forward pass: XLA embedding gather + one fused Pallas kernel.
# ---------------------------------------------------------------------------
def birnn_forward(tokens, packed, num_layers, num_hiddens):
    # TODO(synk): embedding lookup stays as an XLA gather; a Pallas
    # scalar-prefetch row-gather kernel is possible but not worth it here.
    emb = packed["embedding"]                           # (vocab, embed) f32
    x = emb[tokens.T]                                   # (seq, batch, embed)
    seq, batch, embed = x.shape
    x2d = x.reshape(seq * batch, embed).astype(jnp.bfloat16)

    inputs = [x2d]
    for l in range(num_layers):
        inputs += [packed[f"wih_{l}"], packed[f"whh_{l}"], packed[f"bias_{l}"]]
    inputs += [packed["w_dec"], packed["b_dec"]]

    kernel = make_birnn_kernel(num_layers, seq, batch, num_hiddens)
    return pl.pallas_call(
        kernel,
        out_shape=jax.ShapeDtypeStruct((batch, 2), jnp.float32),
        in_specs=[pl.BlockSpec(memory_space=pltpu.MemorySpace.VMEM)] * len(inputs),
        out_specs=pl.BlockSpec(memory_space=pltpu.MemorySpace.VMEM),
        scratch_shapes=[
            pltpu.VMEM((seq, batch, 4 * num_hiddens), jnp.float32),  # gx fwd
            pltpu.VMEM((seq, batch, 4 * num_hiddens), jnp.float32),  # gx rev
            pltpu.VMEM((seq, batch, num_hiddens), jnp.float32),      # h fwd
            pltpu.VMEM((seq, batch, num_hiddens), jnp.float32),      # h rev
        ],
    )(*inputs)


# ---------------------------------------------------------------------------
# Parameter init (PyTorch layout) and one-time packing for the kernel.
# ---------------------------------------------------------------------------
def init_params(key, vocab_size, embed_size, num_hiddens, num_layers):
    params = {}
    keys = iter(jax.random.split(key, 4 + num_layers * 16 + 4))

    def u(shape, scale):
        return jax.random.uniform(next(keys), shape, jnp.float32, -scale, scale)

    params["embedding"] = jax.random.normal(next(keys), (vocab_size, embed_size),
                                            jnp.float32)
    k = 1.0 / jnp.sqrt(num_hiddens)
    for l in range(num_layers):
        in_size = embed_size if l == 0 else 2 * num_hiddens
        for suffix in ("", "_rev"):
            params[f"w_ih_l{l}{suffix}"] = u((4 * num_hiddens, in_size), k)
            params[f"w_hh_l{l}{suffix}"] = u((4 * num_hiddens, num_hiddens), k)
            params[f"b_ih_l{l}{suffix}"] = u((4 * num_hiddens,), k)
            params[f"b_hh_l{l}{suffix}"] = u((4 * num_hiddens,), k)

    kd = 1.0 / jnp.sqrt(4 * num_hiddens)
    params["w_dec"] = u((2, 4 * num_hiddens), kd)
    params["b_dec"] = u((2,), kd)
    return params


def pack_params(raw, num_layers, num_hiddens):
    """Done ONCE outside jit: transpose, gate-permute (i,f,g,o)->(i,f,o,g),
    concat the two directions along N, pre-sum biases, cast weights to bf16."""
    H = num_hiddens
    perm = jnp.concatenate([jnp.arange(0, H), jnp.arange(H, 2 * H),
                            jnp.arange(3 * H, 4 * H), jnp.arange(2 * H, 3 * H)])
    packed = {"embedding": raw["embedding"]}
    for l in range(num_layers):
        def onedir(sfx):
            wih = raw[f"w_ih_l{l}{sfx}"][perm, :]                 # (4H, in)
            whh = raw[f"w_hh_l{l}{sfx}"][perm, :]                 # (4H, H)
            b = (raw[f"b_ih_l{l}{sfx}"] + raw[f"b_hh_l{l}{sfx}"])[perm]
            return wih.T, whh.T, b
        wif, whf, bf = onedir("")
        wir, whr, br = onedir("_rev")
        packed[f"wih_{l}"] = jnp.concatenate([wif, wir], 1).astype(jnp.bfloat16)
        packed[f"whh_{l}"] = jnp.concatenate([whf, whr], 1).astype(jnp.bfloat16)
        packed[f"bias_{l}"] = jnp.concatenate([bf, br])[None, :].astype(jnp.float32)

    # Decoder: (2, 4H) -> transposed and lane-padded to 128 output columns.
    wdec_t = raw["w_dec"].T.astype(jnp.bfloat16)                  # (4H, 2)
    packed["w_dec"] = jnp.zeros((4 * H, 128), jnp.bfloat16).at[:, 0:2].set(wdec_t)
    packed["b_dec"] = raw["b_dec"][None, :].astype(jnp.float32)   # (1, 2)
    return packed


if __name__ == "__main__":
    vocab_size = 50
    embed_size = 32
    num_hiddens = 32
    num_layers = 2
    batch = 2
    seq = 8

    key = jax.random.PRNGKey(0)
    k_tok, k_par = jax.random.split(key)
    tokens = jax.random.randint(k_tok, (batch, seq), 0, vocab_size, dtype=jnp.int32)
    raw_params = init_params(k_par, vocab_size, embed_size, num_hiddens, num_layers)
    packed = pack_params(raw_params, num_layers, num_hiddens)

    fwd = jax.jit(functools.partial(birnn_forward, num_layers=num_layers,
                                    num_hiddens=num_hiddens))
    out = jax.block_until_ready(fwd(tokens, packed))
    assert out.shape == (batch, 2), out.shape
    assert bool(jnp.all(jnp.isfinite(out)))
    print("KERNEL_OK")
</pallas_src>

<mosaic_0001>
module attributes {stable_mosaic.version = 11 : i64} {
  func.func @kernel(%arg0: memref<16x32xbf16, #tpu.memory_space<vmem>>, %arg1: memref<32x256xbf16, #tpu.memory_space<vmem>>, %arg2: memref<32x256xbf16, #tpu.memory_space<vmem>>, %arg3: memref<1x256xf32, #tpu.memory_space<vmem>>, %arg4: memref<64x256xbf16, #tpu.memory_space<vmem>>, %arg5: memref<32x256xbf16, #tpu.memory_space<vmem>>, %arg6: memref<1x256xf32, #tpu.memory_space<vmem>>, %arg7: memref<128x128xbf16, #tpu.memory_space<vmem>>, %arg8: memref<1x2xf32, #tpu.memory_space<vmem>>, %arg9: memref<2x2xf32, #tpu.memory_space<vmem>>, %arg10: memref<8x2x128xf32, #tpu.memory_space<vmem>>, %arg11: memref<8x2x128xf32, #tpu.memory_space<vmem>>, %arg12: memref<8x2x32xf32, #tpu.memory_space<vmem>>, %arg13: memref<8x2x32xf32, #tpu.memory_space<vmem>>) attributes {dimension_semantics = [], scalar_prefetch = 0 : i64, scratch_operands = 4 : i64, tpu.core_type = #tpu.core_type<tc>} {
    %c0 = arith.constant 0 : index
    %c0_0 = arith.constant 0 : index
    %0 = vector.load %arg1[%c0, %c0_0] : memref<32x256xbf16, #tpu.memory_space<vmem>>, vector<32x256xbf16>
    %c0_1 = arith.constant 0 : index
    %c0_2 = arith.constant 0 : index
    %1 = vector.load %arg2[%c0_1, %c0_2] : memref<32x256xbf16, #tpu.memory_space<vmem>>, vector<32x256xbf16>
    %c0_3 = arith.constant 0 : index
    %c0_4 = arith.constant 0 : index
    %2 = vector.load %arg3[%c0_3, %c0_4] : memref<1x256xf32, #tpu.memory_space<vmem>>, vector<1x256xf32>
    %c0_5 = arith.constant 0 : index
    %c0_6 = arith.constant 0 : index
    %3 = vector.load %arg0[%c0_5, %c0_6] : memref<16x32xbf16, #tpu.memory_space<vmem>>, vector<16x32xbf16>
    %cst = arith.constant dense<0.000000e+00> : vector<16x256xf32>
    %4 = tpu.matmul %3, %0, %cst {dimension_numbers = #tpu.dot_dimension_numbers<[1], [0], [0], [1], [0, 0, 1, 1], [], []>} : vector<16x32xbf16>, vector<32x256xbf16>, vector<16x256xf32> -> vector<16x256xf32>
    %5 = vector.broadcast %2 : vector<1x256xf32> to vector<16x256xf32>
    %6 = arith.addf %4, %5 : vector<16x256xf32>
    %7 = vector.extract_strided_slice %6 {offsets = [0, 0], sizes = [2, 256], strides = [1, 1]} : vector<16x256xf32> to vector<2x256xf32>
    %8 = vector.extract_strided_slice %7 {offsets = [0, 0], sizes = [2, 128], strides = [1, 1]} : vector<2x256xf32> to vector<2x128xf32>
    %c0_7 = arith.constant 0 : index
    %c0_8 = arith.constant 0 : index
    %c0_9 = arith.constant 0 : index
    %9 = vector.load %arg10[%c0_7, %c0_8, %c0_9] : memref<8x2x128xf32, #tpu.memory_space<vmem>>, vector<1x2x128xf32>
    %10 = vector.shape_cast %9 : vector<1x2x128xf32> to vector<2x128xf32>
    %11 = vector.shape_cast %8 : vector<2x128xf32> to vector<1x2x128xf32>
    tpu.vector_store %arg10[%c0_7, %c0_8, %c0_9], %11 {strides = array<i32>} : memref<8x2x128xf32, #tpu.memory_space<vmem>>, vector<1x2x128xf32>,
    %12 = vector.extract_strided_slice %7 {offsets = [0, 128], sizes = [2, 128], strides = [1, 1]} : vector<2x256xf32> to vector<2x128xf32>
    %c0_10 = arith.constant 0 : index
    %c0_11 = arith.constant 0 : index
    %c0_12 = arith.constant 0 : index
    %13 = vector.load %arg11[%c0_10, %c0_11, %c0_12] : memref<8x2x128xf32, #tpu.memory_space<vmem>>, vector<1x2x128xf32>
    %14 = vector.shape_cast %13 : vector<1x2x128xf32> to vector<2x128xf32>
    %15 = vector.shape_cast %12 : vector<2x128xf32> to vector<1x2x128xf32>
    tpu.vector_store %arg11[%c0_10, %c0_11, %c0_12], %15 {strides = array<i32>} : memref<8x2x128xf32, #tpu.memory_space<vmem>>, vector<1x2x128xf32>,
    %16 = vector.extract_strided_slice %6 {offsets = [2, 0], sizes = [2, 256], strides = [1, 1]} : vector<16x256xf32> to vector<2x256xf32>
    %17 = vector.extract_strided_slice %16 {offsets = [0, 0], sizes = [2, 128], strides = [1, 1]} : vector<2x256xf32> to vector<2x128xf32>
    %c1 = arith.constant 1 : index
    %c0_13 = arith.constant 0 : index
    %c0_14 = arith.constant 0 : index
    %18 = vector.load %arg10[%c1, %c0_13, %c0_14] : memref<8x2x128xf32, #tpu.memory_space<vmem>>, vector<1x2x128xf32>
    %19 = vector.shape_cast %18 : vector<1x2x128xf32> to vector<2x128xf32>
    %20 = vector.shape_cast %17 : vector<2x128xf32> to vector<1x2x128xf32>
    tpu.vector_store %arg10[%c1, %c0_13, %c0_14], %20 {strides = array<i32>} : memref<8x2x128xf32, #tpu.memory_space<vmem>>, vector<1x2x128xf32>,
    %21 = vector.extract_strided_slice %16 {offsets = [0, 128], sizes = [2, 128], strides = [1, 1]} : vector<2x256xf32> to vector<2x128xf32>
    %c1_15 = arith.constant 1 : index
    %c0_16 = arith.constant 0 : index
    %c0_17 = arith.constant 0 : index
    %22 = vector.load %arg11[%c1_15, %c0_16, %c0_17] : memref<8x2x128xf32, #tpu.memory_space<vmem>>, vector<1x2x128xf32>
    %23 = vector.shape_cast %22 : vector<1x2x128xf32> to vector<2x128xf32>
    %24 = vector.shape_cast %21 : vector<2x128xf32> to vector<1x2x128xf32>
    tpu.vector_store %arg11[%c1_15, %c0_16, %c0_17], %24 {strides = array<i32>} : memref<8x2x128xf32, #tpu.memory_space<vmem>>, vector<1x2x128xf32>,
    %25 = vector.extract_strided_slice %6 {offsets = [4, 0], sizes = [2, 256], strides = [1, 1]} : vector<16x256xf32> to vector<2x256xf32>
    %26 = vector.extract_strided_slice %25 {offsets = [0, 0], sizes = [2, 128], strides = [1, 1]} : vector<2x256xf32> to vector<2x128xf32>
    %c2 = arith.constant 2 : index
    %c0_18 = arith.constant 0 : index
    %c0_19 = arith.constant 0 : index
    %27 = vector.load %arg10[%c2, %c0_18, %c0_19] : memref<8x2x128xf32, #tpu.memory_space<vmem>>, vector<1x2x128xf32>
    %28 = vector.shape_cast %27 : vector<1x2x128xf32> to vector<2x128xf32>
    %29 = vector.shape_cast %26 : vector<2x128xf32> to vector<1x2x128xf32>
    tpu.vector_store %arg10[%c2, %c0_18, %c0_19], %29 {strides = array<i32>} : memref<8x2x128xf32, #tpu.memory_space<vmem>>, vector<1x2x128xf32>,
    %30 = vector.extract_strided_slice %25 {offsets = [0, 128], sizes = [2, 128], strides = [1, 1]} : vector<2x256xf32> to vector<2x128xf32>
    %c2_20 = arith.constant 2 : index
    %c0_21 = arith.constant 0 : index
    %c0_22 = arith.constant 0 : index
    %31 = vector.load %arg11[%c2_20, %c0_21, %c0_22] : memref<8x2x128xf32, #tpu.memory_space<vmem>>, vector<1x2x128xf32>
    %32 = vector.shape_cast %31 : vector<1x2x128xf32> to vector<2x128xf32>
    %33 = vector.shape_cast %30 : vector<2x128xf32> to vector<1x2x128xf32>
    tpu.vector_store %arg11[%c2_20, %c0_21, %c0_22], %33 {strides = array<i32>} : memref<8x2x128xf32, #tpu.memory_space<vmem>>, vector<1x2x128xf32>,
    %34 = vector.extract_strided_slice %6 {offsets = [6, 0], sizes = [2, 256], strides = [1, 1]} : vector<16x256xf32> to vector<2x256xf32>
    %35 = vector.extract_strided_slice %34 {offsets = [0, 0], sizes = [2, 128], strides = [1, 1]} : vector<2x256xf32> to vector<2x128xf32>
    %c3 = arith.constant 3 : index
    %c0_23 = arith.constant 0 : index
    %c0_24 = arith.constant 0 : index
    %36 = vector.load %arg10[%c3, %c0_23, %c0_24] : memref<8x2x128xf32, #tpu.memory_space<vmem>>, vector<1x2x128xf32>
    %37 = vector.shape_cast %36 : vector<1x2x128xf32> to vector<2x128xf32>
    %38 = vector.shape_cast %35 : vector<2x128xf32> to vector<1x2x128xf32>
    tpu.vector_store %arg10[%c3, %c0_23, %c0_24], %38 {strides = array<i32>} : memref<8x2x128xf32, #tpu.memory_space<vmem>>, vector<1x2x128xf32>,
    %39 = vector.extract_strided_slice %34 {offsets = [0, 128], sizes = [2, 128], strides = [1, 1]} : vector<2x256xf32> to vector<2x128xf32>
    %c3_25 = arith.constant 3 : index
    %c0_26 = arith.constant 0 : index
    %c0_27 = arith.constant 0 : index
    %40 = vector.load %arg11[%c3_25, %c0_26, %c0_27] : memref<8x2x128xf32, #tpu.memory_space<vmem>>, vector<1x2x128xf32>
    %41 = vector.shape_cast %40 : vector<1x2x128xf32> to vector<2x128xf32>
    %42 = vector.shape_cast %39 : vector<2x128xf32> to vector<1x2x128xf32>
    tpu.vector_store %arg11[%c3_25, %c0_26, %c0_27], %42 {strides = array<i32>} : memref<8x2x128xf32, #tpu.memory_space<vmem>>, vector<1x2x128xf32>,
    %43 = vector.extract_strided_slice %6 {offsets = [8, 0], sizes = [2, 256], strides = [1, 1]} : vector<16x256xf32> to vector<2x256xf32>
    %44 = vector.extract_strided_slice %43 {offsets = [0, 0], sizes = [2, 128], strides = [1, 1]} : vector<2x256xf32> to vector<2x128xf32>
    %c4 = arith.constant 4 : index
    %c0_28 = arith.constant 0 : index
    %c0_29 = arith.constant 0 : index
    %45 = vector.load %arg10[%c4, %c0_28, %c0_29] : memref<8x2x128xf32, #tpu.memory_space<vmem>>, vector<1x2x128xf32>
    %46 = vector.shape_cast %45 : vector<1x2x128xf32> to vector<2x128xf32>
    %47 = vector.shape_cast %44 : vector<2x128xf32> to vector<1x2x128xf32>
    tpu.vector_store %arg10[%c4, %c0_28, %c0_29], %47 {strides = array<i32>} : memref<8x2x128xf32, #tpu.memory_space<vmem>>, vector<1x2x128xf32>,
    %48 = vector.extract_strided_slice %43 {offsets = [0, 128], sizes = [2, 128], strides = [1, 1]} : vector<2x256xf32> to vector<2x128xf32>
    %c4_30 = arith.constant 4 : index
    %c0_31 = arith.constant 0 : index
    %c0_32 = arith.constant 0 : index
    %49 = vector.load %arg11[%c4_30, %c0_31, %c0_32] : memref<8x2x128xf32, #tpu.memory_space<vmem>>, vector<1x2x128xf32>
    %50 = vector.shape_cast %49 : vector<1x2x128xf32> to vector<2x128xf32>
    %51 = vector.shape_cast %48 : vector<2x128xf32> to vector<1x2x128xf32>
    tpu.vector_store %arg11[%c4_30, %c0_31, %c0_32], %51 {strides = array<i32>} : memref<8x2x128xf32, #tpu.memory_space<vmem>>, vector<1x2x128xf32>,
    %52 = vector.extract_strided_slice %6 {offsets = [10, 0], sizes = [2, 256], strides = [1, 1]} : vector<16x256xf32> to vector<2x256xf32>
    %53 = vector.extract_strided_slice %52 {offsets = [0, 0], sizes = [2, 128], strides = [1, 1]} : vector<2x256xf32> to vector<2x128xf32>
    %c5 = arith.constant 5 : index
    %c0_33 = arith.constant 0 : index
    %c0_34 = arith.constant 0 : index
    %54 = vector.load %arg10[%c5, %c0_33, %c0_34] : memref<8x2x128xf32, #tpu.memory_space<vmem>>, vector<1x2x128xf32>
    %55 = vector.shape_cast %54 : vector<1x2x128xf32> to vector<2x128xf32>
    %56 = vector.shape_cast %53 : vector<2x128xf32> to vector<1x2x128xf32>
    tpu.vector_store %arg10[%c5, %c0_33, %c0_34], %56 {strides = array<i32>} : memref<8x2x128xf32, #tpu.memory_space<vmem>>, vector<1x2x128xf32>,
    %57 = vector.extract_strided_slice %52 {offsets = [0, 128], sizes = [2, 128], strides = [1, 1]} : vector<2x256xf32> to vector<2x128xf32>
    %c5_35 = arith.constant 5 : index
    %c0_36 = arith.constant 0 : index
    %c0_37 = arith.constant 0 : index
    %58 = vector.load %arg11[%c5_35, %c0_36, %c0_37] : memref<8x2x128xf32, #tpu.memory_space<vmem>>, vector<1x2x128xf32>
    %59 = vector.shape_cast %58 : vector<1x2x128xf32> to vector<2x128xf32>
    %60 = vector.shape_cast %57 : vector<2x128xf32> to vector<1x2x128xf32>
    tpu.vector_store %arg11[%c5_35, %c0_36, %c0_37], %60 {strides = array<i32>} : memref<8x2x128xf32, #tpu.memory_space<vmem>>, vector<1x2x128xf32>,
    %61 = vector.extract_strided_slice %6 {offsets = [12, 0], sizes = [2, 256], strides = [1, 1]} : vector<16x256xf32> to vector<2x256xf32>
    %62 = vector.extract_strided_slice %61 {offsets = [0, 0], sizes = [2, 128], strides = [1, 1]} : vector<2x256xf32> to vector<2x128xf32>
    %c6 = arith.constant 6 : index
    %c0_38 = arith.constant 0 : index
    %c0_39 = arith.constant 0 : index
    %63 = vector.load %arg10[%c6, %c0_38, %c0_39] : memref<8x2x128xf32, #tpu.memory_space<vmem>>, vector<1x2x128xf32>
    %64 = vector.shape_cast %63 : vector<1x2x128xf32> to vector<2x128xf32>
    %65 = vector.shape_cast %62 : vector<2x128xf32> to vector<1x2x128xf32>
    tpu.vector_store %arg10[%c6, %c0_38, %c0_39], %65 {strides = array<i32>} : memref<8x2x128xf32, #tpu.memory_space<vmem>>, vector<1x2x128xf32>,
    %66 = vector.extract_strided_slice %61 {offsets = [0, 128], sizes = [2, 128], strides = [1, 1]} : vector<2x256xf32> to vector<2x128xf32>
    %c6_40 = arith.constant 6 : index
    %c0_41 = arith.constant 0 : index
    %c0_42 = arith.constant 0 : index
    %67 = vector.load %arg11[%c6_40, %c0_41, %c0_42] : memref<8x2x128xf32, #tpu.memory_space<vmem>>, vector<1x2x128xf32>
    %68 = vector.shape_cast %67 : vector<1x2x128xf32> to vector<2x128xf32>
    %69 = vector.shape_cast %66 : vector<2x128xf32> to vector<1x2x128xf32>
    tpu.vector_store %arg11[%c6_40, %c0_41, %c0_42], %69 {strides = array<i32>} : memref<8x2x128xf32, #tpu.memory_space<vmem>>, vector<1x2x128xf32>,
    %70 = vector.extract_strided_slice %6 {offsets = [14, 0], sizes = [2, 256], strides = [1, 1]} : vector<16x256xf32> to vector<2x256xf32>
    %71 = vector.extract_strided_slice %70 {offsets = [0, 0], sizes = [2, 128], strides = [1, 1]} : vector<2x256xf32> to vector<2x128xf32>
    %c7 = arith.constant 7 : index
    %c0_43 = arith.constant 0 : index
    %c0_44 = arith.constant 0 : index
    %72 = vector.load %arg10[%c7, %c0_43, %c0_44] : memref<8x2x128xf32, #tpu.memory_space<vmem>>, vector<1x2x128xf32>
    %73 = vector.shape_cast %72 : vector<1x2x128xf32> to vector<2x128xf32>
    %74 = vector.shape_cast %71 : vector<2x128xf32> to vector<1x2x128xf32>
    tpu.vector_store %arg10[%c7, %c0_43, %c0_44], %74 {strides = array<i32>} : memref<8x2x128xf32, #tpu.memory_space<vmem>>, vector<1x2x128xf32>,
    %75 = vector.extract_strided_slice %70 {offsets = [0, 128], sizes = [2, 128], strides = [1, 1]} : vector<2x256xf32> to vector<2x128xf32>
    %c7_45 = arith.constant 7 : index
    %c0_46 = arith.constant 0 : index
    %c0_47 = arith.constant 0 : index
    %76 = vector.load %arg11[%c7_45, %c0_46, %c0_47] : memref<8x2x128xf32, #tpu.memory_space<vmem>>, vector<1x2x128xf32>
    %77 = vector.shape_cast %76 : vector<1x2x128xf32> to vector<2x128xf32>
    %78 = vector.shape_cast %75 : vector<2x128xf32> to vector<1x2x128xf32>
    tpu.vector_store %arg11[%c7_45, %c0_46, %c0_47], %78 {strides = array<i32>} : memref<8x2x128xf32, #tpu.memory_space<vmem>>, vector<1x2x128xf32>,
    %cst_48 = arith.constant 0.000000e+00 : f32
    %79 = vector.broadcast %cst_48 : f32 to vector<2x32xf32>
    %c0_i32 = arith.constant 0 : i32
    %c7_i32 = arith.constant 7 : i32
    %80 = arith.subi %c7_i32, %c0_i32 : i32
    %81 = tpu.concatenate %79, %79 in 0 : vector<2x32xf32>, vector<2x32xf32> -> vector<4x32xf32>
    %82 = arith.truncf %81 : vector<4x32xf32> to vector<4x32xbf16>
    %cst_49 = arith.constant dense<0.000000e+00> : vector<4x256xf32>
    %83 = tpu.matmul %82, %1, %cst_49 {dimension_numbers = #tpu.dot_dimension_numbers<[1], [0], [0], [1], [0, 0, 1, 1], [], []>} : vector<4x32xbf16>, vector<32x256xbf16>, vector<4x256xf32> -> vector<4x256xf32>
    %84 = arith.index_cast %c0_i32 : i32 to index
    %c0_50 = arith.constant 0 : index
    %c0_51 = arith.constant 0 : index
    %85 = vector.load %arg10[%84, %c0_50, %c0_51] : memref<8x2x128xf32, #tpu.memory_space<vmem>>, vector<1x2x128xf32>
    %86 = vector.shape_cast %85 : vector<1x2x128xf32> to vector<2x128xf32>
    %87 = vector.extract_strided_slice %83 {offsets = [0, 0], sizes = [2, 128], strides = [1, 1]} : vector<4x256xf32> to vector<2x128xf32>
    %88 = arith.addf %86, %87 : vector<2x128xf32>
    %89 = arith.index_cast %80 : i32 to index
    %c0_52 = arith.constant 0 : index
    %c0_53 = arith.constant 0 : index
    %90 = vector.load %arg11[%89, %c0_52, %c0_53] : memref<8x2x128xf32, #tpu.memory_space<vmem>>, vector<1x2x128xf32>
    %91 = vector.shape_cast %90 : vector<1x2x128xf32> to vector<2x128xf32>
    %92 = vector.extract_strided_slice %83 {offsets = [2, 128], sizes = [2, 128], strides = [1, 1]} : vector<4x256xf32> to vector<2x128xf32>
    %93 = arith.addf %91, %92 : vector<2x128xf32>
    %94 = vector.extract_strided_slice %88 {offsets = [0, 0], sizes = [2, 96], strides = [1, 1]} : vector<2x128xf32> to vector<2x96xf32>
    %95 = arith.negf %94 : vector<2x96xf32>
    %96 = math.exp %95 : vector<2x96xf32>
    %cst_54 = arith.constant 1.000000e+00 : f32
    %97 = vector.broadcast %cst_54 : f32 to vector<2x96xf32>
    %98 = arith.addf %97, %96 : vector<2x96xf32>
    %99 = arith.divf %97, %98 : vector<2x96xf32>
    %100 = vector.extract_strided_slice %88 {offsets = [0, 96], sizes = [2, 32], strides = [1, 1]} : vector<2x128xf32> to vector<2x32xf32>
    %101 = math.tanh %100 : vector<2x32xf32>
    %102 = vector.extract_strided_slice %99 {offsets = [0, 0], sizes = [2, 32], strides = [1, 1]} : vector<2x96xf32> to vector<2x32xf32>
    %103 = vector.extract_strided_slice %99 {offsets = [0, 32], sizes = [2, 32], strides = [1, 1]} : vector<2x96xf32> to vector<2x32xf32>
    %104 = vector.extract_strided_slice %99 {offsets = [0, 64], sizes = [2, 32], strides = [1, 1]} : vector<2x96xf32> to vector<2x32xf32>
    %105 = arith.mulf %103, %79 : vector<2x32xf32>
    %106 = arith.mulf %102, %101 : vector<2x32xf32>
    %107 = arith.addf %105, %106 : vector<2x32xf32>
    %108 = math.tanh %107 : vector<2x32xf32>
    %109 = arith.mulf %104, %108 : vector<2x32xf32>
    %110 = vector.extract_strided_slice %93 {offsets = [0, 0], sizes = [2, 96], strides = [1, 1]} : vector<2x128xf32> to vector<2x96xf32>
    %111 = arith.negf %110 : vector<2x96xf32>
    %112 = math.exp %111 : vector<2x96xf32>
    %cst_55 = arith.constant 1.000000e+00 : f32
    %113 = vector.broadcast %cst_55 : f32 to vector<2x96xf32>
    %114 = arith.addf %113, %112 : vector<2x96xf32>
    %115 = arith.divf %113, %114 : vector<2x96xf32>
    %116 = vector.extract_strided_slice %93 {offsets = [0, 96], sizes = [2, 32], strides = [1, 1]} : vector<2x128xf32> to vector<2x32xf32>
    %117 = math.tanh %116 : vector<2x32xf32>
    %118 = vector.extract_strided_slice %115 {offsets = [0, 0], sizes = [2, 32], strides = [1, 1]} : vector<2x96xf32> to vector<2x32xf32>
    %119 = vector.extract_strided_slice %115 {offsets = [0, 32], sizes = [2, 32], strides = [1, 1]} : vector<2x96xf32> to vector<2x32xf32>
    %120 = vector.extract_strided_slice %115 {offsets = [0, 64], sizes = [2, 32], strides = [1, 1]} : vector<2x96xf32> to vector<2x32xf32>
    %121 = arith.mulf %119, %79 : vector<2x32xf32>
    %122 = arith.mulf %118, %117 : vector<2x32xf32>
    %123 = arith.addf %121, %122 : vector<2x32xf32>
    %124 = math.tanh %123 : vector<2x32xf32>
    %125 = arith.mulf %120, %124 : vector<2x32xf32>
    %126 = arith.index_cast %c0_i32 : i32 to index
    %c0_56 = arith.constant 0 : index
    %c0_57 = arith.constant 0 : index
    %127 = vector.load %arg12[%126, %c0_56, %c0_57] : memref<8x2x32xf32, #tpu.memory_space<vmem>>, vector<1x2x32xf32>
    %128 = vector.shape_cast %127 : vector<1x2x32xf32> to vector<2x32xf32>
    %129 = vector.shape_cast %109 : vector<2x32xf32> to vector<1x2x32xf32>
    tpu.vector_store %arg12[%126, %c0_56, %c0_57], %129 {strides = array<i32>} : memref<8x2x32xf32, #tpu.memory_space<vmem>>, vector<1x2x32xf32>,
    %130 = arith.index_cast %80 : i32 to index
    %c0_58 = arith.constant 0 : index
    %c0_59 = arith.constant 0 : index
    %131 = vector.load %arg13[%130, %c0_58, %c0_59] : memref<8x2x32xf32, #tpu.memory_space<vmem>>, vector<1x2x32xf32>
    %132 = vector.shape_cast %131 : vector<1x2x32xf32> to vector<2x32xf32>
    %133 = vector.shape_cast %125 : vector<2x32xf32> to vector<1x2x32xf32>
    tpu.vector_store %arg13[%130, %c0_58, %c0_59], %133 {strides = array<i32>} : memref<8x2x32xf32, #tpu.memory_space<vmem>>, vector<1x2x32xf32>,
    %c1_i32 = arith.constant 1 : i32
    %c7_i32_60 = arith.constant 7 : i32
    %134 = arith.subi %c7_i32_60, %c1_i32 : i32
    %135 = tpu.concatenate %109, %125 in 0 : vector<2x32xf32>, vector<2x32xf32> -> vector<4x32xf32>
    %136 = arith.truncf %135 : vector<4x32xf32> to vector<4x32xbf16>
    %cst_61 = arith.constant dense<0.000000e+00> : vector<4x256xf32>
    %137 = tpu.matmul %136, %1, %cst_61 {dimension_numbers = #tpu.dot_dimension_numbers<[1], [0], [0], [1], [0, 0, 1, 1], [], []>} : vector<4x32xbf16>, vector<32x256xbf16>, vector<4x256xf32> -> vector<4x256xf32>
    %138 = arith.index_cast %c1_i32 : i32 to index
    %c0_62 = arith.constant 0 : index
    %c0_63 = arith.constant 0 : index
    %139 = vector.load %arg10[%138, %c0_62, %c0_63] : memref<8x2x128xf32, #tpu.memory_space<vmem>>, vector<1x2x128xf32>
    %140 = vector.shape_cast %139 : vector<1x2x128xf32> to vector<2x128xf32>
    %141 = vector.extract_strided_slice %137 {offsets = [0, 0], sizes = [2, 128], strides = [1, 1]} : vector<4x256xf32> to vector<2x128xf32>
    %142 = arith.addf %140, %141 : vector<2x128xf32>
    %143 = arith.index_cast %134 : i32 to index
    %c0_64 = arith.constant 0 : index
    %c0_65 = arith.constant 0 : index
    %144 = vector.load %arg11[%143, %c0_64, %c0_65] : memref<8x2x128xf32, #tpu.memory_space<vmem>>, vector<1x2x128xf32>
    %145 = vector.shape_cast %144 : vector<1x2x128xf32> to vector<2x128xf32>
    %146 = vector.extract_strided_slice %137 {offsets = [2, 128], sizes = [2, 128], strides = [1, 1]} : vector<4x256xf32> to vector<2x128xf32>
    %147 = arith.addf %145, %146 : vector<2x128xf32>
    %148 = vector.extract_strided_slice %142 {offsets = [0, 0], sizes = [2, 96], strides = [1, 1]} : vector<2x128xf32> to vector<2x96xf32>
    %149 = arith.negf %148 : vector<2x96xf32>
    %150 = math.exp %149 : vector<2x96xf32>
    %cst_66 = arith.constant 1.000000e+00 : f32
    %151 = vector.broadcast %cst_66 : f32 to vector<2x96xf32>
    %152 = arith.addf %151, %150 : vector<2x96xf32>
    %153 = arith.divf %151, %152 : vector<2x96xf32>
    %154 = vector.extract_strided_slice %142 {offsets = [0, 96], sizes = [2, 32], strides = [1, 1]} : vector<2x128xf32> to vector<2x32xf32>
    %155 = math.tanh %154 : vector<2x32xf32>
    %156 = vector.extract_strided_slice %153 {offsets = [0, 0], sizes = [2, 32], strides = [1, 1]} : vector<2x96xf32> to vector<2x32xf32>
    %157 = vector.extract_strided_slice %153 {offsets = [0, 32], sizes = [2, 32], strides = [1, 1]} : vector<2x96xf32> to vector<2x32xf32>
    %158 = vector.extract_strided_slice %153 {offsets = [0, 64], sizes = [2, 32], strides = [1, 1]} : vector<2x96xf32> to vector<2x32xf32>
    %159 = arith.mulf %157, %107 : vector<2x32xf32>
    %160 = arith.mulf %156, %155 : vector<2x32xf32>
    %161 = arith.addf %159, %160 : vector<2x32xf32>
    %162 = math.tanh %161 : vector<2x32xf32>
    %163 = arith.mulf %158, %162 : vector<2x32xf32>
    %164 = vector.extract_strided_slice %147 {offsets = [0, 0], sizes = [2, 96], strides = [1, 1]} : vector<2x128xf32> to vector<2x96xf32>
    %165 = arith.negf %164 : vector<2x96xf32>
    %166 = math.exp %165 : vector<2x96xf32>
    %cst_67 = arith.constant 1.000000e+00 : f32
    %167 = vector.broadcast %cst_67 : f32 to vector<2x96xf32>
    %168 = arith.addf %167, %166 : vector<2x96xf32>
    %169 = arith.divf %167, %168 : vector<2x96xf32>
    %170 = vector.extract_strided_slice %147 {offsets = [0, 96], sizes = [2, 32], strides = [1, 1]} : vector<2x128xf32> to vector<2x32xf32>
    %171 = math.tanh %170 : vector<2x32xf32>
    %172 = vector.extract_strided_slice %169 {offsets = [0, 0], sizes = [2, 32], strides = [1, 1]} : vector<2x96xf32> to vector<2x32xf32>
    %173 = vector.extract_strided_slice %169 {offsets = [0, 32], sizes = [2, 32], strides = [1, 1]} : vector<2x96xf32> to vector<2x32xf32>
    %174 = vector.extract_strided_slice %169 {offsets = [0, 64], sizes = [2, 32], strides = [1, 1]} : vector<2x96xf32> to vector<2x32xf32>
    %175 = arith.mulf %173, %123 : vector<2x32xf32>
    %176 = arith.mulf %172, %171 : vector<2x32xf32>
    %177 = arith.addf %175, %176 : vector<2x32xf32>
    %178 = math.tanh %177 : vector<2x32xf32>
    %179 = arith.mulf %174, %178 : vector<2x32xf32>
    %180 = arith.index_cast %c1_i32 : i32 to index
    %c0_68 = arith.constant 0 : index
    %c0_69 = arith.constant 0 : index
    %181 = vector.load %arg12[%180, %c0_68, %c0_69] : memref<8x2x32xf32, #tpu.memory_space<vmem>>, vector<1x2x32xf32>
    %182 = vector.shape_cast %181 : vector<1x2x32xf32> to vector<2x32xf32>
    %183 = vector.shape_cast %163 : vector<2x32xf32> to vector<1x2x32xf32>
    tpu.vector_store %arg12[%180, %c0_68, %c0_69], %183 {strides = array<i32>} : memref<8x2x32xf32, #tpu.memory_space<vmem>>, vector<1x2x32xf32>,
    %184 = arith.index_cast %134 : i32 to index
    %c0_70 = arith.constant 0 : index
    %c0_71 = arith.constant 0 : index
    %185 = vector.load %arg13[%184, %c0_70, %c0_71] : memref<8x2x32xf32, #tpu.memory_space<vmem>>, vector<1x2x32xf32>
    %186 = vector.shape_cast %185 : vector<1x2x32xf32> to vector<2x32xf32>
    %187 = vector.shape_cast %179 : vector<2x32xf32> to vector<1x2x32xf32>
    tpu.vector_store %arg13[%184, %c0_70, %c0_71], %187 {strides = array<i32>} : memref<8x2x32xf32, #tpu.memory_space<vmem>>, vector<1x2x32xf32>,
    %c2_i32 = arith.constant 2 : i32
    %c7_i32_72 = arith.constant 7 : i32
    %188 = arith.subi %c7_i32_72, %c2_i32 : i32
    %189 = tpu.concatenate %163, %179 in 0 : vector<2x32xf32>, vector<2x32xf32> -> vector<4x32xf32>
    %190 = arith.truncf %189 : vector<4x32xf32> to vector<4x32xbf16>
    %cst_73 = arith.constant dense<0.000000e+00> : vector<4x256xf32>
    %191 = tpu.matmul %190, %1, %cst_73 {dimension_numbers = #tpu.dot_dimension_numbers<[1], [0], [0], [1], [0, 0, 1, 1], [], []>} : vector<4x32xbf16>, vector<32x256xbf16>, vector<4x256xf32> -> vector<4x256xf32>
    %192 = arith.index_cast %c2_i32 : i32 to index
    %c0_74 = arith.constant 0 : index
    %c0_75 = arith.constant 0 : index
    %193 = vector.load %arg10[%192, %c0_74, %c0_75] : memref<8x2x128xf32, #tpu.memory_space<vmem>>, vector<1x2x128xf32>
    %194 = vector.shape_cast %193 : vector<1x2x128xf32> to vector<2x128xf32>
    %195 = vector.extract_strided_slice %191 {offsets = [0, 0], sizes = [2, 128], strides = [1, 1]} : vector<4x256xf32> to vector<2x128xf32>
    %196 = arith.addf %194, %195 : vector<2x128xf32>
    %197 = arith.index_cast %188 : i32 to index
    %c0_76 = arith.constant 0 : index
    %c0_77 = arith.constant 0 : index
    %198 = vector.load %arg11[%197, %c0_76, %c0_77] : memref<8x2x128xf32, #tpu.memory_space<vmem>>, vector<1x2x128xf32>
    %199 = vector.shape_cast %198 : vector<1x2x128xf32> to vector<2x128xf32>
    %200 = vector.extract_strided_slice %191 {offsets = [2, 128], sizes = [2, 128], strides = [1, 1]} : vector<4x256xf32> to vector<2x128xf32>
    %201 = arith.addf %199, %200 : vector<2x128xf32>
    %202 = vector.extract_strided_slice %196 {offsets = [0, 0], sizes = [2, 96], strides = [1, 1]} : vector<2x128xf32> to vector<2x96xf32>
    %203 = arith.negf %202 : vector<2x96xf32>
    %204 = math.exp %203 : vector<2x96xf32>
    %cst_78 = arith.constant 1.000000e+00 : f32
    %205 = vector.broadcast %cst_78 : f32 to vector<2x96xf32>
    %206 = arith.addf %205, %204 : vector<2x96xf32>
    %207 = arith.divf %205, %206 : vector<2x96xf32>
    %208 = vector.extract_strided_slice %196 {offsets = [0, 96], sizes = [2, 32], strides = [1, 1]} : vector<2x128xf32> to vector<2x32xf32>
    %209 = math.tanh %208 : vector<2x32xf32>
    %210 = vector.extract_strided_slice %207 {offsets = [0, 0], sizes = [2, 32], strides = [1, 1]} : vector<2x96xf32> to vector<2x32xf32>
    %211 = vector.extract_strided_slice %207 {offsets = [0, 32], sizes = [2, 32], strides = [1, 1]} : vector<2x96xf32> to vector<2x32xf32>
    %212 = vector.extract_strided_slice %207 {offsets = [0, 64], sizes = [2, 32], strides = [1, 1]} : vector<2x96xf32> to vector<2x32xf32>
    %213 = arith.mulf %211, %161 : vector<2x32xf32>
    %214 = arith.mulf %210, %209 : vector<2x32xf32>
    %215 = arith.addf %213, %214 : vector<2x32xf32>
    %216 = math.tanh %215 : vector<2x32xf32>
    %217 = arith.mulf %212, %216 : vector<2x32xf32>
    %218 = vector.extract_strided_slice %201 {offsets = [0, 0], sizes = [2, 96], strides = [1, 1]} : vector<2x128xf32> to vector<2x96xf32>
    %219 = arith.negf %218 : vector<2x96xf32>
    %220 = math.exp %219 : vector<2x96xf32>
    %cst_79 = arith.constant 1.000000e+00 : f32
    %221 = vector.broadcast %cst_79 : f32 to vector<2x96xf32>
    %222 = arith.addf %221, %220 : vector<2x96xf32>
    %223 = arith.divf %221, %222 : vector<2x96xf32>
    %224 = vector.extract_strided_slice %201 {offsets = [0, 96], sizes = [2, 32], strides = [1, 1]} : vector<2x128xf32> to vector<2x32xf32>
    %225 = math.tanh %224 : vector<2x32xf32>
    %226 = vector.extract_strided_slice %223 {offsets = [0, 0], sizes = [2, 32], strides = [1, 1]} : vector<2x96xf32> to vector<2x32xf32>
    %227 = vector.extract_strided_slice %223 {offsets = [0, 32], sizes = [2, 32], strides = [1, 1]} : vector<2x96xf32> to vector<2x32xf32>
    %228 = vector.extract_strided_slice %223 {offsets = [0, 64], sizes = [2, 32], strides = [1, 1]} : vector<2x96xf32> to vector<2x32xf32>
    %229 = arith.mulf %227, %177 : vector<2x32xf32>
    %230 = arith.mulf %226, %225 : vector<2x32xf32>
    %231 = arith.addf %229, %230 : vector<2x32xf32>
    %232 = math.tanh %231 : vector<2x32xf32>
    %233 = arith.mulf %228, %232 : vector<2x32xf32>
    %234 = arith.index_cast %c2_i32 : i32 to index
    %c0_80 = arith.constant 0 : index
    %c0_81 = arith.constant 0 : index
    %235 = vector.load %arg12[%234, %c0_80, %c0_81] : memref<8x2x32xf32, #tpu.memory_space<vmem>>, vector<1x2x32xf32>
    %236 = vector.shape_cast %235 : vector<1x2x32xf32> to vector<2x32xf32>
    %237 = vector.shape_cast %217 : vector<2x32xf32> to vector<1x2x32xf32>
    tpu.vector_store %arg12[%234, %c0_80, %c0_81], %237 {strides = array<i32>} : memref<8x2x32xf32, #tpu.memory_space<vmem>>, vector<1x2x32xf32>,
    %238 = arith.index_cast %188 : i32 to index
    %c0_82 = arith.constant 0 : index
    %c0_83 = arith.constant 0 : index
    %239 = vector.load %arg13[%238, %c0_82, %c0_83] : memref<8x2x32xf32, #tpu.memory_space<vmem>>, vector<1x2x32xf32>
    %240 = vector.shape_cast %239 : vector<1x2x32xf32> to vector<2x32xf32>
    %241 = vector.shape_cast %233 : vector<2x32xf32> to vector<1x2x32xf32>
    tpu.vector_store %arg13[%238, %c0_82, %c0_83], %241 {strides = array<i32>} : memref<8x2x32xf32, #tpu.memory_space<vmem>>, vector<1x2x32xf32>,
    %c3_i32 = arith.constant 3 : i32
    %c7_i32_84 = arith.constant 7 : i32
    %242 = arith.subi %c7_i32_84, %c3_i32 : i32
    %243 = tpu.concatenate %217, %233 in 0 : vector<2x32xf32>, vector<2x32xf32> -> vector<4x32xf32>
    %244 = arith.truncf %243 : vector<4x32xf32> to vector<4x32xbf16>
    %cst_85 = arith.constant dense<0.000000e+00> : vector<4x256xf32>
    %245 = tpu.matmul %244, %1, %cst_85 {dimension_numbers = #tpu.dot_dimension_numbers<[1], [0], [0], [1], [0, 0, 1, 1], [], []>} : vector<4x32xbf16>, vector<32x256xbf16>, vector<4x256xf32> -> vector<4x256xf32>
    %246 = arith.index_cast %c3_i32 : i32 to index
    %c0_86 = arith.constant 0 : index
    %c0_87 = arith.constant 0 : index
    %247 = vector.load %arg10[%246, %c0_86, %c0_87] : memref<8x2x128xf32, #tpu.memory_space<vmem>>, vector<1x2x128xf32>
    %248 = vector.shape_cast %247 : vector<1x2x128xf32> to vector<2x128xf32>
    %249 = vector.extract_strided_slice %245 {offsets = [0, 0], sizes = [2, 128], strides = [1, 1]} : vector<4x256xf32> to vector<2x128xf32>
    %250 = arith.addf %248, %249 : vector<2x128xf32>
    %251 = arith.index_cast %242 : i32 to index
    %c0_88 = arith.constant 0 : index
    %c0_89 = arith.constant 0 : index
    %252 = vector.load %arg11[%251, %c0_88, %c0_89] : memref<8x2x128xf32, #tpu.memory_space<vmem>>, vector<1x2x128xf32>
    %253 = vector.shape_cast %252 : vector<1x2x128xf32> to vector<2x128xf32>
    %254 = vector.extract_strided_slice %245 {offsets = [2, 128], sizes = [2, 128], strides = [1, 1]} : vector<4x256xf32> to vector<2x128xf32>
    %255 = arith.addf %253, %254 : vector<2x128xf32>
    %256 = vector.extract_strided_slice %250 {offsets = [0, 0], sizes = [2, 96], strides = [1, 1]} : vector<2x128xf32> to vector<2x96xf32>
    %257 = arith.negf %256 : vector<2x96xf32>
    %258 = math.exp %257 : vector<2x96xf32>
    %cst_90 = arith.constant 1.000000e+00 : f32
    %259 = vector.broadcast %cst_90 : f32 to vector<2x96xf32>
    %260 = arith.addf %259, %258 : vector<2x96xf32>
    %261 = arith.divf %259, %260 : vector<2x96xf32>
    %262 = vector.extract_strided_slice %250 {offsets = [0, 96], sizes = [2, 32], strides = [1, 1]} : vector<2x128xf32> to vector<2x32xf32>
    %263 = math.tanh %262 : vector<2x32xf32>
    %264 = vector.extract_strided_slice %261 {offsets = [0, 0], sizes = [2, 32], strides = [1, 1]} : vector<2x96xf32> to vector<2x32xf32>
    %265 = vector.extract_strided_slice %261 {offsets = [0, 32], sizes = [2, 32], strides = [1, 1]} : vector<2x96xf32> to vector<2x32xf32>
    %266 = vector.extract_strided_slice %261 {offsets = [0, 64], sizes = [2, 32], strides = [1, 1]} : vector<2x96xf32> to vector<2x32xf32>
    %267 = arith.mulf %265, %215 : vector<2x32xf32>
    %268 = arith.mulf %264, %263 : vector<2x32xf32>
    %269 = arith.addf %267, %268 : vector<2x32xf32>
    %270 = math.tanh %269 : vector<2x32xf32>
    %271 = arith.mulf %266, %270 : vector<2x32xf32>
    %272 = vector.extract_strided_slice %255 {offsets = [0, 0], sizes = [2, 96], strides = [1, 1]} : vector<2x128xf32> to vector<2x96xf32>
    %273 = arith.negf %272 : vector<2x96xf32>
    %274 = math.exp %273 : vector<2x96xf32>
    %cst_91 = arith.constant 1.000000e+00 : f32
    %275 = vector.broadcast %cst_91 : f32 to vector<2x96xf32>
    %276 = arith.addf %275, %274 : vector<2x96xf32>
    %277 = arith.divf %275, %276 : vector<2x96xf32>
    %278 = vector.extract_strided_slice %255 {offsets = [0, 96], sizes = [2, 32], strides = [1, 1]} : vector<2x128xf32> to vector<2x32xf32>
    %279 = math.tanh %278 : vector<2x32xf32>
    %280 = vector.extract_strided_slice %277 {offsets = [0, 0], sizes = [2, 32], strides = [1, 1]} : vector<2x96xf32> to vector<2x32xf32>
    %281 = vector.extract_strided_slice %277 {offsets = [0, 32], sizes = [2, 32], strides = [1, 1]} : vector<2x96xf32> to vector<2x32xf32>
    %282 = vector.extract_strided_slice %277 {offsets = [0, 64], sizes = [2, 32], strides = [1, 1]} : vector<2x96xf32> to vector<2x32xf32>
    %283 = arith.mulf %281, %231 : vector<2x32xf32>
    %284 = arith.mulf %280, %279 : vector<2x32xf32>
    %285 = arith.addf %283, %284 : vector<2x32xf32>
    %286 = math.tanh %285 : vector<2x32xf32>
    %287 = arith.mulf %282, %286 : vector<2x32xf32>
    %288 = arith.index_cast %c3_i32 : i32 to index
    %c0_92 = arith.constant 0 : index
    %c0_93 = arith.constant 0 : index
    %289 = vector.load %arg12[%288, %c0_92, %c0_93] : memref<8x2x32xf32, #tpu.memory_space<vmem>>, vector<1x2x32xf32>
    %290 = vector.shape_cast %289 : vector<1x2x32xf32> to vector<2x32xf32>
    %291 = vector.shape_cast %271 : vector<2x32xf32> to vector<1x2x32xf32>
    tpu.vector_store %arg12[%288, %c0_92, %c0_93], %291 {strides = array<i32>} : memref<8x2x32xf32, #tpu.memory_space<vmem>>, vector<1x2x32xf32>,
    %292 = arith.index_cast %242 : i32 to index
    %c0_94 = arith.constant 0 : index
    %c0_95 = arith.constant 0 : index
    %293 = vector.load %arg13[%292, %c0_94, %c0_95] : memref<8x2x32xf32, #tpu.memory_space<vmem>>, vector<1x2x32xf32>
    %294 = vector.shape_cast %293 : vector<1x2x32xf32> to vector<2x32xf32>
    %295 = vector.shape_cast %287 : vector<2x32xf32> to vector<1x2x32xf32>
    tpu.vector_store %arg13[%292, %c0_94, %c0_95], %295 {strides = array<i32>} : memref<8x2x32xf32, #tpu.memory_space<vmem>>, vector<1x2x32xf32>,
    %c4_i32 = arith.constant 4 : i32
    %c7_i32_96 = arith.constant 7 : i32
    %296 = arith.subi %c7_i32_96, %c4_i32 : i32
    %297 = tpu.concatenate %271, %287 in 0 : vector<2x32xf32>, vector<2x32xf32> -> vector<4x32xf32>
    %298 = arith.truncf %297 : vector<4x32xf32> to vector<4x32xbf16>
    %cst_97 = arith.constant dense<0.000000e+00> : vector<4x256xf32>
    %299 = tpu.matmul %298, %1, %cst_97 {dimension_numbers = #tpu.dot_dimension_numbers<[1], [0], [0], [1], [0, 0, 1, 1], [], []>} : vector<4x32xbf16>, vector<32x256xbf16>, vector<4x256xf32> -> vector<4x256xf32>
    %300 = arith.index_cast %c4_i32 : i32 to index
    %c0_98 = arith.constant 0 : index
    %c0_99 = arith.constant 0 : index
    %301 = vector.load %arg10[%300, %c0_98, %c0_99] : memref<8x2x128xf32, #tpu.memory_space<vmem>>, vector<1x2x128xf32>
    %302 = vector.shape_cast %301 : vector<1x2x128xf32> to vector<2x128xf32>
    %303 = vector.extract_strided_slice %299 {offsets = [0, 0], sizes = [2, 128], strides = [1, 1]} : vector<4x256xf32> to vector<2x128xf32>
    %304 = arith.addf %302, %303 : vector<2x128xf32>
    %305 = arith.index_cast %296 : i32 to index
    %c0_100 = arith.constant 0 : index
    %c0_101 = arith.constant 0 : index
    %306 = vector.load %arg11[%305, %c0_100, %c0_101] : memref<8x2x128xf32, #tpu.memory_space<vmem>>, vector<1x2x128xf32>
    %307 = vector.shape_cast %306 : vector<1x2x128xf32> to vector<2x128xf32>
    %308 = vector.extract_strided_slice %299 {offsets = [2, 128], sizes = [2, 128], strides = [1, 1]} : vector<4x256xf32> to vector<2x128xf32>
    %309 = arith.addf %307, %308 : vector<2x128xf32>
    %310 = vector.extract_strided_slice %304 {offsets = [0, 0], sizes = [2, 96], strides = [1, 1]} : vector<2x128xf32> to vector<2x96xf32>
    %311 = arith.negf %310 : vector<2x96xf32>
    %312 = math.exp %311 : vector<2x96xf32>
    %cst_102 = arith.constant 1.000000e+00 : f32
    %313 = vector.broadcast %cst_102 : f32 to vector<2x96xf32>
    %314 = arith.addf %313, %312 : vector<2x96xf32>
    %315 = arith.divf %313, %314 : vector<2x96xf32>
    %316 = vector.extract_strided_slice %304 {offsets = [0, 96], sizes = [2, 32], strides = [1, 1]} : vector<2x128xf32> to vector<2x32xf32>
    %317 = math.tanh %316 : vector<2x32xf32>
    %318 = vector.extract_strided_slice %315 {offsets = [0, 0], sizes = [2, 32], strides = [1, 1]} : vector<2x96xf32> to vector<2x32xf32>
    %319 = vector.extract_strided_slice %315 {offsets = [0, 32], sizes = [2, 32], strides = [1, 1]} : vector<2x96xf32> to vector<2x32xf32>
    %320 = vector.extract_strided_slice %315 {offsets = [0, 64], sizes = [2, 32], strides = [1, 1]} : vector<2x96xf32> to vector<2x32xf32>
    %321 = arith.mulf %319, %269 : vector<2x32xf32>
    %322 = arith.mulf %318, %317 : vector<2x32xf32>
    %323 = arith.addf %321, %322 : vector<2x32xf32>
    %324 = math.tanh %323 : vector<2x32xf32>
    %325 = arith.mulf %320, %324 : vector<2x32xf32>
    %326 = vector.extract_strided_slice %309 {offsets = [0, 0], sizes = [2, 96], strides = [1, 1]} : vector<2x128xf32> to vector<2x96xf32>
    %327 = arith.negf %326 : vector<2x96xf32>
    %328 = math.exp %327 : vector<2x96xf32>
    %cst_103 = arith.constant 1.000000e+00 : f32
    %329 = vector.broadcast %cst_103 : f32 to vector<2x96xf32>
    %330 = arith.addf %329, %328 : vector<2x96xf32>
    %331 = arith.divf %329, %330 : vector<2x96xf32>
    %332 = vector.extract_strided_slice %309 {offsets = [0, 96], sizes = [2, 32], strides = [1, 1]} : vector<2x128xf32> to vector<2x32xf32>
    %333 = math.tanh %332 : vector<2x32xf32>
    %334 = vector.extract_strided_slice %331 {offsets = [0, 0], sizes = [2, 32], strides = [1, 1]} : vector<2x96xf32> to vector<2x32xf32>
    %335 = vector.extract_strided_slice %331 {offsets = [0, 32], sizes = [2, 32], strides = [1, 1]} : vector<2x96xf32> to vector<2x32xf32>
    %336 = vector.extract_strided_slice %331 {offsets = [0, 64], sizes = [2, 32], strides = [1, 1]} : vector<2x96xf32> to vector<2x32xf32>
    %337 = arith.mulf %335, %285 : vector<2x32xf32>
    %338 = arith.mulf %334, %333 : vector<2x32xf32>
    %339 = arith.addf %337, %338 : vector<2x32xf32>
    %340 = math.tanh %339 : vector<2x32xf32>
    %341 = arith.mulf %336, %340 : vector<2x32xf32>
    %342 = arith.index_cast %c4_i32 : i32 to index
    %c0_104 = arith.constant 0 : index
    %c0_105 = arith.constant 0 : index
    %343 = vector.load %arg12[%342, %c0_104, %c0_105] : memref<8x2x32xf32, #tpu.memory_space<vmem>>, vector<1x2x32xf32>
    %344 = vector.shape_cast %343 : vector<1x2x32xf32> to vector<2x32xf32>
    %345 = vector.shape_cast %325 : vector<2x32xf32> to vector<1x2x32xf32>
    tpu.vector_store %arg12[%342, %c0_104, %c0_105], %345 {strides = array<i32>} : memref<8x2x32xf32, #tpu.memory_space<vmem>>, vector<1x2x32xf32>,
    %346 = arith.index_cast %296 : i32 to index
    %c0_106 = arith.constant 0 : index
    %c0_107 = arith.constant 0 : index
    %347 = vector.load %arg13[%346, %c0_106, %c0_107] : memref<8x2x32xf32, #tpu.memory_space<vmem>>, vector<1x2x32xf32>
    %348 = vector.shape_cast %347 : vector<1x2x32xf32> to vector<2x32xf32>
    %349 = vector.shape_cast %341 : vector<2x32xf32> to vector<1x2x32xf32>
    tpu.vector_store %arg13[%346, %c0_106, %c0_107], %349 {strides = array<i32>} : memref<8x2x32xf32, #tpu.memory_space<vmem>>, vector<1x2x32xf32>,
    %c5_i32 = arith.constant 5 : i32
    %c7_i32_108 = arith.constant 7 : i32
    %350 = arith.subi %c7_i32_108, %c5_i32 : i32
    %351 = tpu.concatenate %325, %341 in 0 : vector<2x32xf32>, vector<2x32xf32> -> vector<4x32xf32>
    %352 = arith.truncf %351 : vector<4x32xf32> to vector<4x32xbf16>
    %cst_109 = arith.constant dense<0.000000e+00> : vector<4x256xf32>
    %353 = tpu.matmul %352, %1, %cst_109 {dimension_numbers = #tpu.dot_dimension_numbers<[1], [0], [0], [1], [0, 0, 1, 1], [], []>} : vector<4x32xbf16>, vector<32x256xbf16>, vector<4x256xf32> -> vector<4x256xf32>
    %354 = arith.index_cast %c5_i32 : i32 to index
    %c0_110 = arith.constant 0 : index
    %c0_111 = arith.constant 0 : index
    %355 = vector.load %arg10[%354, %c0_110, %c0_111] : memref<8x2x128xf32, #tpu.memory_space<vmem>>, vector<1x2x128xf32>
    %356 = vector.shape_cast %355 : vector<1x2x128xf32> to vector<2x128xf32>
    %357 = vector.extract_strided_slice %353 {offsets = [0, 0], sizes = [2, 128], strides = [1, 1]} : vector<4x256xf32> to vector<2x128xf32>
    %358 = arith.addf %356, %357 : vector<2x128xf32>
    %359 = arith.index_cast %350 : i32 to index
    %c0_112 = arith.constant 0 : index
    %c0_113 = arith.constant 0 : index
    %360 = vector.load %arg11[%359, %c0_112, %c0_113] : memref<8x2x128xf32, #tpu.memory_space<vmem>>, vector<1x2x128xf32>
    %361 = vector.shape_cast %360 : vector<1x2x128xf32> to vector<2x128xf32>
    %362 = vector.extract_strided_slice %353 {offsets = [2, 128], sizes = [2, 128], strides = [1, 1]} : vector<4x256xf32> to vector<2x128xf32>
    %363 = arith.addf %361, %362 : vector<2x128xf32>
    %364 = vector.extract_strided_slice %358 {offsets = [0, 0], sizes = [2, 96], strides = [1, 1]} : vector<2x128xf32> to vector<2x96xf32>
    %365 = arith.negf %364 : vector<2x96xf32>
    %366 = math.exp %365 : vector<2x96xf32>
    %cst_114 = arith.constant 1.000000e+00 : f32
    %367 = vector.broadcast %cst_114 : f32 to vector<2x96xf32>
    %368 = arith.addf %367, %366 : vector<2x96xf32>
    %369 = arith.divf %367, %368 : vector<2x96xf32>
    %370 = vector.extract_strided_slice %358 {offsets = [0, 96], sizes = [2, 32], strides = [1, 1]} : vector<2x128xf32> to vector<2x32xf32>
    %371 = math.tanh %370 : vector<2x32xf32>
    %372 = vector.extract_strided_slice %369 {offsets = [0, 0], sizes = [2, 32], strides = [1, 1]} : vector<2x96xf32> to vector<2x32xf32>
    %373 = vector.extract_strided_slice %369 {offsets = [0, 32], sizes = [2, 32], strides = [1, 1]} : vector<2x96xf32> to vector<2x32xf32>
    %374 = vector.extract_strided_slice %369 {offsets = [0, 64], sizes = [2, 32], strides = [1, 1]} : vector<2x96xf32> to vector<2x32xf32>
    %375 = arith.mulf %373, %323 : vector<2x32xf32>
    %376 = arith.mulf %372, %371 : vector<2x32xf32>
    %377 = arith.addf %375, %376 : vector<2x32xf32>
    %378 = math.tanh %377 : vector<2x32xf32>
    %379 = arith.mulf %374, %378 : vector<2x32xf32>
    %380 = vector.extract_strided_slice %363 {offsets = [0, 0], sizes = [2, 96], strides = [1, 1]} : vector<2x128xf32> to vector<2x96xf32>
    %381 = arith.negf %380 : vector<2x96xf32>
    %382 = math.exp %381 : vector<2x96xf32>
    %cst_115 = arith.constant 1.000000e+00 : f32
    %383 = vector.broadcast %cst_115 : f32 to vector<2x96xf32>
    %384 = arith.addf %383, %382 : vector<2x96xf32>
    %385 = arith.divf %383, %384 : vector<2x96xf32>
    %386 = vector.extract_strided_slice %363 {offsets = [0, 96], sizes = [2, 32], strides = [1, 1]} : vector<2x128xf32> to vector<2x32xf32>
    %387 = math.tanh %386 : vector<2x32xf32>
    %388 = vector.extract_strided_slice %385 {offsets = [0, 0], sizes = [2, 32], strides = [1, 1]} : vector<2x96xf32> to vector<2x32xf32>
    %389 = vector.extract_strided_slice %385 {offsets = [0, 32], sizes = [2, 32], strides = [1, 1]} : vector<2x96xf32> to vector<2x32xf32>
    %390 = vector.extract_strided_slice %385 {offsets = [0, 64], sizes = [2, 32], strides = [1, 1]} : vector<2x96xf32> to vector<2x32xf32>
    %391 = arith.mulf %389, %339 : vector<2x32xf32>
    %392 = arith.mulf %388, %387 : vector<2x32xf32>
    %393 = arith.addf %391, %392 : vector<2x32xf32>
    %394 = math.tanh %393 : vector<2x32xf32>
    %395 = arith.mulf %390, %394 : vector<2x32xf32>
    %396 = arith.index_cast %c5_i32 : i32 to index
    %c0_116 = arith.constant 0 : index
    %c0_117 = arith.constant 0 : index
    %397 = vector.load %arg12[%396, %c0_116, %c0_117] : memref<8x2x32xf32, #tpu.memory_space<vmem>>, vector<1x2x32xf32>
    %398 = vector.shape_cast %397 : vector<1x2x32xf32> to vector<2x32xf32>
    %399 = vector.shape_cast %379 : vector<2x32xf32> to vector<1x2x32xf32>
    tpu.vector_store %arg12[%396, %c0_116, %c0_117], %399 {strides = array<i32>} : memref<8x2x32xf32, #tpu.memory_space<vmem>>, vector<1x2x32xf32>,
    %400 = arith.index_cast %350 : i32 to index
    %c0_118 = arith.constant 0 : index
    %c0_119 = arith.constant 0 : index
    %401 = vector.load %arg13[%400, %c0_118, %c0_119] : memref<8x2x32xf32, #tpu.memory_space<vmem>>, vector<1x2x32xf32>
    %402 = vector.shape_cast %401 : vector<1x2x32xf32> to vector<2x32xf32>
    %403 = vector.shape_cast %395 : vector<2x32xf32> to vector<1x2x32xf32>
    tpu.vector_store %arg13[%400, %c0_118, %c0_119], %403 {strides = array<i32>} : memref<8x2x32xf32, #tpu.memory_space<vmem>>, vector<1x2x32xf32>,
    %c6_i32 = arith.constant 6 : i32
    %c7_i32_120 = arith.constant 7 : i32
    %404 = arith.subi %c7_i32_120, %c6_i32 : i32
    %405 = tpu.concatenate %379, %395 in 0 : vector<2x32xf32>, vector<2x32xf32> -> vector<4x32xf32>
    %406 = arith.truncf %405 : vector<4x32xf32> to vector<4x32xbf16>
    %cst_121 = arith.constant dense<0.000000e+00> : vector<4x256xf32>
    %407 = tpu.matmul %406, %1, %cst_121 {dimension_numbers = #tpu.dot_dimension_numbers<[1], [0], [0], [1], [0, 0, 1, 1], [], []>} : vector<4x32xbf16>, vector<32x256xbf16>, vector<4x256xf32> -> vector<4x256xf32>
    %408 = arith.index_cast %c6_i32 : i32 to index
    %c0_122 = arith.constant 0 : index
    %c0_123 = arith.constant 0 : index
    %409 = vector.load %arg10[%408, %c0_122, %c0_123] : memref<8x2x128xf32, #tpu.memory_space<vmem>>, vector<1x2x128xf32>
    %410 = vector.shape_cast %409 : vector<1x2x128xf32> to vector<2x128xf32>
    %411 = vector.extract_strided_slice %407 {offsets = [0, 0], sizes = [2, 128], strides = [1, 1]} : vector<4x256xf32> to vector<2x128xf32>
    %412 = arith.addf %410, %411 : vector<2x128xf32>
    %413 = arith.index_cast %404 : i32 to index
    %c0_124 = arith.constant 0 : index
    %c0_125 = arith.constant 0 : index
    %414 = vector.load %arg11[%413, %c0_124, %c0_125] : memref<8x2x128xf32, #tpu.memory_space<vmem>>, vector<1x2x128xf32>
    %415 = vector.shape_cast %414 : vector<1x2x128xf32> to vector<2x128xf32>
    %416 = vector.extract_strided_slice %407 {offsets = [2, 128], sizes = [2, 128], strides = [1, 1]} : vector<4x256xf32> to vector<2x128xf32>
    %417 = arith.addf %415, %416 : vector<2x128xf32>
    %418 = vector.extract_strided_slice %412 {offsets = [0, 0], sizes = [2, 96], strides = [1, 1]} : vector<2x128xf32> to vector<2x96xf32>
    %419 = arith.negf %418 : vector<2x96xf32>
    %420 = math.exp %419 : vector<2x96xf32>
    %cst_126 = arith.constant 1.000000e+00 : f32
    %421 = vector.broadcast %cst_126 : f32 to vector<2x96xf32>
    %422 = arith.addf %421, %420 : vector<2x96xf32>
    %423 = arith.divf %421, %422 : vector<2x96xf32>
    %424 = vector.extract_strided_slice %412 {offsets = [0, 96], sizes = [2, 32], strides = [1, 1]} : vector<2x128xf32> to vector<2x32xf32>
    %425 = math.tanh %424 : vector<2x32xf32>
    %426 = vector.extract_strided_slice %423 {offsets = [0, 0], sizes = [2, 32], strides = [1, 1]} : vector<2x96xf32> to vector<2x32xf32>
    %427 = vector.extract_strided_slice %423 {offsets = [0, 32], sizes = [2, 32], strides = [1, 1]} : vector<2x96xf32> to vector<2x32xf32>
    %428 = vector.extract_strided_slice %423 {offsets = [0, 64], sizes = [2, 32], strides = [1, 1]} : vector<2x96xf32> to vector<2x32xf32>
    %429 = arith.mulf %427, %377 : vector<2x32xf32>
    %430 = arith.mulf %426, %425 : vector<2x32xf32>
    %431 = arith.addf %429, %430 : vector<2x32xf32>
    %432 = math.tanh %431 : vector<2x32xf32>
    %433 = arith.mulf %428, %432 : vector<2x32xf32>
    %434 = vector.extract_strided_slice %417 {offsets = [0, 0], sizes = [2, 96], strides = [1, 1]} : vector<2x128xf32> to vector<2x96xf32>
    %435 = arith.negf %434 : vector<2x96xf32>
    %436 = math.exp %435 : vector<2x96xf32>
    %cst_127 = arith.constant 1.000000e+00 : f32
    %437 = vector.broadcast %cst_127 : f32 to vector<2x96xf32>
    %438 = arith.addf %437, %436 : vector<2x96xf32>
    %439 = arith.divf %437, %438 : vector<2x96xf32>
    %440 = vector.extract_strided_slice %417 {offsets = [0, 96], sizes = [2, 32], strides = [1, 1]} : vector<2x128xf32> to vector<2x32xf32>
    %441 = math.tanh %440 : vector<2x32xf32>
    %442 = vector.extract_strided_slice %439 {offsets = [0, 0], sizes = [2, 32], strides = [1, 1]} : vector<2x96xf32> to vector<2x32xf32>
    %443 = vector.extract_strided_slice %439 {offsets = [0, 32], sizes = [2, 32], strides = [1, 1]} : vector<2x96xf32> to vector<2x32xf32>
    %444 = vector.extract_strided_slice %439 {offsets = [0, 64], sizes = [2, 32], strides = [1, 1]} : vector<2x96xf32> to vector<2x32xf32>
    %445 = arith.mulf %443, %393 : vector<2x32xf32>
    %446 = arith.mulf %442, %441 : vector<2x32xf32>
    %447 = arith.addf %445, %446 : vector<2x32xf32>
    %448 = math.tanh %447 : vector<2x32xf32>
    %449 = arith.mulf %444, %448 : vector<2x32xf32>
    %450 = arith.index_cast %c6_i32 : i32 to index
    %c0_128 = arith.constant 0 : index
    %c0_129 = arith.constant 0 : index
    %451 = vector.load %arg12[%450, %c0_128, %c0_129] : memref<8x2x32xf32, #tpu.memory_space<vmem>>, vector<1x2x32xf32>
    %452 = vector.shape_cast %451 : vector<1x2x32xf32> to vector<2x32xf32>
    %453 = vector.shape_cast %433 : vector<2x32xf32> to vector<1x2x32xf32>
    tpu.vector_store %arg12[%450, %c0_128, %c0_129], %453 {strides = array<i32>} : memref<8x2x32xf32, #tpu.memory_space<vmem>>, vector<1x2x32xf32>,
    %454 = arith.index_cast %404 : i32 to index
    %c0_130 = arith.constant 0 : index
    %c0_131 = arith.constant 0 : index
    %455 = vector.load %arg13[%454, %c0_130, %c0_131] : memref<8x2x32xf32, #tpu.memory_space<vmem>>, vector<1x2x32xf32>
    %456 = vector.shape_cast %455 : vector<1x2x32xf32> to vector<2x32xf32>
    %457 = vector.shape_cast %449 : vector<2x32xf32> to vector<1x2x32xf32>
    tpu.vector_store %arg13[%454, %c0_130, %c0_131], %457 {strides = array<i32>} : memref<8x2x32xf32, #tpu.memory_space<vmem>>, vector<1x2x32xf32>,
    %c7_i32_132 = arith.constant 7 : i32
    %c7_i32_133 = arith.constant 7 : i32
    %458 = arith.subi %c7_i32_133, %c7_i32_132 : i32
    %459 = tpu.concatenate %433, %449 in 0 : vector<2x32xf32>, vector<2x32xf32> -> vector<4x32xf32>
    %460 = arith.truncf %459 : vector<4x32xf32> to vector<4x32xbf16>
    %cst_134 = arith.constant dense<0.000000e+00> : vector<4x256xf32>
    %461 = tpu.matmul %460, %1, %cst_134 {dimension_numbers = #tpu.dot_dimension_numbers<[1], [0], [0], [1], [0, 0, 1, 1], [], []>} : vector<4x32xbf16>, vector<32x256xbf16>, vector<4x256xf32> -> vector<4x256xf32>
    %462 = arith.index_cast %c7_i32_132 : i32 to index
    %c0_135 = arith.constant 0 : index
    %c0_136 = arith.constant 0 : index
    %463 = vector.load %arg10[%462, %c0_135, %c0_136] : memref<8x2x128xf32, #tpu.memory_space<vmem>>, vector<1x2x128xf32>
    %464 = vector.shape_cast %463 : vector<1x2x128xf32> to vector<2x128xf32>
    %465 = vector.extract_strided_slice %461 {offsets = [0, 0], sizes = [2, 128], strides = [1, 1]} : vector<4x256xf32> to vector<2x128xf32>
    %466 = arith.addf %464, %465 : vector<2x128xf32>
    %467 = arith.index_cast %458 : i32 to index
    %c0_137 = arith.constant 0 : index
    %c0_138 = arith.constant 0 : index
    %468 = vector.load %arg11[%467, %c0_137, %c0_138] : memref<8x2x128xf32, #tpu.memory_space<vmem>>, vector<1x2x128xf32>
    %469 = vector.shape_cast %468 : vector<1x2x128xf32> to vector<2x128xf32>
    %470 = vector.extract_strided_slice %461 {offsets = [2, 128], sizes = [2, 128], strides = [1, 1]} : vector<4x256xf32> to vector<2x128xf32>
    %471 = arith.addf %469, %470 : vector<2x128xf32>
    %472 = vector.extract_strided_slice %466 {offsets = [0, 0], sizes = [2, 96], strides = [1, 1]} : vector<2x128xf32> to vector<2x96xf32>
    %473 = arith.negf %472 : vector<2x96xf32>
    %474 = math.exp %473 : vector<2x96xf32>
    %cst_139 = arith.constant 1.000000e+00 : f32
    %475 = vector.broadcast %cst_139 : f32 to vector<2x96xf32>
    %476 = arith.addf %475, %474 : vector<2x96xf32>
    %477 = arith.divf %475, %476 : vector<2x96xf32>
    %478 = vector.extract_strided_slice %466 {offsets = [0, 96], sizes = [2, 32], strides = [1, 1]} : vector<2x128xf32> to vector<2x32xf32>
    %479 = math.tanh %478 : vector<2x32xf32>
    %480 = vector.extract_strided_slice %477 {offsets = [0, 0], sizes = [2, 32], strides = [1, 1]} : vector<2x96xf32> to vector<2x32xf32>
    %481 = vector.extract_strided_slice %477 {offsets = [0, 32], sizes = [2, 32], strides = [1, 1]} : vector<2x96xf32> to vector<2x32xf32>
    %482 = vector.extract_strided_slice %477 {offsets = [0, 64], sizes = [2, 32], strides = [1, 1]} : vector<2x96xf32> to vector<2x32xf32>
    %483 = arith.mulf %481, %431 : vector<2x32xf32>
    %484 = arith.mulf %480, %479 : vector<2x32xf32>
    %485 = arith.addf %483, %484 : vector<2x32xf32>
    %486 = math.tanh %485 : vector<2x32xf32>
    %487 = arith.mulf %482, %486 : vector<2x32xf32>
    %488 = vector.extract_strided_slice %471 {offsets = [0, 0], sizes = [2, 96], strides = [1, 1]} : vector<2x128xf32> to vector<2x96xf32>
    %489 = arith.negf %488 : vector<2x96xf32>
    %490 = math.exp %489 : vector<2x96xf32>
    %cst_140 = arith.constant 1.000000e+00 : f32
    %491 = vector.broadcast %cst_140 : f32 to vector<2x96xf32>
    %492 = arith.addf %491, %490 : vector<2x96xf32>
    %493 = arith.divf %491, %492 : vector<2x96xf32>
    %494 = vector.extract_strided_slice %471 {offsets = [0, 96], sizes = [2, 32], strides = [1, 1]} : vector<2x128xf32> to vector<2x32xf32>
    %495 = math.tanh %494 : vector<2x32xf32>
    %496 = vector.extract_strided_slice %493 {offsets = [0, 0], sizes = [2, 32], strides = [1, 1]} : vector<2x96xf32> to vector<2x32xf32>
    %497 = vector.extract_strided_slice %493 {offsets = [0, 32], sizes = [2, 32], strides = [1, 1]} : vector<2x96xf32> to vector<2x32xf32>
    %498 = vector.extract_strided_slice %493 {offsets = [0, 64], sizes = [2, 32], strides = [1, 1]} : vector<2x96xf32> to vector<2x32xf32>
    %499 = arith.mulf %497, %447 : vector<2x32xf32>
    %500 = arith.mulf %496, %495 : vector<2x32xf32>
    %501 = arith.addf %499, %500 : vector<2x32xf32>
    %502 = math.tanh %501 : vector<2x32xf32>
    %503 = arith.mulf %498, %502 : vector<2x32xf32>
    %504 = arith.index_cast %c7_i32_132 : i32 to index
    %c0_141 = arith.constant 0 : index
    %c0_142 = arith.constant 0 : index
    %505 = vector.load %arg12[%504, %c0_141, %c0_142] : memref<8x2x32xf32, #tpu.memory_space<vmem>>, vector<1x2x32xf32>
    %506 = vector.shape_cast %505 : vector<1x2x32xf32> to vector<2x32xf32>
    %507 = vector.shape_cast %487 : vector<2x32xf32> to vector<1x2x32xf32>
    tpu.vector_store %arg12[%504, %c0_141, %c0_142], %507 {strides = array<i32>} : memref<8x2x32xf32, #tpu.memory_space<vmem>>, vector<1x2x32xf32>,
    %508 = arith.index_cast %458 : i32 to index
    %c0_143 = arith.constant 0 : index
    %c0_144 = arith.constant 0 : index
    %509 = vector.load %arg13[%508, %c0_143, %c0_144] : memref<8x2x32xf32, #tpu.memory_space<vmem>>, vector<1x2x32xf32>
    %510 = vector.shape_cast %509 : vector<1x2x32xf32> to vector<2x32xf32>
    %511 = vector.shape_cast %503 : vector<2x32xf32> to vector<1x2x32xf32>
    tpu.vector_store %arg13[%508, %c0_143, %c0_144], %511 {strides = array<i32>} : memref<8x2x32xf32, #tpu.memory_space<vmem>>, vector<1x2x32xf32>,
    %c8_i32 = arith.constant 8 : i32
    %c0_145 = arith.constant 0 : index
    %c0_146 = arith.constant 0 : index
    %512 = vector.load %arg4[%c0_145, %c0_146] : memref<64x256xbf16, #tpu.memory_space<vmem>>, vector<64x256xbf16>
    %c0_147 = arith.constant 0 : index
    %c0_148 = arith.constant 0 : index
    %513 = vector.load %arg5[%c0_147, %c0_148] : memref<32x256xbf16, #tpu.memory_space<vmem>>, vector<32x256xbf16>
    %c0_149 = arith.constant 0 : index
    %c0_150 = arith.constant 0 : index
    %514 = vector.load %arg6[%c0_149, %c0_150] : memref<1x256xf32, #tpu.memory_space<vmem>>, vector<1x256xf32>
    %c0_151 = arith.constant 0 : index
    %c0_152 = arith.constant 0 : index
    %c0_153 = arith.constant 0 : index
    %515 = vector.load %arg12[%c0_151, %c0_152, %c0_153] : memref<8x2x32xf32, #tpu.memory_space<vmem>>, vector<1x2x32xf32>
    %516 = vector.shape_cast %515 : vector<1x2x32xf32> to vector<2x32xf32>
    %517 = arith.truncf %516 : vector<2x32xf32> to vector<2x32xbf16>
    %c0_154 = arith.constant 0 : index
    %c0_155 = arith.constant 0 : index
    %c0_156 = arith.constant 0 : index
    %518 = vector.load %arg13[%c0_154, %c0_155, %c0_156] : memref<8x2x32xf32, #tpu.memory_space<vmem>>, vector<1x2x32xf32>
    %519 = vector.shape_cast %518 : vector<1x2x32xf32> to vector<2x32xf32>
    %520 = arith.truncf %519 : vector<2x32xf32> to vector<2x32xbf16>
    %521 = vector.extract_strided_slice %512 {offsets = [0, 0], sizes = [32, 256], strides = [1, 1]} : vector<64x256xbf16> to vector<32x256xbf16>
    %cst_157 = arith.constant dense<0.000000e+00> : vector<2x256xf32>
    %522 = tpu.matmul %517, %521, %cst_157 {dimension_numbers = #tpu.dot_dimension_numbers<[1], [0], [0], [1], [0, 0, 1, 1], [], []>} : vector<2x32xbf16>, vector<32x256xbf16>, vector<2x256xf32> -> vector<2x256xf32>
    %523 = vector.extract_strided_slice %512 {offsets = [32, 0], sizes = [32, 256], strides = [1, 1]} : vector<64x256xbf16> to vector<32x256xbf16>
    %cst_158 = arith.constant dense<0.000000e+00> : vector<2x256xf32>
    %524 = tpu.matmul %520, %523, %cst_158 {dimension_numbers = #tpu.dot_dimension_numbers<[1], [0], [0], [1], [0, 0, 1, 1], [], []>} : vector<2x32xbf16>, vector<32x256xbf16>, vector<2x256xf32> -> vector<2x256xf32>
    %525 = arith.addf %522, %524 : vector<2x256xf32>
    %526 = vector.broadcast %514 : vector<1x256xf32> to vector<2x256xf32>
    %527 = arith.addf %525, %526 : vector<2x256xf32>
    %528 = vector.extract_strided_slice %527 {offsets = [0, 0], sizes = [2, 128], strides = [1, 1]} : vector<2x256xf32> to vector<2x128xf32>
    %c0_159 = arith.constant 0 : index
    %c0_160 = arith.constant 0 : index
    %c0_161 = arith.constant 0 : index
    %529 = vector.load %arg10[%c0_159, %c0_160, %c0_161] : memref<8x2x128xf32, #tpu.memory_space<vmem>>, vector<1x2x128xf32>
    %530 = vector.shape_cast %529 : vector<1x2x128xf32> to vector<2x128xf32>
    %531 = vector.shape_cast %528 : vector<2x128xf32> to vector<1x2x128xf32>
    tpu.vector_store %arg10[%c0_159, %c0_160, %c0_161], %531 {strides = array<i32>} : memref<8x2x128xf32, #tpu.memory_space<vmem>>, vector<1x2x128xf32>,
    %532 = vector.extract_strided_slice %527 {offsets = [0, 128], sizes = [2, 128], strides = [1, 1]} : vector<2x256xf32> to vector<2x128xf32>
    %c0_162 = arith.constant 0 : index
    %c0_163 = arith.constant 0 : index
    %c0_164 = arith.constant 0 : index
    %533 = vector.load %arg11[%c0_162, %c0_163, %c0_164] : memref<8x2x128xf32, #tpu.memory_space<vmem>>, vector<1x2x128xf32>
    %534 = vector.shape_cast %533 : vector<1x2x128xf32> to vector<2x128xf32>
    %535 = vector.shape_cast %532 : vector<2x128xf32> to vector<1x2x128xf32>
    tpu.vector_store %arg11[%c0_162, %c0_163, %c0_164], %535 {strides = array<i32>} : memref<8x2x128xf32, #tpu.memory_space<vmem>>, vector<1x2x128xf32>,
    %c1_165 = arith.constant 1 : index
    %c0_166 = arith.constant 0 : index
    %c0_167 = arith.constant 0 : index
    %536 = vector.load %arg12[%c1_165, %c0_166, %c0_167] : memref<8x2x32xf32, #tpu.memory_space<vmem>>, vector<1x2x32xf32>
    %537 = vector.shape_cast %536 : vector<1x2x32xf32> to vector<2x32xf32>
    %538 = arith.truncf %537 : vector<2x32xf32> to vector<2x32xbf16>
    %c1_168 = arith.constant 1 : index
    %c0_169 = arith.constant 0 : index
    %c0_170 = arith.constant 0 : index
    %539 = vector.load %arg13[%c1_168, %c0_169, %c0_170] : memref<8x2x32xf32, #tpu.memory_space<vmem>>, vector<1x2x32xf32>
    %540 = vector.shape_cast %539 : vector<1x2x32xf32> to vector<2x32xf32>
    %541 = arith.truncf %540 : vector<2x32xf32> to vector<2x32xbf16>
    %542 = vector.extract_strided_slice %512 {offsets = [0, 0], sizes = [32, 256], strides = [1, 1]} : vector<64x256xbf16> to vector<32x256xbf16>
    %cst_171 = arith.constant dense<0.000000e+00> : vector<2x256xf32>
    %543 = tpu.matmul %538, %542, %cst_171 {dimension_numbers = #tpu.dot_dimension_numbers<[1], [0], [0], [1], [0, 0, 1, 1], [], []>} : vector<2x32xbf16>, vector<32x256xbf16>, vector<2x256xf32> -> vector<2x256xf32>
    %544 = vector.extract_strided_slice %512 {offsets = [32, 0], sizes = [32, 256], strides = [1, 1]} : vector<64x256xbf16> to vector<32x256xbf16>
    %cst_172 = arith.constant dense<0.000000e+00> : vector<2x256xf32>
    %545 = tpu.matmul %541, %544, %cst_172 {dimension_numbers = #tpu.dot_dimension_numbers<[1], [0], [0], [1], [0, 0, 1, 1], [], []>} : vector<2x32xbf16>, vector<32x256xbf16>, vector<2x256xf32> -> vector<2x256xf32>
    %546 = arith.addf %543, %545 : vector<2x256xf32>
    %547 = vector.broadcast %514 : vector<1x256xf32> to vector<2x256xf32>
    %548 = arith.addf %546, %547 : vector<2x256xf32>
    %549 = vector.extract_strided_slice %548 {offsets = [0, 0], sizes = [2, 128], strides = [1, 1]} : vector<2x256xf32> to vector<2x128xf32>
    %c1_173 = arith.constant 1 : index
    %c0_174 = arith.constant 0 : index
    %c0_175 = arith.constant 0 : index
    %550 = vector.load %arg10[%c1_173, %c0_174, %c0_175] : memref<8x2x128xf32, #tpu.memory_space<vmem>>, vector<1x2x128xf32>
    %551 = vector.shape_cast %550 : vector<1x2x128xf32> to vector<2x128xf32>
    %552 = vector.shape_cast %549 : vector<2x128xf32> to vector<1x2x128xf32>
    tpu.vector_store %arg10[%c1_173, %c0_174, %c0_175], %552 {strides = array<i32>} : memref<8x2x128xf32, #tpu.memory_space<vmem>>, vector<1x2x128xf32>,
    %553 = vector.extract_strided_slice %548 {offsets = [0, 128], sizes = [2, 128], strides = [1, 1]} : vector<2x256xf32> to vector<2x128xf32>
    %c1_176 = arith.constant 1 : index
    %c0_177 = arith.constant 0 : index
    %c0_178 = arith.constant 0 : index
    %554 = vector.load %arg11[%c1_176, %c0_177, %c0_178] : memref<8x2x128xf32, #tpu.memory_space<vmem>>, vector<1x2x128xf32>
    %555 = vector.shape_cast %554 : vector<1x2x128xf32> to vector<2x128xf32>
    %556 = vector.shape_cast %553 : vector<2x128xf32> to vector<1x2x128xf32>
    tpu.vector_store %arg11[%c1_176, %c0_177, %c0_178], %556 {strides = array<i32>} : memref<8x2x128xf32, #tpu.memory_space<vmem>>, vector<1x2x128xf32>,
    %c2_179 = arith.constant 2 : index
    %c0_180 = arith.constant 0 : index
    %c0_181 = arith.constant 0 : index
    %557 = vector.load %arg12[%c2_179, %c0_180, %c0_181] : memref<8x2x32xf32, #tpu.memory_space<vmem>>, vector<1x2x32xf32>
    %558 = vector.shape_cast %557 : vector<1x2x32xf32> to vector<2x32xf32>
    %559 = arith.truncf %558 : vector<2x32xf32> to vector<2x32xbf16>
    %c2_182 = arith.constant 2 : index
    %c0_183 = arith.constant 0 : index
    %c0_184 = arith.constant 0 : index
    %560 = vector.load %arg13[%c2_182, %c0_183, %c0_184] : memref<8x2x32xf32, #tpu.memory_space<vmem>>, vector<1x2x32xf32>
    %561 = vector.shape_cast %560 : vector<1x2x32xf32> to vector<2x32xf32>
    %562 = arith.truncf %561 : vector<2x32xf32> to vector<2x32xbf16>
    %563 = vector.extract_strided_slice %512 {offsets = [0, 0], sizes = [32, 256], strides = [1, 1]} : vector<64x256xbf16> to vector<32x256xbf16>
    %cst_185 = arith.constant dense<0.000000e+00> : vector<2x256xf32>
    %564 = tpu.matmul %559, %563, %cst_185 {dimension_numbers = #tpu.dot_dimension_numbers<[1], [0], [0], [1], [0, 0, 1, 1], [], []>} : vector<2x32xbf16>, vector<32x256xbf16>, vector<2x256xf32> -> vector<2x256xf32>
    %565 = vector.extract_strided_slice %512 {offsets = [32, 0], sizes = [32, 256], strides = [1, 1]} : vector<64x256xbf16> to vector<32x256xbf16>
    %cst_186 = arith.constant dense<0.000000e+00> : vector<2x256xf32>
    %566 = tpu.matmul %562, %565, %cst_186 {dimension_numbers = #tpu.dot_dimension_numbers<[1], [0], [0], [1], [0, 0, 1, 1], [], []>} : vector<2x32xbf16>, vector<32x256xbf16>, vector<2x256xf32> -> vector<2x256xf32>
    %567 = arith.addf %564, %566 : vector<2x256xf32>
    %568 = vector.broadcast %514 : vector<1x256xf32> to vector<2x256xf32>
    %569 = arith.addf %567, %568 : vector<2x256xf32>
    %570 = vector.extract_strided_slice %569 {offsets = [0, 0], sizes = [2, 128], strides = [1, 1]} : vector<2x256xf32> to vector<2x128xf32>
    %c2_187 = arith.constant 2 : index
    %c0_188 = arith.constant 0 : index
    %c0_189 = arith.constant 0 : index
    %571 = vector.load %arg10[%c2_187, %c0_188, %c0_189] : memref<8x2x128xf32, #tpu.memory_space<vmem>>, vector<1x2x128xf32>
    %572 = vector.shape_cast %571 : vector<1x2x128xf32> to vector<2x128xf32>
    %573 = vector.shape_cast %570 : vector<2x128xf32> to vector<1x2x128xf32>
    tpu.vector_store %arg10[%c2_187, %c0_188, %c0_189], %573 {strides = array<i32>} : memref<8x2x128xf32, #tpu.memory_space<vmem>>, vector<1x2x128xf32>,
    %574 = vector.extract_strided_slice %569 {offsets = [0, 128], sizes = [2, 128], strides = [1, 1]} : vector<2x256xf32> to vector<2x128xf32>
    %c2_190 = arith.constant 2 : index
    %c0_191 = arith.constant 0 : index
    %c0_192 = arith.constant 0 : index
    %575 = vector.load %arg11[%c2_190, %c0_191, %c0_192] : memref<8x2x128xf32, #tpu.memory_space<vmem>>, vector<1x2x128xf32>
    %576 = vector.shape_cast %575 : vector<1x2x128xf32> to vector<2x128xf32>
    %577 = vector.shape_cast %574 : vector<2x128xf32> to vector<1x2x128xf32>
    tpu.vector_store %arg11[%c2_190, %c0_191, %c0_192], %577 {strides = array<i32>} : memref<8x2x128xf32, #tpu.memory_space<vmem>>, vector<1x2x128xf32>,
    %c3_193 = arith.constant 3 : index
    %c0_194 = arith.constant 0 : index
    %c0_195 = arith.constant 0 : index
    %578 = vector.load %arg12[%c3_193, %c0_194, %c0_195] : memref<8x2x32xf32, #tpu.memory_space<vmem>>, vector<1x2x32xf32>
    %579 = vector.shape_cast %578 : vector<1x2x32xf32> to vector<2x32xf32>
    %580 = arith.truncf %579 : vector<2x32xf32> to vector<2x32xbf16>
    %c3_196 = arith.constant 3 : index
    %c0_197 = arith.constant 0 : index
    %c0_198 = arith.constant 0 : index
    %581 = vector.load %arg13[%c3_196, %c0_197, %c0_198] : memref<8x2x32xf32, #tpu.memory_space<vmem>>, vector<1x2x32xf32>
    %582 = vector.shape_cast %581 : vector<1x2x32xf32> to vector<2x32xf32>
    %583 = arith.truncf %582 : vector<2x32xf32> to vector<2x32xbf16>
    %584 = vector.extract_strided_slice %512 {offsets = [0, 0], sizes = [32, 256], strides = [1, 1]} : vector<64x256xbf16> to vector<32x256xbf16>
    %cst_199 = arith.constant dense<0.000000e+00> : vector<2x256xf32>
    %585 = tpu.matmul %580, %584, %cst_199 {dimension_numbers = #tpu.dot_dimension_numbers<[1], [0], [0], [1], [0, 0, 1, 1], [], []>} : vector<2x32xbf16>, vector<32x256xbf16>, vector<2x256xf32> -> vector<2x256xf32>
    %586 = vector.extract_strided_slice %512 {offsets = [32, 0], sizes = [32, 256], strides = [1, 1]} : vector<64x256xbf16> to vector<32x256xbf16>
    %cst_200 = arith.constant dense<0.000000e+00> : vector<2x256xf32>
    %587 = tpu.matmul %583, %586, %cst_200 {dimension_numbers = #tpu.dot_dimension_numbers<[1], [0], [0], [1], [0, 0, 1, 1], [], []>} : vector<2x32xbf16>, vector<32x256xbf16>, vector<2x256xf32> -> vector<2x256xf32>
    %588 = arith.addf %585, %587 : vector<2x256xf32>
    %589 = vector.broadcast %514 : vector<1x256xf32> to vector<2x256xf32>
    %590 = arith.addf %588, %589 : vector<2x256xf32>
    %591 = vector.extract_strided_slice %590 {offsets = [0, 0], sizes = [2, 128], strides = [1, 1]} : vector<2x256xf32> to vector<2x128xf32>
    %c3_201 = arith.constant 3 : index
    %c0_202 = arith.constant 0 : index
    %c0_203 = arith.constant 0 : index
    %592 = vector.load %arg10[%c3_201, %c0_202, %c0_203] : memref<8x2x128xf32, #tpu.memory_space<vmem>>, vector<1x2x128xf32>
    %593 = vector.shape_cast %592 : vector<1x2x128xf32> to vector<2x128xf32>
    %594 = vector.shape_cast %591 : vector<2x128xf32> to vector<1x2x128xf32>
    tpu.vector_store %arg10[%c3_201, %c0_202, %c0_203], %594 {strides = array<i32>} : memref<8x2x128xf32, #tpu.memory_space<vmem>>, vector<1x2x128xf32>,
    %595 = vector.extract_strided_slice %590 {offsets = [0, 128], sizes = [2, 128], strides = [1, 1]} : vector<2x256xf32> to vector<2x128xf32>
    %c3_204 = arith.constant 3 : index
    %c0_205 = arith.constant 0 : index
    %c0_206 = arith.constant 0 : index
    %596 = vector.load %arg11[%c3_204, %c0_205, %c0_206] : memref<8x2x128xf32, #tpu.memory_space<vmem>>, vector<1x2x128xf32>
    %597 = vector.shape_cast %596 : vector<1x2x128xf32> to vector<2x128xf32>
    %598 = vector.shape_cast %595 : vector<2x128xf32> to vector<1x2x128xf32>
    tpu.vector_store %arg11[%c3_204, %c0_205, %c0_206], %598 {strides = array<i32>} : memref<8x2x128xf32, #tpu.memory_space<vmem>>, vector<1x2x128xf32>,
    %c4_207 = arith.constant 4 : index
    %c0_208 = arith.constant 0 : index
    %c0_209 = arith.constant 0 : index
    %599 = vector.load %arg12[%c4_207, %c0_208, %c0_209] : memref<8x2x32xf32, #tpu.memory_space<vmem>>, vector<1x2x32xf32>
    %600 = vector.shape_cast %599 : vector<1x2x32xf32> to vector<2x32xf32>
    %601 = arith.truncf %600 : vector<2x32xf32> to vector<2x32xbf16>
    %c4_210 = arith.constant 4 : index
    %c0_211 = arith.constant 0 : index
    %c0_212 = arith.constant 0 : index
    %602 = vector.load %arg13[%c4_210, %c0_211, %c0_212] : memref<8x2x32xf32, #tpu.memory_space<vmem>>, vector<1x2x32xf32>
    %603 = vector.shape_cast %602 : vector<1x2x32xf32> to vector<2x32xf32>
    %604 = arith.truncf %603 : vector<2x32xf32> to vector<2x32xbf16>
    %605 = vector.extract_strided_slice %512 {offsets = [0, 0], sizes = [32, 256], strides = [1, 1]} : vector<64x256xbf16> to vector<32x256xbf16>
    %cst_213 = arith.constant dense<0.000000e+00> : vector<2x256xf32>
    %606 = tpu.matmul %601, %605, %cst_213 {dimension_numbers = #tpu.dot_dimension_numbers<[1], [0], [0], [1], [0, 0, 1, 1], [], []>} : vector<2x32xbf16>, vector<32x256xbf16>, vector<2x256xf32> -> vector<2x256xf32>
    %607 = vector.extract_strided_slice %512 {offsets = [32, 0], sizes = [32, 256], strides = [1, 1]} : vector<64x256xbf16> to vector<32x256xbf16>
    %cst_214 = arith.constant dense<0.000000e+00> : vector<2x256xf32>
    %608 = tpu.matmul %604, %607, %cst_214 {dimension_numbers = #tpu.dot_dimension_numbers<[1], [0], [0], [1], [0, 0, 1, 1], [], []>} : vector<2x32xbf16>, vector<32x256xbf16>, vector<2x256xf32> -> vector<2x256xf32>
    %609 = arith.addf %606, %608 : vector<2x256xf32>
    %610 = vector.broadcast %514 : vector<1x256xf32> to vector<2x256xf32>
    %611 = arith.addf %609, %610 : vector<2x256xf32>
    %612 = vector.extract_strided_slice %611 {offsets = [0, 0], sizes = [2, 128], strides = [1, 1]} : vector<2x256xf32> to vector<2x128xf32>
    %c4_215 = arith.constant 4 : index
    %c0_216 = arith.constant 0 : index
    %c0_217 = arith.constant 0 : index
    %613 = vector.load %arg10[%c4_215, %c0_216, %c0_217] : memref<8x2x128xf32, #tpu.memory_space<vmem>>, vector<1x2x128xf32>
    %614 = vector.shape_cast %613 : vector<1x2x128xf32> to vector<2x128xf32>
    %615 = vector.shape_cast %612 : vector<2x128xf32> to vector<1x2x128xf32>
    tpu.vector_store %arg10[%c4_215, %c0_216, %c0_217], %615 {strides = array<i32>} : memref<8x2x128xf32, #tpu.memory_space<vmem>>, vector<1x2x128xf32>,
    %616 = vector.extract_strided_slice %611 {offsets = [0, 128], sizes = [2, 128], strides = [1, 1]} : vector<2x256xf32> to vector<2x128xf32>
    %c4_218 = arith.constant 4 : index
    %c0_219 = arith.constant 0 : index
    %c0_220 = arith.constant 0 : index
    %617 = vector.load %arg11[%c4_218, %c0_219, %c0_220] : memref<8x2x128xf32, #tpu.memory_space<vmem>>, vector<1x2x128xf32>
    %618 = vector.shape_cast %617 : vector<1x2x128xf32> to vector<2x128xf32>
    %619 = vector.shape_cast %616 : vector<2x128xf32> to vector<1x2x128xf32>
    tpu.vector_store %arg11[%c4_218, %c0_219, %c0_220], %619 {strides = array<i32>} : memref<8x2x128xf32, #tpu.memory_space<vmem>>, vector<1x2x128xf32>,
    %c5_221 = arith.constant 5 : index
    %c0_222 = arith.constant 0 : index
    %c0_223 = arith.constant 0 : index
    %620 = vector.load %arg12[%c5_221, %c0_222, %c0_223] : memref<8x2x32xf32, #tpu.memory_space<vmem>>, vector<1x2x32xf32>
    %621 = vector.shape_cast %620 : vector<1x2x32xf32> to vector<2x32xf32>
    %622 = arith.truncf %621 : vector<2x32xf32> to vector<2x32xbf16>
    %c5_224 = arith.constant 5 : index
    %c0_225 = arith.constant 0 : index
    %c0_226 = arith.constant 0 : index
    %623 = vector.load %arg13[%c5_224, %c0_225, %c0_226] : memref<8x2x32xf32, #tpu.memory_space<vmem>>, vector<1x2x32xf32>
    %624 = vector.shape_cast %623 : vector<1x2x32xf32> to vector<2x32xf32>
    %625 = arith.truncf %624 : vector<2x32xf32> to vector<2x32xbf16>
    %626 = vector.extract_strided_slice %512 {offsets = [0, 0], sizes = [32, 256], strides = [1, 1]} : vector<64x256xbf16> to vector<32x256xbf16>
    %cst_227 = arith.constant dense<0.000000e+00> : vector<2x256xf32>
    %627 = tpu.matmul %622, %626, %cst_227 {dimension_numbers = #tpu.dot_dimension_numbers<[1], [0], [0], [1], [0, 0, 1, 1], [], []>} : vector<2x32xbf16>, vector<32x256xbf16>, vector<2x256xf32> -> vector<2x256xf32>
    %628 = vector.extract_strided_slice %512 {offsets = [32, 0], sizes = [32, 256], strides = [1, 1]} : vector<64x256xbf16> to vector<32x256xbf16>
    %cst_228 = arith.constant dense<0.000000e+00> : vector<2x256xf32>
    %629 = tpu.matmul %625, %628, %cst_228 {dimension_numbers = #tpu.dot_dimension_numbers<[1], [0], [0], [1], [0, 0, 1, 1], [], []>} : vector<2x32xbf16>, vector<32x256xbf16>, vector<2x256xf32> -> vector<2x256xf32>
    %630 = arith.addf %627, %629 : vector<2x256xf32>
    %631 = vector.broadcast %514 : vector<1x256xf32> to vector<2x256xf32>
    %632 = arith.addf %630, %631 : vector<2x256xf32>
    %633 = vector.extract_strided_slice %632 {offsets = [0, 0], sizes = [2, 128], strides = [1, 1]} : vector<2x256xf32> to vector<2x128xf32>
    %c5_229 = arith.constant 5 : index
    %c0_230 = arith.constant 0 : index
    %c0_231 = arith.constant 0 : index
    %634 = vector.load %arg10[%c5_229, %c0_230, %c0_231] : memref<8x2x128xf32, #tpu.memory_space<vmem>>, vector<1x2x128xf32>
    %635 = vector.shape_cast %634 : vector<1x2x128xf32> to vector<2x128xf32>
    %636 = vector.shape_cast %633 : vector<2x128xf32> to vector<1x2x128xf32>
    tpu.vector_store %arg10[%c5_229, %c0_230, %c0_231], %636 {strides = array<i32>} : memref<8x2x128xf32, #tpu.memory_space<vmem>>, vector<1x2x128xf32>,
    %637 = vector.extract_strided_slice %632 {offsets = [0, 128], sizes = [2, 128], strides = [1, 1]} : vector<2x256xf32> to vector<2x128xf32>
    %c5_232 = arith.constant 5 : index
    %c0_233 = arith.constant 0 : index
    %c0_234 = arith.constant 0 : index
    %638 = vector.load %arg11[%c5_232, %c0_233, %c0_234] : memref<8x2x128xf32, #tpu.memory_space<vmem>>, vector<1x2x128xf32>
    %639 = vector.shape_cast %638 : vector<1x2x128xf32> to vector<2x128xf32>
    %640 = vector.shape_cast %637 : vector<2x128xf32> to vector<1x2x128xf32>
    tpu.vector_store %arg11[%c5_232, %c0_233, %c0_234], %640 {strides = array<i32>} : memref<8x2x128xf32, #tpu.memory_space<vmem>>, vector<1x2x128xf32>,
    %c6_235 = arith.constant 6 : index
    %c0_236 = arith.constant 0 : index
    %c0_237 = arith.constant 0 : index
    %641 = vector.load %arg12[%c6_235, %c0_236, %c0_237] : memref<8x2x32xf32, #tpu.memory_space<vmem>>, vector<1x2x32xf32>
    %642 = vector.shape_cast %641 : vector<1x2x32xf32> to vector<2x32xf32>
    %643 = arith.truncf %642 : vector<2x32xf32> to vector<2x32xbf16>
    %c6_238 = arith.constant 6 : index
    %c0_239 = arith.constant 0 : index
    %c0_240 = arith.constant 0 : index
    %644 = vector.load %arg13[%c6_238, %c0_239, %c0_240] : memref<8x2x32xf32, #tpu.memory_space<vmem>>, vector<1x2x32xf32>
    %645 = vector.shape_cast %644 : vector<1x2x32xf32> to vector<2x32xf32>
    %646 = arith.truncf %645 : vector<2x32xf32> to vector<2x32xbf16>
    %647 = vector.extract_strided_slice %512 {offsets = [0, 0], sizes = [32, 256], strides = [1, 1]} : vector<64x256xbf16> to vector<32x256xbf16>
    %cst_241 = arith.constant dense<0.000000e+00> : vector<2x256xf32>
    %648 = tpu.matmul %643, %647, %cst_241 {dimension_numbers = #tpu.dot_dimension_numbers<[1], [0], [0], [1], [0, 0, 1, 1], [], []>} : vector<2x32xbf16>, vector<32x256xbf16>, vector<2x256xf32> -> vector<2x256xf32>
    %649 = vector.extract_strided_slice %512 {offsets = [32, 0], sizes = [32, 256], strides = [1, 1]} : vector<64x256xbf16> to vector<32x256xbf16>
    %cst_242 = arith.constant dense<0.000000e+00> : vector<2x256xf32>
    %650 = tpu.matmul %646, %649, %cst_242 {dimension_numbers = #tpu.dot_dimension_numbers<[1], [0], [0], [1], [0, 0, 1, 1], [], []>} : vector<2x32xbf16>, vector<32x256xbf16>, vector<2x256xf32> -> vector<2x256xf32>
    %651 = arith.addf %648, %650 : vector<2x256xf32>
    %652 = vector.broadcast %514 : vector<1x256xf32> to vector<2x256xf32>
    %653 = arith.addf %651, %652 : vector<2x256xf32>
    %654 = vector.extract_strided_slice %653 {offsets = [0, 0], sizes = [2, 128], strides = [1, 1]} : vector<2x256xf32> to vector<2x128xf32>
    %c6_243 = arith.constant 6 : index
    %c0_244 = arith.constant 0 : index
    %c0_245 = arith.constant 0 : index
    %655 = vector.load %arg10[%c6_243, %c0_244, %c0_245] : memref<8x2x128xf32, #tpu.memory_space<vmem>>, vector<1x2x128xf32>
    %656 = vector.shape_cast %655 : vector<1x2x128xf32> to vector<2x128xf32>
    %657 = vector.shape_cast %654 : vector<2x128xf32> to vector<1x2x128xf32>
    tpu.vector_store %arg10[%c6_243, %c0_244, %c0_245], %657 {strides = array<i32>} : memref<8x2x128xf32, #tpu.memory_space<vmem>>, vector<1x2x128xf32>,
    %658 = vector.extract_strided_slice %653 {offsets = [0, 128], sizes = [2, 128], strides = [1, 1]} : vector<2x256xf32> to vector<2x128xf32>
    %c6_246 = arith.constant 6 : index
    %c0_247 = arith.constant 0 : index
    %c0_248 = arith.constant 0 : index
    %659 = vector.load %arg11[%c6_246, %c0_247, %c0_248] : memref<8x2x128xf32, #tpu.memory_space<vmem>>, vector<1x2x128xf32>
    %660 = vector.shape_cast %659 : vector<1x2x128xf32> to vector<2x128xf32>
    %661 = vector.shape_cast %658 : vector<2x128xf32> to vector<1x2x128xf32>
    tpu.vector_store %arg11[%c6_246, %c0_247, %c0_248], %661 {strides = array<i32>} : memref<8x2x128xf32, #tpu.memory_space<vmem>>, vector<1x2x128xf32>,
    %c7_249 = arith.constant 7 : index
    %c0_250 = arith.constant 0 : index
    %c0_251 = arith.constant 0 : index
    %662 = vector.load %arg12[%c7_249, %c0_250, %c0_251] : memref<8x2x32xf32, #tpu.memory_space<vmem>>, vector<1x2x32xf32>
    %663 = vector.shape_cast %662 : vector<1x2x32xf32> to vector<2x32xf32>
    %664 = arith.truncf %663 : vector<2x32xf32> to vector<2x32xbf16>
    %c7_252 = arith.constant 7 : index
    %c0_253 = arith.constant 0 : index
    %c0_254 = arith.constant 0 : index
    %665 = vector.load %arg13[%c7_252, %c0_253, %c0_254] : memref<8x2x32xf32, #tpu.memory_space<vmem>>, vector<1x2x32xf32>
    %666 = vector.shape_cast %665 : vector<1x2x32xf32> to vector<2x32xf32>
    %667 = arith.truncf %666 : vector<2x32xf32> to vector<2x32xbf16>
    %668 = vector.extract_strided_slice %512 {offsets = [0, 0], sizes = [32, 256], strides = [1, 1]} : vector<64x256xbf16> to vector<32x256xbf16>
    %cst_255 = arith.constant dense<0.000000e+00> : vector<2x256xf32>
    %669 = tpu.matmul %664, %668, %cst_255 {dimension_numbers = #tpu.dot_dimension_numbers<[1], [0], [0], [1], [0, 0, 1, 1], [], []>} : vector<2x32xbf16>, vector<32x256xbf16>, vector<2x256xf32> -> vector<2x256xf32>
    %670 = vector.extract_strided_slice %512 {offsets = [32, 0], sizes = [32, 256], strides = [1, 1]} : vector<64x256xbf16> to vector<32x256xbf16>
    %cst_256 = arith.constant dense<0.000000e+00> : vector<2x256xf32>
    %671 = tpu.matmul %667, %670, %cst_256 {dimension_numbers = #tpu.dot_dimension_numbers<[1], [0], [0], [1], [0, 0, 1, 1], [], []>} : vector<2x32xbf16>, vector<32x256xbf16>, vector<2x256xf32> -> vector<2x256xf32>
    %672 = arith.addf %669, %671 : vector<2x256xf32>
    %673 = vector.broadcast %514 : vector<1x256xf32> to vector<2x256xf32>
    %674 = arith.addf %672, %673 : vector<2x256xf32>
    %675 = vector.extract_strided_slice %674 {offsets = [0, 0], sizes = [2, 128], strides = [1, 1]} : vector<2x256xf32> to vector<2x128xf32>
    %c7_257 = arith.constant 7 : index
    %c0_258 = arith.constant 0 : index
    %c0_259 = arith.constant 0 : index
    %676 = vector.load %arg10[%c7_257, %c0_258, %c0_259] : memref<8x2x128xf32, #tpu.memory_space<vmem>>, vector<1x2x128xf32>
    %677 = vector.shape_cast %676 : vector<1x2x128xf32> to vector<2x128xf32>
    %678 = vector.shape_cast %675 : vector<2x128xf32> to vector<1x2x128xf32>
    tpu.vector_store %arg10[%c7_257, %c0_258, %c0_259], %678 {strides = array<i32>} : memref<8x2x128xf32, #tpu.memory_space<vmem>>, vector<1x2x128xf32>,
    %679 = vector.extract_strided_slice %674 {offsets = [0, 128], sizes = [2, 128], strides = [1, 1]} : vector<2x256xf32> to vector<2x128xf32>
    %c7_260 = arith.constant 7 : index
    %c0_261 = arith.constant 0 : index
    %c0_262 = arith.constant 0 : index
    %680 = vector.load %arg11[%c7_260, %c0_261, %c0_262] : memref<8x2x128xf32, #tpu.memory_space<vmem>>, vector<1x2x128xf32>
    %681 = vector.shape_cast %680 : vector<1x2x128xf32> to vector<2x128xf32>
    %682 = vector.shape_cast %679 : vector<2x128xf32> to vector<1x2x128xf32>
    tpu.vector_store %arg11[%c7_260, %c0_261, %c0_262], %682 {strides = array<i32>} : memref<8x2x128xf32, #tpu.memory_space<vmem>>, vector<1x2x128xf32>,
    %cst_263 = arith.constant 0.000000e+00 : f32
    %683 = vector.broadcast %cst_263 : f32 to vector<2x32xf32>
    %c0_i32_264 = arith.constant 0 : i32
    %c7_i32_265 = arith.constant 7 : i32
    %684 = arith.subi %c7_i32_265, %c0_i32_264 : i32
    %685 = tpu.concatenate %683, %683 in 0 : vector<2x32xf32>, vector<2x32xf32> -> vector<4x32xf32>
    %686 = arith.truncf %685 : vector<4x32xf32> to vector<4x32xbf16>
    %cst_266 = arith.constant dense<0.000000e+00> : vector<4x256xf32>
    %687 = tpu.matmul %686, %513, %cst_266 {dimension_numbers = #tpu.dot_dimension_numbers<[1], [0], [0], [1], [0, 0, 1, 1], [], []>} : vector<4x32xbf16>, vector<32x256xbf16>, vector<4x256xf32> -> vector<4x256xf32>
    %688 = arith.index_cast %c0_i32_264 : i32 to index
    %c0_267 = arith.constant 0 : index
    %c0_268 = arith.constant 0 : index
    %689 = vector.load %arg10[%688, %c0_267, %c0_268] : memref<8x2x128xf32, #tpu.memory_space<vmem>>, vector<1x2x128xf32>
    %690 = vector.shape_cast %689 : vector<1x2x128xf32> to vector<2x128xf32>
    %691 = vector.extract_strided_slice %687 {offsets = [0, 0], sizes = [2, 128], strides = [1, 1]} : vector<4x256xf32> to vector<2x128xf32>
    %692 = arith.addf %690, %691 : vector<2x128xf32>
    %693 = arith.index_cast %684 : i32 to index
    %c0_269 = arith.constant 0 : index
    %c0_270 = arith.constant 0 : index
    %694 = vector.load %arg11[%693, %c0_269, %c0_270] : memref<8x2x128xf32, #tpu.memory_space<vmem>>, vector<1x2x128xf32>
    %695 = vector.shape_cast %694 : vector<1x2x128xf32> to vector<2x128xf32>
    %696 = vector.extract_strided_slice %687 {offsets = [2, 128], sizes = [2, 128], strides = [1, 1]} : vector<4x256xf32> to vector<2x128xf32>
    %697 = arith.addf %695, %696 : vector<2x128xf32>
    %698 = vector.extract_strided_slice %692 {offsets = [0, 0], sizes = [2, 96], strides = [1, 1]} : vector<2x128xf32> to vector<2x96xf32>
    %699 = arith.negf %698 : vector<2x96xf32>
    %700 = math.exp %699 : vector<2x96xf32>
    %cst_271 = arith.constant 1.000000e+00 : f32
    %701 = vector.broadcast %cst_271 : f32 to vector<2x96xf32>
    %702 = arith.addf %701, %700 : vector<2x96xf32>
    %703 = arith.divf %701, %702 : vector<2x96xf32>
    %704 = vector.extract_strided_slice %692 {offsets = [0, 96], sizes = [2, 32], strides = [1, 1]} : vector<2x128xf32> to vector<2x32xf32>
    %705 = math.tanh %704 : vector<2x32xf32>
    %706 = vector.extract_strided_slice %703 {offsets = [0, 0], sizes = [2, 32], strides = [1, 1]} : vector<2x96xf32> to vector<2x32xf32>
    %707 = vector.extract_strided_slice %703 {offsets = [0, 32], sizes = [2, 32], strides = [1, 1]} : vector<2x96xf32> to vector<2x32xf32>
    %708 = vector.extract_strided_slice %703 {offsets = [0, 64], sizes = [2, 32], strides = [1, 1]} : vector<2x96xf32> to vector<2x32xf32>
    %709 = arith.mulf %707, %683 : vector<2x32xf32>
    %710 = arith.mulf %706, %705 : vector<2x32xf32>
    %711 = arith.addf %709, %710 : vector<2x32xf32>
    %712 = math.tanh %711 : vector<2x32xf32>
    %713 = arith.mulf %708, %712 : vector<2x32xf32>
    %714 = vector.extract_strided_slice %697 {offsets = [0, 0], sizes = [2, 96], strides = [1, 1]} : vector<2x128xf32> to vector<2x96xf32>
    %715 = arith.negf %714 : vector<2x96xf32>
    %716 = math.exp %715 : vector<2x96xf32>
    %cst_272 = arith.constant 1.000000e+00 : f32
    %717 = vector.broadcast %cst_272 : f32 to vector<2x96xf32>
    %718 = arith.addf %717, %716 : vector<2x96xf32>
    %719 = arith.divf %717, %718 : vector<2x96xf32>
    %720 = vector.extract_strided_slice %697 {offsets = [0, 96], sizes = [2, 32], strides = [1, 1]} : vector<2x128xf32> to vector<2x32xf32>
    %721 = math.tanh %720 : vector<2x32xf32>
    %722 = vector.extract_strided_slice %719 {offsets = [0, 0], sizes = [2, 32], strides = [1, 1]} : vector<2x96xf32> to vector<2x32xf32>
    %723 = vector.extract_strided_slice %719 {offsets = [0, 32], sizes = [2, 32], strides = [1, 1]} : vector<2x96xf32> to vector<2x32xf32>
    %724 = vector.extract_strided_slice %719 {offsets = [0, 64], sizes = [2, 32], strides = [1, 1]} : vector<2x96xf32> to vector<2x32xf32>
    %725 = arith.mulf %723, %683 : vector<2x32xf32>
    %726 = arith.mulf %722, %721 : vector<2x32xf32>
    %727 = arith.addf %725, %726 : vector<2x32xf32>
    %728 = math.tanh %727 : vector<2x32xf32>
    %729 = arith.mulf %724, %728 : vector<2x32xf32>
    %730 = arith.index_cast %c0_i32_264 : i32 to index
    %c0_273 = arith.constant 0 : index
    %c0_274 = arith.constant 0 : index
    %731 = vector.load %arg12[%730, %c0_273, %c0_274] : memref<8x2x32xf32, #tpu.memory_space<vmem>>, vector<1x2x32xf32>
    %732 = vector.shape_cast %731 : vector<1x2x32xf32> to vector<2x32xf32>
    %733 = vector.shape_cast %713 : vector<2x32xf32> to vector<1x2x32xf32>
    tpu.vector_store %arg12[%730, %c0_273, %c0_274], %733 {strides = array<i32>} : memref<8x2x32xf32, #tpu.memory_space<vmem>>, vector<1x2x32xf32>,
    %734 = arith.index_cast %684 : i32 to index
    %c0_275 = arith.constant 0 : index
    %c0_276 = arith.constant 0 : index
    %735 = vector.load %arg13[%734, %c0_275, %c0_276] : memref<8x2x32xf32, #tpu.memory_space<vmem>>, vector<1x2x32xf32>
    %736 = vector.shape_cast %735 : vector<1x2x32xf32> to vector<2x32xf32>
    %737 = vector.shape_cast %729 : vector<2x32xf32> to vector<1x2x32xf32>
    tpu.vector_store %arg13[%734, %c0_275, %c0_276], %737 {strides = array<i32>} : memref<8x2x32xf32, #tpu.memory_space<vmem>>, vector<1x2x32xf32>,
    %c1_i32_277 = arith.constant 1 : i32
    %c7_i32_278 = arith.constant 7 : i32
    %738 = arith.subi %c7_i32_278, %c1_i32_277 : i32
    %739 = tpu.concatenate %713, %729 in 0 : vector<2x32xf32>, vector<2x32xf32> -> vector<4x32xf32>
    %740 = arith.truncf %739 : vector<4x32xf32> to vector<4x32xbf16>
    %cst_279 = arith.constant dense<0.000000e+00> : vector<4x256xf32>
    %741 = tpu.matmul %740, %513, %cst_279 {dimension_numbers = #tpu.dot_dimension_numbers<[1], [0], [0], [1], [0, 0, 1, 1], [], []>} : vector<4x32xbf16>, vector<32x256xbf16>, vector<4x256xf32> -> vector<4x256xf32>
    %742 = arith.index_cast %c1_i32_277 : i32 to index
    %c0_280 = arith.constant 0 : index
    %c0_281 = arith.constant 0 : index
    %743 = vector.load %arg10[%742, %c0_280, %c0_281] : memref<8x2x128xf32, #tpu.memory_space<vmem>>, vector<1x2x128xf32>
    %744 = vector.shape_cast %743 : vector<1x2x128xf32> to vector<2x128xf32>
    %745 = vector.extract_strided_slice %741 {offsets = [0, 0], sizes = [2, 128], strides = [1, 1]} : vector<4x256xf32> to vector<2x128xf32>
    %746 = arith.addf %744, %745 : vector<2x128xf32>
    %747 = arith.index_cast %738 : i32 to index
    %c0_282 = arith.constant 0 : index
    %c0_283 = arith.constant 0 : index
    %748 = vector.load %arg11[%747, %c0_282, %c0_283] : memref<8x2x128xf32, #tpu.memory_space<vmem>>, vector<1x2x128xf32>
    %749 = vector.shape_cast %748 : vector<1x2x128xf32> to vector<2x128xf32>
    %750 = vector.extract_strided_slice %741 {offsets = [2, 128], sizes = [2, 128], strides = [1, 1]} : vector<4x256xf32> to vector<2x128xf32>
    %751 = arith.addf %749, %750 : vector<2x128xf32>
    %752 = vector.extract_strided_slice %746 {offsets = [0, 0], sizes = [2, 96], strides = [1, 1]} : vector<2x128xf32> to vector<2x96xf32>
    %753 = arith.negf %752 : vector<2x96xf32>
    %754 = math.exp %753 : vector<2x96xf32>
    %cst_284 = arith.constant 1.000000e+00 : f32
    %755 = vector.broadcast %cst_284 : f32 to vector<2x96xf32>
    %756 = arith.addf %755, %754 : vector<2x96xf32>
    %757 = arith.divf %755, %756 : vector<2x96xf32>
    %758 = vector.extract_strided_slice %746 {offsets = [0, 96], sizes = [2, 32], strides = [1, 1]} : vector<2x128xf32> to vector<2x32xf32>
    %759 = math.tanh %758 : vector<2x32xf32>
    %760 = vector.extract_strided_slice %757 {offsets = [0, 0], sizes = [2, 32], strides = [1, 1]} : vector<2x96xf32> to vector<2x32xf32>
    %761 = vector.extract_strided_slice %757 {offsets = [0, 32], sizes = [2, 32], strides = [1, 1]} : vector<2x96xf32> to vector<2x32xf32>
    %762 = vector.extract_strided_slice %757 {offsets = [0, 64], sizes = [2, 32], strides = [1, 1]} : vector<2x96xf32> to vector<2x32xf32>
    %763 = arith.mulf %761, %711 : vector<2x32xf32>
    %764 = arith.mulf %760, %759 : vector<2x32xf32>
    %765 = arith.addf %763, %764 : vector<2x32xf32>
    %766 = math.tanh %765 : vector<2x32xf32>
    %767 = arith.mulf %762, %766 : vector<2x32xf32>
    %768 = vector.extract_strided_slice %751 {offsets = [0, 0], sizes = [2, 96], strides = [1, 1]} : vector<2x128xf32> to vector<2x96xf32>
    %769 = arith.negf %768 : vector<2x96xf32>
    %770 = math.exp %769 : vector<2x96xf32>
    %cst_285 = arith.constant 1.000000e+00 : f32
    %771 = vector.broadcast %cst_285 : f32 to vector<2x96xf32>
    %772 = arith.addf %771, %770 : vector<2x96xf32>
    %773 = arith.divf %771, %772 : vector<2x96xf32>
    %774 = vector.extract_strided_slice %751 {offsets = [0, 96], sizes = [2, 32], strides = [1, 1]} : vector<2x128xf32> to vector<2x32xf32>
    %775 = math.tanh %774 : vector<2x32xf32>
    %776 = vector.extract_strided_slice %773 {offsets = [0, 0], sizes = [2, 32], strides = [1, 1]} : vector<2x96xf32> to vector<2x32xf32>
    %777 = vector.extract_strided_slice %773 {offsets = [0, 32], sizes = [2, 32], strides = [1, 1]} : vector<2x96xf32> to vector<2x32xf32>
    %778 = vector.extract_strided_slice %773 {offsets = [0, 64], sizes = [2, 32], strides = [1, 1]} : vector<2x96xf32> to vector<2x32xf32>
    %779 = arith.mulf %777, %727 : vector<2x32xf32>
    %780 = arith.mulf %776, %775 : vector<2x32xf32>
    %781 = arith.addf %779, %780 : vector<2x32xf32>
    %782 = math.tanh %781 : vector<2x32xf32>
    %783 = arith.mulf %778, %782 : vector<2x32xf32>
    %784 = arith.index_cast %c1_i32_277 : i32 to index
    %c0_286 = arith.constant 0 : index
    %c0_287 = arith.constant 0 : index
    %785 = vector.load %arg12[%784, %c0_286, %c0_287] : memref<8x2x32xf32, #tpu.memory_space<vmem>>, vector<1x2x32xf32>
    %786 = vector.shape_cast %785 : vector<1x2x32xf32> to vector<2x32xf32>
    %787 = vector.shape_cast %767 : vector<2x32xf32> to vector<1x2x32xf32>
    tpu.vector_store %arg12[%784, %c0_286, %c0_287], %787 {strides = array<i32>} : memref<8x2x32xf32, #tpu.memory_space<vmem>>, vector<1x2x32xf32>,
    %788 = arith.index_cast %738 : i32 to index
    %c0_288 = arith.constant 0 : index
    %c0_289 = arith.constant 0 : index
    %789 = vector.load %arg13[%788, %c0_288, %c0_289] : memref<8x2x32xf32, #tpu.memory_space<vmem>>, vector<1x2x32xf32>
    %790 = vector.shape_cast %789 : vector<1x2x32xf32> to vector<2x32xf32>
    %791 = vector.shape_cast %783 : vector<2x32xf32> to vector<1x2x32xf32>
    tpu.vector_store %arg13[%788, %c0_288, %c0_289], %791 {strides = array<i32>} : memref<8x2x32xf32, #tpu.memory_space<vmem>>, vector<1x2x32xf32>,
    %c2_i32_290 = arith.constant 2 : i32
    %c7_i32_291 = arith.constant 7 : i32
    %792 = arith.subi %c7_i32_291, %c2_i32_290 : i32
    %793 = tpu.concatenate %767, %783 in 0 : vector<2x32xf32>, vector<2x32xf32> -> vector<4x32xf32>
    %794 = arith.truncf %793 : vector<4x32xf32> to vector<4x32xbf16>
    %cst_292 = arith.constant dense<0.000000e+00> : vector<4x256xf32>
    %795 = tpu.matmul %794, %513, %cst_292 {dimension_numbers = #tpu.dot_dimension_numbers<[1], [0], [0], [1], [0, 0, 1, 1], [], []>} : vector<4x32xbf16>, vector<32x256xbf16>, vector<4x256xf32> -> vector<4x256xf32>
    %796 = arith.index_cast %c2_i32_290 : i32 to index
    %c0_293 = arith.constant 0 : index
    %c0_294 = arith.constant 0 : index
    %797 = vector.load %arg10[%796, %c0_293, %c0_294] : memref<8x2x128xf32, #tpu.memory_space<vmem>>, vector<1x2x128xf32>
    %798 = vector.shape_cast %797 : vector<1x2x128xf32> to vector<2x128xf32>
    %799 = vector.extract_strided_slice %795 {offsets = [0, 0], sizes = [2, 128], strides = [1, 1]} : vector<4x256xf32> to vector<2x128xf32>
    %800 = arith.addf %798, %799 : vector<2x128xf32>
    %801 = arith.index_cast %792 : i32 to index
    %c0_295 = arith.constant 0 : index
    %c0_296 = arith.constant 0 : index
    %802 = vector.load %arg11[%801, %c0_295, %c0_296] : memref<8x2x128xf32, #tpu.memory_space<vmem>>, vector<1x2x128xf32>
    %803 = vector.shape_cast %802 : vector<1x2x128xf32> to vector<2x128xf32>
    %804 = vector.extract_strided_slice %795 {offsets = [2, 128], sizes = [2, 128], strides = [1, 1]} : vector<4x256xf32> to vector<2x128xf32>
    %805 = arith.addf %803, %804 : vector<2x128xf32>
    %806 = vector.extract_strided_slice %800 {offsets = [0, 0], sizes = [2, 96], strides = [1, 1]} : vector<2x128xf32> to vector<2x96xf32>
    %807 = arith.negf %806 : vector<2x96xf32>
    %808 = math.exp %807 : vector<2x96xf32>
    %cst_297 = arith.constant 1.000000e+00 : f32
    %809 = vector.broadcast %cst_297 : f32 to vector<2x96xf32>
    %810 = arith.addf %809, %808 : vector<2x96xf32>
    %811 = arith.divf %809, %810 : vector<2x96xf32>
    %812 = vector.extract_strided_slice %800 {offsets = [0, 96], sizes = [2, 32], strides = [1, 1]} : vector<2x128xf32> to vector<2x32xf32>
    %813 = math.tanh %812 : vector<2x32xf32>
    %814 = vector.extract_strided_slice %811 {offsets = [0, 0], sizes = [2, 32], strides = [1, 1]} : vector<2x96xf32> to vector<2x32xf32>
    %815 = vector.extract_strided_slice %811 {offsets = [0, 32], sizes = [2, 32], strides = [1, 1]} : vector<2x96xf32> to vector<2x32xf32>
    %816 = vector.extract_strided_slice %811 {offsets = [0, 64], sizes = [2, 32], strides = [1, 1]} : vector<2x96xf32> to vector<2x32xf32>
    %817 = arith.mulf %815, %765 : vector<2x32xf32>
    %818 = arith.mulf %814, %813 : vector<2x32xf32>
    %819 = arith.addf %817, %818 : vector<2x32xf32>
    %820 = math.tanh %819 : vector<2x32xf32>
    %821 = arith.mulf %816, %820 : vector<2x32xf32>
    %822 = vector.extract_strided_slice %805 {offsets = [0, 0], sizes = [2, 96], strides = [1, 1]} : vector<2x128xf32> to vector<2x96xf32>
    %823 = arith.negf %822 : vector<2x96xf32>
    %824 = math.exp %823 : vector<2x96xf32>
    %cst_298 = arith.constant 1.000000e+00 : f32
    %825 = vector.broadcast %cst_298 : f32 to vector<2x96xf32>
    %826 = arith.addf %825, %824 : vector<2x96xf32>
    %827 = arith.divf %825, %826 : vector<2x96xf32>
    %828 = vector.extract_strided_slice %805 {offsets = [0, 96], sizes = [2, 32], strides = [1, 1]} : vector<2x128xf32> to vector<2x32xf32>
    %829 = math.tanh %828 : vector<2x32xf32>
    %830 = vector.extract_strided_slice %827 {offsets = [0, 0], sizes = [2, 32], strides = [1, 1]} : vector<2x96xf32> to vector<2x32xf32>
    %831 = vector.extract_strided_slice %827 {offsets = [0, 32], sizes = [2, 32], strides = [1, 1]} : vector<2x96xf32> to vector<2x32xf32>
    %832 = vector.extract_strided_slice %827 {offsets = [0, 64], sizes = [2, 32], strides = [1, 1]} : vector<2x96xf32> to vector<2x32xf32>
    %833 = arith.mulf %831, %781 : vector<2x32xf32>
    %834 = arith.mulf %830, %829 : vector<2x32xf32>
    %835 = arith.addf %833, %834 : vector<2x32xf32>
    %836 = math.tanh %835 : vector<2x32xf32>
    %837 = arith.mulf %832, %836 : vector<2x32xf32>
    %838 = arith.index_cast %c2_i32_290 : i32 to index
    %c0_299 = arith.constant 0 : index
    %c0_300 = arith.constant 0 : index
    %839 = vector.load %arg12[%838, %c0_299, %c0_300] : memref<8x2x32xf32, #tpu.memory_space<vmem>>, vector<1x2x32xf32>
    %840 = vector.shape_cast %839 : vector<1x2x32xf32> to vector<2x32xf32>
    %841 = vector.shape_cast %821 : vector<2x32xf32> to vector<1x2x32xf32>
    tpu.vector_store %arg12[%838, %c0_299, %c0_300], %841 {strides = array<i32>} : memref<8x2x32xf32, #tpu.memory_space<vmem>>, vector<1x2x32xf32>,
    %842 = arith.index_cast %792 : i32 to index
    %c0_301 = arith.constant 0 : index
    %c0_302 = arith.constant 0 : index
    %843 = vector.load %arg13[%842, %c0_301, %c0_302] : memref<8x2x32xf32, #tpu.memory_space<vmem>>, vector<1x2x32xf32>
    %844 = vector.shape_cast %843 : vector<1x2x32xf32> to vector<2x32xf32>
    %845 = vector.shape_cast %837 : vector<2x32xf32> to vector<1x2x32xf32>
    tpu.vector_store %arg13[%842, %c0_301, %c0_302], %845 {strides = array<i32>} : memref<8x2x32xf32, #tpu.memory_space<vmem>>, vector<1x2x32xf32>,
    %c3_i32_303 = arith.constant 3 : i32
    %c7_i32_304 = arith.constant 7 : i32
    %846 = arith.subi %c7_i32_304, %c3_i32_303 : i32
    %847 = tpu.concatenate %821, %837 in 0 : vector<2x32xf32>, vector<2x32xf32> -> vector<4x32xf32>
    %848 = arith.truncf %847 : vector<4x32xf32> to vector<4x32xbf16>
    %cst_305 = arith.constant dense<0.000000e+00> : vector<4x256xf32>
    %849 = tpu.matmul %848, %513, %cst_305 {dimension_numbers = #tpu.dot_dimension_numbers<[1], [0], [0], [1], [0, 0, 1, 1], [], []>} : vector<4x32xbf16>, vector<32x256xbf16>, vector<4x256xf32> -> vector<4x256xf32>
    %850 = arith.index_cast %c3_i32_303 : i32 to index
    %c0_306 = arith.constant 0 : index
    %c0_307 = arith.constant 0 : index
    %851 = vector.load %arg10[%850, %c0_306, %c0_307] : memref<8x2x128xf32, #tpu.memory_space<vmem>>, vector<1x2x128xf32>
    %852 = vector.shape_cast %851 : vector<1x2x128xf32> to vector<2x128xf32>
    %853 = vector.extract_strided_slice %849 {offsets = [0, 0], sizes = [2, 128], strides = [1, 1]} : vector<4x256xf32> to vector<2x128xf32>
    %854 = arith.addf %852, %853 : vector<2x128xf32>
    %855 = arith.index_cast %846 : i32 to index
    %c0_308 = arith.constant 0 : index
    %c0_309 = arith.constant 0 : index
    %856 = vector.load %arg11[%855, %c0_308, %c0_309] : memref<8x2x128xf32, #tpu.memory_space<vmem>>, vector<1x2x128xf32>
    %857 = vector.shape_cast %856 : vector<1x2x128xf32> to vector<2x128xf32>
    %858 = vector.extract_strided_slice %849 {offsets = [2, 128], sizes = [2, 128], strides = [1, 1]} : vector<4x256xf32> to vector<2x128xf32>
    %859 = arith.addf %857, %858 : vector<2x128xf32>
    %860 = vector.extract_strided_slice %854 {offsets = [0, 0], sizes = [2, 96], strides = [1, 1]} : vector<2x128xf32> to vector<2x96xf32>
    %861 = arith.negf %860 : vector<2x96xf32>
    %862 = math.exp %861 : vector<2x96xf32>
    %cst_310 = arith.constant 1.000000e+00 : f32
    %863 = vector.broadcast %cst_310 : f32 to vector<2x96xf32>
    %864 = arith.addf %863, %862 : vector<2x96xf32>
    %865 = arith.divf %863, %864 : vector<2x96xf32>
    %866 = vector.extract_strided_slice %854 {offsets = [0, 96], sizes = [2, 32], strides = [1, 1]} : vector<2x128xf32> to vector<2x32xf32>
    %867 = math.tanh %866 : vector<2x32xf32>
    %868 = vector.extract_strided_slice %865 {offsets = [0, 0], sizes = [2, 32], strides = [1, 1]} : vector<2x96xf32> to vector<2x32xf32>
    %869 = vector.extract_strided_slice %865 {offsets = [0, 32], sizes = [2, 32], strides = [1, 1]} : vector<2x96xf32> to vector<2x32xf32>
    %870 = vector.extract_strided_slice %865 {offsets = [0, 64], sizes = [2, 32], strides = [1, 1]} : vector<2x96xf32> to vector<2x32xf32>
    %871 = arith.mulf %869, %819 : vector<2x32xf32>
    %872 = arith.mulf %868, %867 : vector<2x32xf32>
    %873 = arith.addf %871, %872 : vector<2x32xf32>
    %874 = math.tanh %873 : vector<2x32xf32>
    %875 = arith.mulf %870, %874 : vector<2x32xf32>
    %876 = vector.extract_strided_slice %859 {offsets = [0, 0], sizes = [2, 96], strides = [1, 1]} : vector<2x128xf32> to vector<2x96xf32>
    %877 = arith.negf %876 : vector<2x96xf32>
    %878 = math.exp %877 : vector<2x96xf32>
    %cst_311 = arith.constant 1.000000e+00 : f32
    %879 = vector.broadcast %cst_311 : f32 to vector<2x96xf32>
    %880 = arith.addf %879, %878 : vector<2x96xf32>
    %881 = arith.divf %879, %880 : vector<2x96xf32>
    %882 = vector.extract_strided_slice %859 {offsets = [0, 96], sizes = [2, 32], strides = [1, 1]} : vector<2x128xf32> to vector<2x32xf32>
    %883 = math.tanh %882 : vector<2x32xf32>
    %884 = vector.extract_strided_slice %881 {offsets = [0, 0], sizes = [2, 32], strides = [1, 1]} : vector<2x96xf32> to vector<2x32xf32>
    %885 = vector.extract_strided_slice %881 {offsets = [0, 32], sizes = [2, 32], strides = [1, 1]} : vector<2x96xf32> to vector<2x32xf32>
    %886 = vector.extract_strided_slice %881 {offsets = [0, 64], sizes = [2, 32], strides = [1, 1]} : vector<2x96xf32> to vector<2x32xf32>
    %887 = arith.mulf %885, %835 : vector<2x32xf32>
    %888 = arith.mulf %884, %883 : vector<2x32xf32>
    %889 = arith.addf %887, %888 : vector<2x32xf32>
    %890 = math.tanh %889 : vector<2x32xf32>
    %891 = arith.mulf %886, %890 : vector<2x32xf32>
    %892 = arith.index_cast %c3_i32_303 : i32 to index
    %c0_312 = arith.constant 0 : index
    %c0_313 = arith.constant 0 : index
    %893 = vector.load %arg12[%892, %c0_312, %c0_313] : memref<8x2x32xf32, #tpu.memory_space<vmem>>, vector<1x2x32xf32>
    %894 = vector.shape_cast %893 : vector<1x2x32xf32> to vector<2x32xf32>
    %895 = vector.shape_cast %875 : vector<2x32xf32> to vector<1x2x32xf32>
    tpu.vector_store %arg12[%892, %c0_312, %c0_313], %895 {strides = array<i32>} : memref<8x2x32xf32, #tpu.memory_space<vmem>>, vector<1x2x32xf32>,
    %896 = arith.index_cast %846 : i32 to index
    %c0_314 = arith.constant 0 : index
    %c0_315 = arith.constant 0 : index
    %897 = vector.load %arg13[%896, %c0_314, %c0_315] : memref<8x2x32xf32, #tpu.memory_space<vmem>>, vector<1x2x32xf32>
    %898 = vector.shape_cast %897 : vector<1x2x32xf32> to vector<2x32xf32>
    %899 = vector.shape_cast %891 : vector<2x32xf32> to vector<1x2x32xf32>
    tpu.vector_store %arg13[%896, %c0_314, %c0_315], %899 {strides = array<i32>} : memref<8x2x32xf32, #tpu.memory_space<vmem>>, vector<1x2x32xf32>,
    %c4_i32_316 = arith.constant 4 : i32
    %c7_i32_317 = arith.constant 7 : i32
    %900 = arith.subi %c7_i32_317, %c4_i32_316 : i32
    %901 = tpu.concatenate %875, %891 in 0 : vector<2x32xf32>, vector<2x32xf32> -> vector<4x32xf32>
    %902 = arith.truncf %901 : vector<4x32xf32> to vector<4x32xbf16>
    %cst_318 = arith.constant dense<0.000000e+00> : vector<4x256xf32>
    %903 = tpu.matmul %902, %513, %cst_318 {dimension_numbers = #tpu.dot_dimension_numbers<[1], [0], [0], [1], [0, 0, 1, 1], [], []>} : vector<4x32xbf16>, vector<32x256xbf16>, vector<4x256xf32> -> vector<4x256xf32>
    %904 = arith.index_cast %c4_i32_316 : i32 to index
    %c0_319 = arith.constant 0 : index
    %c0_320 = arith.constant 0 : index
    %905 = vector.load %arg10[%904, %c0_319, %c0_320] : memref<8x2x128xf32, #tpu.memory_space<vmem>>, vector<1x2x128xf32>
    %906 = vector.shape_cast %905 : vector<1x2x128xf32> to vector<2x128xf32>
    %907 = vector.extract_strided_slice %903 {offsets = [0, 0], sizes = [2, 128], strides = [1, 1]} : vector<4x256xf32> to vector<2x128xf32>
    %908 = arith.addf %906, %907 : vector<2x128xf32>
    %909 = arith.index_cast %900 : i32 to index
    %c0_321 = arith.constant 0 : index
    %c0_322 = arith.constant 0 : index
    %910 = vector.load %arg11[%909, %c0_321, %c0_322] : memref<8x2x128xf32, #tpu.memory_space<vmem>>, vector<1x2x128xf32>
    %911 = vector.shape_cast %910 : vector<1x2x128xf32> to vector<2x128xf32>
    %912 = vector.extract_strided_slice %903 {offsets = [2, 128], sizes = [2, 128], strides = [1, 1]} : vector<4x256xf32> to vector<2x128xf32>
    %913 = arith.addf %911, %912 : vector<2x128xf32>
    %914 = vector.extract_strided_slice %908 {offsets = [0, 0], sizes = [2, 96], strides = [1, 1]} : vector<2x128xf32> to vector<2x96xf32>
    %915 = arith.negf %914 : vector<2x96xf32>
    %916 = math.exp %915 : vector<2x96xf32>
    %cst_323 = arith.constant 1.000000e+00 : f32
    %917 = vector.broadcast %cst_323 : f32 to vector<2x96xf32>
    %918 = arith.addf %917, %916 : vector<2x96xf32>
    %919 = arith.divf %917, %918 : vector<2x96xf32>
    %920 = vector.extract_strided_slice %908 {offsets = [0, 96], sizes = [2, 32], strides = [1, 1]} : vector<2x128xf32> to vector<2x32xf32>
    %921 = math.tanh %920 : vector<2x32xf32>
    %922 = vector.extract_strided_slice %919 {offsets = [0, 0], sizes = [2, 32], strides = [1, 1]} : vector<2x96xf32> to vector<2x32xf32>
    %923 = vector.extract_strided_slice %919 {offsets = [0, 32], sizes = [2, 32], strides = [1, 1]} : vector<2x96xf32> to vector<2x32xf32>
    %924 = vector.extract_strided_slice %919 {offsets = [0, 64], sizes = [2, 32], strides = [1, 1]} : vector<2x96xf32> to vector<2x32xf32>
    %925 = arith.mulf %923, %873 : vector<2x32xf32>
    %926 = arith.mulf %922, %921 : vector<2x32xf32>
    %927 = arith.addf %925, %926 : vector<2x32xf32>
    %928 = math.tanh %927 : vector<2x32xf32>
    %929 = arith.mulf %924, %928 : vector<2x32xf32>
    %930 = vector.extract_strided_slice %913 {offsets = [0, 0], sizes = [2, 96], strides = [1, 1]} : vector<2x128xf32> to vector<2x96xf32>
    %931 = arith.negf %930 : vector<2x96xf32>
    %932 = math.exp %931 : vector<2x96xf32>
    %cst_324 = arith.constant 1.000000e+00 : f32
    %933 = vector.broadcast %cst_324 : f32 to vector<2x96xf32>
    %934 = arith.addf %933, %932 : vector<2x96xf32>
    %935 = arith.divf %933, %934 : vector<2x96xf32>
    %936 = vector.extract_strided_slice %913 {offsets = [0, 96], sizes = [2, 32], strides = [1, 1]} : vector<2x128xf32> to vector<2x32xf32>
    %937 = math.tanh %936 : vector<2x32xf32>
    %938 = vector.extract_strided_slice %935 {offsets = [0, 0], sizes = [2, 32], strides = [1, 1]} : vector<2x96xf32> to vector<2x32xf32>
    %939 = vector.extract_strided_slice %935 {offsets = [0, 32], sizes = [2, 32], strides = [1, 1]} : vector<2x96xf32> to vector<2x32xf32>
    %940 = vector.extract_strided_slice %935 {offsets = [0, 64], sizes = [2, 32], strides = [1, 1]} : vector<2x96xf32> to vector<2x32xf32>
    %941 = arith.mulf %939, %889 : vector<2x32xf32>
    %942 = arith.mulf %938, %937 : vector<2x32xf32>
    %943 = arith.addf %941, %942 : vector<2x32xf32>
    %944 = math.tanh %943 : vector<2x32xf32>
    %945 = arith.mulf %940, %944 : vector<2x32xf32>
    %946 = arith.index_cast %c4_i32_316 : i32 to index
    %c0_325 = arith.constant 0 : index
    %c0_326 = arith.constant 0 : index
    %947 = vector.load %arg12[%946, %c0_325, %c0_326] : memref<8x2x32xf32, #tpu.memory_space<vmem>>, vector<1x2x32xf32>
    %948 = vector.shape_cast %947 : vector<1x2x32xf32> to vector<2x32xf32>
    %949 = vector.shape_cast %929 : vector<2x32xf32> to vector<1x2x32xf32>
    tpu.vector_store %arg12[%946, %c0_325, %c0_326], %949 {strides = array<i32>} : memref<8x2x32xf32, #tpu.memory_space<vmem>>, vector<1x2x32xf32>,
    %950 = arith.index_cast %900 : i32 to index
    %c0_327 = arith.constant 0 : index
    %c0_328 = arith.constant 0 : index
    %951 = vector.load %arg13[%950, %c0_327, %c0_328] : memref<8x2x32xf32, #tpu.memory_space<vmem>>, vector<1x2x32xf32>
    %952 = vector.shape_cast %951 : vector<1x2x32xf32> to vector<2x32xf32>
    %953 = vector.shape_cast %945 : vector<2x32xf32> to vector<1x2x32xf32>
    tpu.vector_store %arg13[%950, %c0_327, %c0_328], %953 {strides = array<i32>} : memref<8x2x32xf32, #tpu.memory_space<vmem>>, vector<1x2x32xf32>,
    %c5_i32_329 = arith.constant 5 : i32
    %c7_i32_330 = arith.constant 7 : i32
    %954 = arith.subi %c7_i32_330, %c5_i32_329 : i32
    %955 = tpu.concatenate %929, %945 in 0 : vector<2x32xf32>, vector<2x32xf32> -> vector<4x32xf32>
    %956 = arith.truncf %955 : vector<4x32xf32> to vector<4x32xbf16>
    %cst_331 = arith.constant dense<0.000000e+00> : vector<4x256xf32>
    %957 = tpu.matmul %956, %513, %cst_331 {dimension_numbers = #tpu.dot_dimension_numbers<[1], [0], [0], [1], [0, 0, 1, 1], [], []>} : vector<4x32xbf16>, vector<32x256xbf16>, vector<4x256xf32> -> vector<4x256xf32>
    %958 = arith.index_cast %c5_i32_329 : i32 to index
    %c0_332 = arith.constant 0 : index
    %c0_333 = arith.constant 0 : index
    %959 = vector.load %arg10[%958, %c0_332, %c0_333] : memref<8x2x128xf32, #tpu.memory_space<vmem>>, vector<1x2x128xf32>
    %960 = vector.shape_cast %959 : vector<1x2x128xf32> to vector<2x128xf32>
    %961 = vector.extract_strided_slice %957 {offsets = [0, 0], sizes = [2, 128], strides = [1, 1]} : vector<4x256xf32> to vector<2x128xf32>
    %962 = arith.addf %960, %961 : vector<2x128xf32>
    %963 = arith.index_cast %954 : i32 to index
    %c0_334 = arith.constant 0 : index
    %c0_335 = arith.constant 0 : index
    %964 = vector.load %arg11[%963, %c0_334, %c0_335] : memref<8x2x128xf32, #tpu.memory_space<vmem>>, vector<1x2x128xf32>
    %965 = vector.shape_cast %964 : vector<1x2x128xf32> to vector<2x128xf32>
    %966 = vector.extract_strided_slice %957 {offsets = [2, 128], sizes = [2, 128], strides = [1, 1]} : vector<4x256xf32> to vector<2x128xf32>
    %967 = arith.addf %965, %966 : vector<2x128xf32>
    %968 = vector.extract_strided_slice %962 {offsets = [0, 0], sizes = [2, 96], strides = [1, 1]} : vector<2x128xf32> to vector<2x96xf32>
    %969 = arith.negf %968 : vector<2x96xf32>
    %970 = math.exp %969 : vector<2x96xf32>
    %cst_336 = arith.constant 1.000000e+00 : f32
    %971 = vector.broadcast %cst_336 : f32 to vector<2x96xf32>
    %972 = arith.addf %971, %970 : vector<2x96xf32>
    %973 = arith.divf %971, %972 : vector<2x96xf32>
    %974 = vector.extract_strided_slice %962 {offsets = [0, 96], sizes = [2, 32], strides = [1, 1]} : vector<2x128xf32> to vector<2x32xf32>
    %975 = math.tanh %974 : vector<2x32xf32>
    %976 = vector.extract_strided_slice %973 {offsets = [0, 0], sizes = [2, 32], strides = [1, 1]} : vector<2x96xf32> to vector<2x32xf32>
    %977 = vector.extract_strided_slice %973 {offsets = [0, 32], sizes = [2, 32], strides = [1, 1]} : vector<2x96xf32> to vector<2x32xf32>
    %978 = vector.extract_strided_slice %973 {offsets = [0, 64], sizes = [2, 32], strides = [1, 1]} : vector<2x96xf32> to vector<2x32xf32>
    %979 = arith.mulf %977, %927 : vector<2x32xf32>
    %980 = arith.mulf %976, %975 : vector<2x32xf32>
    %981 = arith.addf %979, %980 : vector<2x32xf32>
    %982 = math.tanh %981 : vector<2x32xf32>
    %983 = arith.mulf %978, %982 : vector<2x32xf32>
    %984 = vector.extract_strided_slice %967 {offsets = [0, 0], sizes = [2, 96], strides = [1, 1]} : vector<2x128xf32> to vector<2x96xf32>
    %985 = arith.negf %984 : vector<2x96xf32>
    %986 = math.exp %985 : vector<2x96xf32>
    %cst_337 = arith.constant 1.000000e+00 : f32
    %987 = vector.broadcast %cst_337 : f32 to vector<2x96xf32>
    %988 = arith.addf %987, %986 : vector<2x96xf32>
    %989 = arith.divf %987, %988 : vector<2x96xf32>
    %990 = vector.extract_strided_slice %967 {offsets = [0, 96], sizes = [2, 32], strides = [1, 1]} : vector<2x128xf32> to vector<2x32xf32>
    %991 = math.tanh %990 : vector<2x32xf32>
    %992 = vector.extract_strided_slice %989 {offsets = [0, 0], sizes = [2, 32], strides = [1, 1]} : vector<2x96xf32> to vector<2x32xf32>
    %993 = vector.extract_strided_slice %989 {offsets = [0, 32], sizes = [2, 32], strides = [1, 1]} : vector<2x96xf32> to vector<2x32xf32>
    %994 = vector.extract_strided_slice %989 {offsets = [0, 64], sizes = [2, 32], strides = [1, 1]} : vector<2x96xf32> to vector<2x32xf32>
    %995 = arith.mulf %993, %943 : vector<2x32xf32>
    %996 = arith.mulf %992, %991 : vector<2x32xf32>
    %997 = arith.addf %995, %996 : vector<2x32xf32>
    %998 = math.tanh %997 : vector<2x32xf32>
    %999 = arith.mulf %994, %998 : vector<2x32xf32>
    %1000 = arith.index_cast %c5_i32_329 : i32 to index
    %c0_338 = arith.constant 0 : index
    %c0_339 = arith.constant 0 : index
    %1001 = vector.load %arg12[%1000, %c0_338, %c0_339] : memref<8x2x32xf32, #tpu.memory_space<vmem>>, vector<1x2x32xf32>
    %1002 = vector.shape_cast %1001 : vector<1x2x32xf32> to vector<2x32xf32>
    %1003 = vector.shape_cast %983 : vector<2x32xf32> to vector<1x2x32xf32>
    tpu.vector_store %arg12[%1000, %c0_338, %c0_339], %1003 {strides = array<i32>} : memref<8x2x32xf32, #tpu.memory_space<vmem>>, vector<1x2x32xf32>,
    %1004 = arith.index_cast %954 : i32 to index
    %c0_340 = arith.constant 0 : index
    %c0_341 = arith.constant 0 : index
    %1005 = vector.load %arg13[%1004, %c0_340, %c0_341] : memref<8x2x32xf32, #tpu.memory_space<vmem>>, vector<1x2x32xf32>
    %1006 = vector.shape_cast %1005 : vector<1x2x32xf32> to vector<2x32xf32>
    %1007 = vector.shape_cast %999 : vector<2x32xf32> to vector<1x2x32xf32>
    tpu.vector_store %arg13[%1004, %c0_340, %c0_341], %1007 {strides = array<i32>} : memref<8x2x32xf32, #tpu.memory_space<vmem>>, vector<1x2x32xf32>,
    %c6_i32_342 = arith.constant 6 : i32
    %c7_i32_343 = arith.constant 7 : i32
    %1008 = arith.subi %c7_i32_343, %c6_i32_342 : i32
    %1009 = tpu.concatenate %983, %999 in 0 : vector<2x32xf32>, vector<2x32xf32> -> vector<4x32xf32>
    %1010 = arith.truncf %1009 : vector<4x32xf32> to vector<4x32xbf16>
    %cst_344 = arith.constant dense<0.000000e+00> : vector<4x256xf32>
    %1011 = tpu.matmul %1010, %513, %cst_344 {dimension_numbers = #tpu.dot_dimension_numbers<[1], [0], [0], [1], [0, 0, 1, 1], [], []>} : vector<4x32xbf16>, vector<32x256xbf16>, vector<4x256xf32> -> vector<4x256xf32>
    %1012 = arith.index_cast %c6_i32_342 : i32 to index
    %c0_345 = arith.constant 0 : index
    %c0_346 = arith.constant 0 : index
    %1013 = vector.load %arg10[%1012, %c0_345, %c0_346] : memref<8x2x128xf32, #tpu.memory_space<vmem>>, vector<1x2x128xf32>
    %1014 = vector.shape_cast %1013 : vector<1x2x128xf32> to vector<2x128xf32>
    %1015 = vector.extract_strided_slice %1011 {offsets = [0, 0], sizes = [2, 128], strides = [1, 1]} : vector<4x256xf32> to vector<2x128xf32>
    %1016 = arith.addf %1014, %1015 : vector<2x128xf32>
    %1017 = arith.index_cast %1008 : i32 to index
    %c0_347 = arith.constant 0 : index
    %c0_348 = arith.constant 0 : index
    %1018 = vector.load %arg11[%1017, %c0_347, %c0_348] : memref<8x2x128xf32, #tpu.memory_space<vmem>>, vector<1x2x128xf32>
    %1019 = vector.shape_cast %1018 : vector<1x2x128xf32> to vector<2x128xf32>
    %1020 = vector.extract_strided_slice %1011 {offsets = [2, 128], sizes = [2, 128], strides = [1, 1]} : vector<4x256xf32> to vector<2x128xf32>
    %1021 = arith.addf %1019, %1020 : vector<2x128xf32>
    %1022 = vector.extract_strided_slice %1016 {offsets = [0, 0], sizes = [2, 96], strides = [1, 1]} : vector<2x128xf32> to vector<2x96xf32>
    %1023 = arith.negf %1022 : vector<2x96xf32>
    %1024 = math.exp %1023 : vector<2x96xf32>
    %cst_349 = arith.constant 1.000000e+00 : f32
    %1025 = vector.broadcast %cst_349 : f32 to vector<2x96xf32>
    %1026 = arith.addf %1025, %1024 : vector<2x96xf32>
    %1027 = arith.divf %1025, %1026 : vector<2x96xf32>
    %1028 = vector.extract_strided_slice %1016 {offsets = [0, 96], sizes = [2, 32], strides = [1, 1]} : vector<2x128xf32> to vector<2x32xf32>
    %1029 = math.tanh %1028 : vector<2x32xf32>
    %1030 = vector.extract_strided_slice %1027 {offsets = [0, 0], sizes = [2, 32], strides = [1, 1]} : vector<2x96xf32> to vector<2x32xf32>
    %1031 = vector.extract_strided_slice %1027 {offsets = [0, 32], sizes = [2, 32], strides = [1, 1]} : vector<2x96xf32> to vector<2x32xf32>
    %1032 = vector.extract_strided_slice %1027 {offsets = [0, 64], sizes = [2, 32], strides = [1, 1]} : vector<2x96xf32> to vector<2x32xf32>
    %1033 = arith.mulf %1031, %981 : vector<2x32xf32>
    %1034 = arith.mulf %1030, %1029 : vector<2x32xf32>
    %1035 = arith.addf %1033, %1034 : vector<2x32xf32>
    %1036 = math.tanh %1035 : vector<2x32xf32>
    %1037 = arith.mulf %1032, %1036 : vector<2x32xf32>
    %1038 = vector.extract_strided_slice %1021 {offsets = [0, 0], sizes = [2, 96], strides = [1, 1]} : vector<2x128xf32> to vector<2x96xf32>
    %1039 = arith.negf %1038 : vector<2x96xf32>
    %1040 = math.exp %1039 : vector<2x96xf32>
    %cst_350 = arith.constant 1.000000e+00 : f32
    %1041 = vector.broadcast %cst_350 : f32 to vector<2x96xf32>
    %1042 = arith.addf %1041, %1040 : vector<2x96xf32>
    %1043 = arith.divf %1041, %1042 : vector<2x96xf32>
    %1044 = vector.extract_strided_slice %1021 {offsets = [0, 96], sizes = [2, 32], strides = [1, 1]} : vector<2x128xf32> to vector<2x32xf32>
    %1045 = math.tanh %1044 : vector<2x32xf32>
    %1046 = vector.extract_strided_slice %1043 {offsets = [0, 0], sizes = [2, 32], strides = [1, 1]} : vector<2x96xf32> to vector<2x32xf32>
    %1047 = vector.extract_strided_slice %1043 {offsets = [0, 32], sizes = [2, 32], strides = [1, 1]} : vector<2x96xf32> to vector<2x32xf32>
    %1048 = vector.extract_strided_slice %1043 {offsets = [0, 64], sizes = [2, 32], strides = [1, 1]} : vector<2x96xf32> to vector<2x32xf32>
    %1049 = arith.mulf %1047, %997 : vector<2x32xf32>
    %1050 = arith.mulf %1046, %1045 : vector<2x32xf32>
    %1051 = arith.addf %1049, %1050 : vector<2x32xf32>
    %1052 = math.tanh %1051 : vector<2x32xf32>
    %1053 = arith.mulf %1048, %1052 : vector<2x32xf32>
    %1054 = arith.index_cast %c6_i32_342 : i32 to index
    %c0_351 = arith.constant 0 : index
    %c0_352 = arith.constant 0 : index
    %1055 = vector.load %arg12[%1054, %c0_351, %c0_352] : memref<8x2x32xf32, #tpu.memory_space<vmem>>, vector<1x2x32xf32>
    %1056 = vector.shape_cast %1055 : vector<1x2x32xf32> to vector<2x32xf32>
    %1057 = vector.shape_cast %1037 : vector<2x32xf32> to vector<1x2x32xf32>
    tpu.vector_store %arg12[%1054, %c0_351, %c0_352], %1057 {strides = array<i32>} : memref<8x2x32xf32, #tpu.memory_space<vmem>>, vector<1x2x32xf32>,
    %1058 = arith.index_cast %1008 : i32 to index
    %c0_353 = arith.constant 0 : index
    %c0_354 = arith.constant 0 : index
    %1059 = vector.load %arg13[%1058, %c0_353, %c0_354] : memref<8x2x32xf32, #tpu.memory_space<vmem>>, vector<1x2x32xf32>
    %1060 = vector.shape_cast %1059 : vector<1x2x32xf32> to vector<2x32xf32>
    %1061 = vector.shape_cast %1053 : vector<2x32xf32> to vector<1x2x32xf32>
    tpu.vector_store %arg13[%1058, %c0_353, %c0_354], %1061 {strides = array<i32>} : memref<8x2x32xf32, #tpu.memory_space<vmem>>, vector<1x2x32xf32>,
    %c7_i32_355 = arith.constant 7 : i32
    %c7_i32_356 = arith.constant 7 : i32
    %1062 = arith.subi %c7_i32_356, %c7_i32_355 : i32
    %1063 = tpu.concatenate %1037, %1053 in 0 : vector<2x32xf32>, vector<2x32xf32> -> vector<4x32xf32>
    %1064 = arith.truncf %1063 : vector<4x32xf32> to vector<4x32xbf16>
    %cst_357 = arith.constant dense<0.000000e+00> : vector<4x256xf32>
    %1065 = tpu.matmul %1064, %513, %cst_357 {dimension_numbers = #tpu.dot_dimension_numbers<[1], [0], [0], [1], [0, 0, 1, 1], [], []>} : vector<4x32xbf16>, vector<32x256xbf16>, vector<4x256xf32> -> vector<4x256xf32>
    %1066 = arith.index_cast %c7_i32_355 : i32 to index
    %c0_358 = arith.constant 0 : index
    %c0_359 = arith.constant 0 : index
    %1067 = vector.load %arg10[%1066, %c0_358, %c0_359] : memref<8x2x128xf32, #tpu.memory_space<vmem>>, vector<1x2x128xf32>
    %1068 = vector.shape_cast %1067 : vector<1x2x128xf32> to vector<2x128xf32>
    %1069 = vector.extract_strided_slice %1065 {offsets = [0, 0], sizes = [2, 128], strides = [1, 1]} : vector<4x256xf32> to vector<2x128xf32>
    %1070 = arith.addf %1068, %1069 : vector<2x128xf32>
    %1071 = arith.index_cast %1062 : i32 to index
    %c0_360 = arith.constant 0 : index
    %c0_361 = arith.constant 0 : index
    %1072 = vector.load %arg11[%1071, %c0_360, %c0_361] : memref<8x2x128xf32, #tpu.memory_space<vmem>>, vector<1x2x128xf32>
    %1073 = vector.shape_cast %1072 : vector<1x2x128xf32> to vector<2x128xf32>
    %1074 = vector.extract_strided_slice %1065 {offsets = [2, 128], sizes = [2, 128], strides = [1, 1]} : vector<4x256xf32> to vector<2x128xf32>
    %1075 = arith.addf %1073, %1074 : vector<2x128xf32>
    %1076 = vector.extract_strided_slice %1070 {offsets = [0, 0], sizes = [2, 96], strides = [1, 1]} : vector<2x128xf32> to vector<2x96xf32>
    %1077 = arith.negf %1076 : vector<2x96xf32>
    %1078 = math.exp %1077 : vector<2x96xf32>
    %cst_362 = arith.constant 1.000000e+00 : f32
    %1079 = vector.broadcast %cst_362 : f32 to vector<2x96xf32>
    %1080 = arith.addf %1079, %1078 : vector<2x96xf32>
    %1081 = arith.divf %1079, %1080 : vector<2x96xf32>
    %1082 = vector.extract_strided_slice %1070 {offsets = [0, 96], sizes = [2, 32], strides = [1, 1]} : vector<2x128xf32> to vector<2x32xf32>
    %1083 = math.tanh %1082 : vector<2x32xf32>
    %1084 = vector.extract_strided_slice %1081 {offsets = [0, 0], sizes = [2, 32], strides = [1, 1]} : vector<2x96xf32> to vector<2x32xf32>
    %1085 = vector.extract_strided_slice %1081 {offsets = [0, 32], sizes = [2, 32], strides = [1, 1]} : vector<2x96xf32> to vector<2x32xf32>
    %1086 = vector.extract_strided_slice %1081 {offsets = [0, 64], sizes = [2, 32], strides = [1, 1]} : vector<2x96xf32> to vector<2x32xf32>
    %1087 = arith.mulf %1085, %1035 : vector<2x32xf32>
    %1088 = arith.mulf %1084, %1083 : vector<2x32xf32>
    %1089 = arith.addf %1087, %1088 : vector<2x32xf32>
    %1090 = math.tanh %1089 : vector<2x32xf32>
    %1091 = arith.mulf %1086, %1090 : vector<2x32xf32>
    %1092 = vector.extract_strided_slice %1075 {offsets = [0, 0], sizes = [2, 96], strides = [1, 1]} : vector<2x128xf32> to vector<2x96xf32>
    %1093 = arith.negf %1092 : vector<2x96xf32>
    %1094 = math.exp %1093 : vector<2x96xf32>
    %cst_363 = arith.constant 1.000000e+00 : f32
    %1095 = vector.broadcast %cst_363 : f32 to vector<2x96xf32>
    %1096 = arith.addf %1095, %1094 : vector<2x96xf32>
    %1097 = arith.divf %1095, %1096 : vector<2x96xf32>
    %1098 = vector.extract_strided_slice %1075 {offsets = [0, 96], sizes = [2, 32], strides = [1, 1]} : vector<2x128xf32> to vector<2x32xf32>
    %1099 = math.tanh %1098 : vector<2x32xf32>
    %1100 = vector.extract_strided_slice %1097 {offsets = [0, 0], sizes = [2, 32], strides = [1, 1]} : vector<2x96xf32> to vector<2x32xf32>
    %1101 = vector.extract_strided_slice %1097 {offsets = [0, 32], sizes = [2, 32], strides = [1, 1]} : vector<2x96xf32> to vector<2x32xf32>
    %1102 = vector.extract_strided_slice %1097 {offsets = [0, 64], sizes = [2, 32], strides = [1, 1]} : vector<2x96xf32> to vector<2x32xf32>
    %1103 = arith.mulf %1101, %1051 : vector<2x32xf32>
    %1104 = arith.mulf %1100, %1099 : vector<2x32xf32>
    %1105 = arith.addf %1103, %1104 : vector<2x32xf32>
    %1106 = math.tanh %1105 : vector<2x32xf32>
    %1107 = arith.mulf %1102, %1106 : vector<2x32xf32>
    %1108 = arith.index_cast %c7_i32_355 : i32 to index
    %c0_364 = arith.constant 0 : index
    %c0_365 = arith.constant 0 : index
    %1109 = vector.load %arg12[%1108, %c0_364, %c0_365] : memref<8x2x32xf32, #tpu.memory_space<vmem>>, vector<1x2x32xf32>
    %1110 = vector.shape_cast %1109 : vector<1x2x32xf32> to vector<2x32xf32>
    %1111 = vector.shape_cast %1091 : vector<2x32xf32> to vector<1x2x32xf32>
    tpu.vector_store %arg12[%1108, %c0_364, %c0_365], %1111 {strides = array<i32>} : memref<8x2x32xf32, #tpu.memory_space<vmem>>, vector<1x2x32xf32>,
    %1112 = arith.index_cast %1062 : i32 to index
    %c0_366 = arith.constant 0 : index
    %c0_367 = arith.constant 0 : index
    %1113 = vector.load %arg13[%1112, %c0_366, %c0_367] : memref<8x2x32xf32, #tpu.memory_space<vmem>>, vector<1x2x32xf32>
    %1114 = vector.shape_cast %1113 : vector<1x2x32xf32> to vector<2x32xf32>
    %1115 = vector.shape_cast %1107 : vector<2x32xf32> to vector<1x2x32xf32>
    tpu.vector_store %arg13[%1112, %c0_366, %c0_367], %1115 {strides = array<i32>} : memref<8x2x32xf32, #tpu.memory_space<vmem>>, vector<1x2x32xf32>,
    %c8_i32_368 = arith.constant 8 : i32
    %c0_369 = arith.constant 0 : index
    %c0_370 = arith.constant 0 : index
    %1116 = vector.load %arg7[%c0_369, %c0_370] : memref<128x128xbf16, #tpu.memory_space<vmem>>, vector<128x128xbf16>
    %cst_371 = arith.constant 0.000000e+00 : f32
    %1117 = vector.broadcast %cst_371 : f32 to vector<2x128xf32>
    %c0_372 = arith.constant 0 : index
    %c0_373 = arith.constant 0 : index
    %c0_374 = arith.constant 0 : index
    %1118 = vector.load %arg12[%c0_372, %c0_373, %c0_374] : memref<8x2x32xf32, #tpu.memory_space<vmem>>, vector<1x2x32xf32>
    %1119 = vector.shape_cast %1118 : vector<1x2x32xf32> to vector<2x32xf32>
    %c0_375 = arith.constant 0 : index
    %c0_376 = arith.constant 0 : index
    %c0_377 = arith.constant 0 : index
    %1120 = vector.load %arg13[%c0_375, %c0_376, %c0_377] : memref<8x2x32xf32, #tpu.memory_space<vmem>>, vector<1x2x32xf32>
    %1121 = vector.shape_cast %1120 : vector<1x2x32xf32> to vector<2x32xf32>
    %c7_378 = arith.constant 7 : index
    %c0_379 = arith.constant 0 : index
    %c0_380 = arith.constant 0 : index
    %1122 = vector.load %arg12[%c7_378, %c0_379, %c0_380] : memref<8x2x32xf32, #tpu.memory_space<vmem>>, vector<1x2x32xf32>
    %1123 = vector.shape_cast %1122 : vector<1x2x32xf32> to vector<2x32xf32>
    %c7_381 = arith.constant 7 : index
    %c0_382 = arith.constant 0 : index
    %c0_383 = arith.constant 0 : index
    %1124 = vector.load %arg13[%c7_381, %c0_382, %c0_383] : memref<8x2x32xf32, #tpu.memory_space<vmem>>, vector<1x2x32xf32>
    %1125 = vector.shape_cast %1124 : vector<1x2x32xf32> to vector<2x32xf32>
    %1126 = arith.truncf %1119 : vector<2x32xf32> to vector<2x32xbf16>
    %1127 = vector.extract_strided_slice %1116 {offsets = [0, 0], sizes = [32, 128], strides = [1, 1]} : vector<128x128xbf16> to vector<32x128xbf16>
    %cst_384 = arith.constant dense<0.000000e+00> : vector<2x128xf32>
    %1128 = tpu.matmul %1126, %1127, %cst_384 {dimension_numbers = #tpu.dot_dimension_numbers<[1], [0], [0], [1], [0, 0, 1, 1], [], []>} : vector<2x32xbf16>, vector<32x128xbf16>, vector<2x128xf32> -> vector<2x128xf32>
    %1129 = arith.addf %1117, %1128 : vector<2x128xf32>
    %1130 = arith.truncf %1121 : vector<2x32xf32> to vector<2x32xbf16>
    %1131 = vector.extract_strided_slice %1116 {offsets = [32, 0], sizes = [32, 128], strides = [1, 1]} : vector<128x128xbf16> to vector<32x128xbf16>
    %cst_385 = arith.constant dense<0.000000e+00> : vector<2x128xf32>
    %1132 = tpu.matmul %1130, %1131, %cst_385 {dimension_numbers = #tpu.dot_dimension_numbers<[1], [0], [0], [1], [0, 0, 1, 1], [], []>} : vector<2x32xbf16>, vector<32x128xbf16>, vector<2x128xf32> -> vector<2x128xf32>
    %1133 = arith.addf %1129, %1132 : vector<2x128xf32>
    %1134 = arith.truncf %1123 : vector<2x32xf32> to vector<2x32xbf16>
    %1135 = vector.extract_strided_slice %1116 {offsets = [64, 0], sizes = [32, 128], strides = [1, 1]} : vector<128x128xbf16> to vector<32x128xbf16>
    %cst_386 = arith.constant dense<0.000000e+00> : vector<2x128xf32>
    %1136 = tpu.matmul %1134, %1135, %cst_386 {dimension_numbers = #tpu.dot_dimension_numbers<[1], [0], [0], [1], [0, 0, 1, 1], [], []>} : vector<2x32xbf16>, vector<32x128xbf16>, vector<2x128xf32> -> vector<2x128xf32>
    %1137 = arith.addf %1133, %1136 : vector<2x128xf32>
    %1138 = arith.truncf %1125 : vector<2x32xf32> to vector<2x32xbf16>
    %1139 = vector.extract_strided_slice %1116 {offsets = [96, 0], sizes = [32, 128], strides = [1, 1]} : vector<128x128xbf16> to vector<32x128xbf16>
    %cst_387 = arith.constant dense<0.000000e+00> : vector<2x128xf32>
    %1140 = tpu.matmul %1138, %1139, %cst_387 {dimension_numbers = #tpu.dot_dimension_numbers<[1], [0], [0], [1], [0, 0, 1, 1], [], []>} : vector<2x32xbf16>, vector<32x128xbf16>, vector<2x128xf32> -> vector<2x128xf32>
    %1141 = arith.addf %1137, %1140 : vector<2x128xf32>
    %1142 = vector.extract_strided_slice %1141 {offsets = [0, 0], sizes = [2, 2], strides = [1, 1]} : vector<2x128xf32> to vector<2x2xf32>
    %c0_388 = arith.constant 0 : index
    %c0_389 = arith.constant 0 : index
    %1143 = vector.load %arg8[%c0_388, %c0_389] : memref<1x2xf32, #tpu.memory_space<vmem>>, vector<1x2xf32>
    %1144 = vector.broadcast %1143 : vector<1x2xf32> to vector<2x2xf32>
    %1145 = arith.addf %1142, %1144 : vector<2x2xf32>
    %c0_390 = arith.constant 0 : index
    %c0_391 = arith.constant 0 : index
    %1146 = vector.load %arg9[%c0_390, %c0_391] : memref<2x2xf32, #tpu.memory_space<vmem>>, vector<2x2xf32>
    tpu.vector_store %arg9[%c0_390, %c0_391], %1145 {strides = array<i32>} : memref<2x2xf32, #tpu.memory_space<vmem>>, vector<2x2xf32>,
    return
  }
}

</mosaic_0001>

<bundles_post_ra>
// kernel: birnn_forward.1
= control target key start
LH: loop header
LB: loop body
LE: loop exit
PB: predicated region body
PF: predicated region fallthrough
CT: control target
= control target key end

     0   :  { %14 = vsyncpa [#allocation7], 0  ;;  %s4440_s0 = inlined_call_operand.vmem [shape: bf16[16,32], index: 0, kind: input, shape index: {}]   ;;  %s4441_s1 = inlined_call_operand.hbm [shape: bf16[32,256], index: 1, kind: input, shape index: {}]   ;;  %s4442_s2 = inlined_call_operand.hbm [shape: bf16[32,256], index: 2, kind: input, shape index: {}]   ;;  %s4443_s3 = inlined_call_operand.vmem [shape: f32[1,256], index: 3, kind: input, shape index: {}]   ;;  %s4444_s4 = inlined_call_operand.vmem [shape: bf16[64,256], index: 4, kind: input, shape index: {}]   ;;  %s4445_s5 = inlined_call_operand.hbm [shape: bf16[32,256], index: 5, kind: input, shape index: {}]   ;;  %s4446_s6 = inlined_call_operand.vmem [shape: f32[1,256], index: 6, kind: input, shape index: {}]   ;;  %s4447_s7 = inlined_call_operand.vmem [shape: bf16[128,128], index: 7, kind: input, shape index: {}]   ;;  %s4448_s8 = inlined_call_operand.vmem [shape: f32[1,2], index: 8, kind: input, shape index: {}]   ;;  %s4449_s9 = inlined_call_operand.hbm [shape: f32[2,2], index: 9, kind: output, shape index: {}]  }
   0x1   :  { %15 = vsyncpa [#allocation10], 0 }
   0x2   :  { %16 = vsyncpa [#allocation8], 0  ;;  %s36_s11 = sshll.u32 %s4442_s2, 4  ;;  %s3616_s12 = smov [#allocation9]   ;;  %s37_s11 = int_to_ptr.hbm [resolvable:$true] %s36_s11 }
   0x3   :  { %s38_s13 = sshll.u32 %s3616_s12, 4  ;;  %s23_s16 = sshll.u32 %s4441_s1, 4  ;;  %s39_s13 = int_to_ptr.vmem [resolvable:$true] %s38_s13  ;;  %s24_s16 = int_to_ptr.hbm [resolvable:$true] %s23_s16 }
   0x4   :  { %s3617_s17 = smov 128   ;;  %s3618_s18 = smov 8  }
   0x5   :  { %44 = dma.hbm_to_vmem [thread:$0]  %s37_s11, 512, %s39_s13, [#allocation10], %s3617_s17, %s3617_s17, %s3618_s18  }
   0x6   :  { %s3619_s19 = smov [#allocation6]   ;;  %s53_s23 = sshll.u32 %s4445_s5, 4  ;;  %s54_s23 = int_to_ptr.hbm [resolvable:$true] %s53_s23 }
   0x7   :  { %s25_s20 = sshll.u32 %s3619_s19, 4  ;;  %s3620_s2 = smov [#allocation11]   ;;  %s26_s20 = int_to_ptr.vmem [resolvable:$true] %s25_s20 }
   0x8   :  { %31 = dma.hbm_to_vmem [thread:$0]  %s24_s16, 512, %s26_s20, [#allocation7], %s3617_s17, %s3617_s17, %s3618_s18  }
   0x9   :  { %s55_s24 = sshll.u32 %s3620_s2, 4  ;;  %s56_s24 = int_to_ptr.vmem [resolvable:$true] %s55_s24 }
   0xa   :  { %61 = dma.hbm_to_vmem [thread:$0]  %s54_s23, 512, %s56_s24, [#allocation10], %s3617_s17, %s3617_s17, %s3618_s18  }
   0xb   :  { %3610 = dma.done.wait [#allocation7], 512  }
   0xc   :  { %3611 = vsyncadd [#allocation7], 4294966784 }
   0xd   :  { %3612 = dma.done.wait [#allocation10], 1024  }
   0xe   :  { %3613 = vsyncadd [#allocation10], 4294966272  ;;  %v3221_v0 = vld [vmem:[#allocation6 + $0x14] sm:$0xf]  ;;  %v3021_v1 = vld [vmem:[#allocation6 + $0x18] sm:$0xf0] }
   0xf   :  { %v3225_v2 = vld [vmem:[#allocation9 + $0x14] sm:$0xf]  ;;  %v3024_v3 = vor.u32 %v3221_v0, %v3021_v1  ;;  %v3039_v4 = vld [vmem:[#allocation9 + $0x18] sm:$0xf0]  ;;  %v3019_v5 = vld [vmem:[#allocation6 + $0x10] sm:$0xf] }
  0x10   :  { %v3222_v6 = vld [vmem:[#allocation6 + $0x14] sm:$0xf0]  ;;  %v3684_v7 = vor.u32 %v3225_v2, %v3039_v4  ;;  %v3219_v9 = vld [vmem:[#allocation6 + $0x4] sm:$0xf]  ;;  %v3013_v10 = vld [vmem:[#allocation6 + $0x8] sm:$0xf0] }
  0x11   :  { %v3020_v8 = vor.u32 %v3222_v6, %v3019_v5  ;;  %v3223_v11 = vld [vmem:[#allocation9 + $0x4] sm:$0xf]  ;;  %146 = vmatpush.bf16.msra.mxu1 %v3024_v3  ;;  %v3016_v12 = vor.u32 %v3219_v9, %v3013_v10  ;;  %v3031_v13 = vld [vmem:[#allocation9 + $0x8] sm:$0xf0]  ;;  %v3011_v14 = vld [vmem:[#allocation6] sm:$0xf] }
  0x12   :  { %v3220_v15 = vld [vmem:[#allocation6 + $0x4] sm:$0xf0]  ;;  %227 = vmatpush.bf16.msra.mxu3 %v3684_v7  ;;  %v3687_v16 = vor.u32 %v3223_v11, %v3031_v13  ;;  %v3037_v18 = vld [vmem:[#allocation9 + $0x10] sm:$0xf]  ;;  %v3226_v19 = vld [vmem:[#allocation9 + $0x14] sm:$0xf0] }
  0x13   :  { %132 = vmatpush.bf16.msra.mxu0 %v3020_v8  ;;  %v3012_v17 = vor.u32 %v3220_v15, %v3011_v14  ;;  %v3689_v20 = vor.u32 %v3226_v19, %v3037_v18  ;;  %v3029_v21 = vld [vmem:[#allocation9] sm:$0xf]  ;;  %v3224_v22 = vld [vmem:[#allocation9 + $0x4] sm:$0xf0]  ;;  %vm122_vm0 = vcmask 261120   ;;  %v3621_v25 = vmov 0.0|0.0  }
  0x14   :  { %v3227_v23 = vld [vmem:[%s4440_s0] sm:$0xff]  ;;  %v3696_v24 = vor.u32 %v3224_v22, %v3029_v21  ;;  %vm329_vm9 = vcmask 1041408   ;;  %s3623_s26 = smov 64   ;;  %s3624_s25 = smov [#allocation12]  }
  0x15   :  { %147 = vmatpush.bf16.msra.mxu1 %v3016_v12  ;;  %214 = vmatpush.bf16.msra.mxu2 %v3689_v20  ;;  %v89_v26 = vld [vmem:[%s4443_s3] sm:$0x3]  ;;  %s3622_s3 = smov 32   ;;  %s2992_s27 = sshll.u32 %s3624_s25, 4  ;;  %s2993_s27 = int_to_ptr.vmem [resolvable:$true] %s2992_s27 }
  0x16   :  { %228 = vmatpush.bf16.msra.mxu3 %v3687_v16  ;;  %v94_v27 = vperm.slane %v89_v26, 1  ;;  %v93_v28 = vperm.slane %v89_v26, 0  ;;  %s2994_s30 = sshll.u32 %s4449_s9, 4  ;;  %s2995_s30 = int_to_ptr.hbm [resolvable:$true] %s2994_s30 }
  0x17   :  { %133 = vmatpush.bf16.msra.mxu0 %v3012_v17 }
  0x18   :  { %3026 = vmatmul.msk.bf16.vlgmr.msra.gmra.mxu1 %vm122_vm0, %v3227_v23 }
  0x19   :  { %357 = vmatpush.bf16.msrb.mxu1 %v3684_v7  ;;  %229 = vmatmul.bf16.vlgmr.msra.gmra.mxu3 %v3621_v25 }
  0x1a   :  { %486 = vmatpush.bf16.msrb.mxu3 %v3684_v7  ;;  %3025 = vmatmul.msk.bf16.vlgmr.msra.gmra.mxu0 %vm122_vm0, %v3227_v23 }
  0x1b   :  { %344 = vmatpush.bf16.msrb.mxu0 %v3689_v20  ;;  %215 = vmatpush.bf16.msra.mxu2 %v3696_v24 }
  0x1d   :  { %358 = vmatpush.bf16.msrb.mxu1 %v3687_v16 }
  0x1e   :  { %487 = vmatpush.bf16.msrb.mxu3 %v3687_v16  ;;  %216 = vmatmul.bf16.vlgmr.msra.gmra.mxu2 %v3621_v25 }
  0x1f   :  { %345 = vmatpush.bf16.msrb.mxu0 %v3696_v24  ;;  %473 = vmatpush.bf16.msrb.mxu2 %v3689_v20 }
  0x21   :  { %615 = vmatpush.bf16.msra.mxu1 %v3684_v7 }
  0x22   :  { %744 = vmatpush.bf16.msra.mxu3 %v3684_v7 }
  0x23   :  { %602 = vmatpush.bf16.msra.mxu0 %v3689_v20  ;;  %474 = vmatpush.bf16.msrb.mxu2 %v3696_v24 }
  0x25   :  { %616 = vmatpush.bf16.msra.mxu1 %v3687_v16 }
  0x26   :  { %745 = vmatpush.bf16.msra.mxu3 %v3687_v16 }
  0x27   :  { %731 = vmatpush.bf16.msra.mxu2 %v3689_v20  ;;  %603 = vmatpush.bf16.msra.mxu0 %v3696_v24 }
  0x2b   :  { %732 = vmatpush.bf16.msra.mxu2 %v3696_v24 }
  0x95   :  { %v149_v29 = vpop.f32.mrf.mxu1 }
  0x96   :  { %v150_v30 = vadd.f32 %v149_v29, %v94_v27 }
  0x97   :  { %v135_v31 = vpop.f32.mrf.mxu0 }
  0x98   :  { %v136_v32 = vadd.f32 %v135_v31, %v93_v28  ;;  %155 = vst [vmem:[#allocation3] sm:$0xf] %v150_v30  }
  0x99   :  { %163 = vst [vmem:[#allocation3] sm:$0xf0] %v150_v30  }
  0x9a   :  { %154 = vst [vmem:[#allocation2] sm:$0xf] %v136_v32  }
  0x9b   :  { %161 = vst [vmem:[#allocation2] sm:$0xf0] %v136_v32  }
  0x9c   :  { %v230_v33 = vpop.f32.mrf.mxu3 }
  0x9d   :  { %v151_v34 = vpop.f32.mrf.mxu1  ;;  %v238_v40 = vrot.slane %v230_v33, 2 }
  0x9e   :  { %v152_v35 = vadd.f32 %v151_v34, %v94_v27 }
  0x9f   :  { %v137_v36 = vpop.f32.mrf.mxu0 }
  0xa0   :  { %v138_v37 = vadd.f32 %v137_v36, %v93_v28  ;;  %171 = vst [vmem:[#allocation3 + $0x8] sm:$0xf] %v152_v35  }
  0xa1   :  { %v217_v38 = vpop.f32.mrf.mxu2  ;;  %179 = vst [vmem:[#allocation3 + $0x8] sm:$0xf0] %v152_v35   ;;  %v234_v44 = vld [vmem:[#allocation2] sm:$0x3]  ;;  %v364_v36 = vld [vmem:[#allocation2 + $0x2] sm:$0x3] }
  0xa2   :  { %169 = vst [vmem:[#allocation2 + $0x8] sm:$0xf] %v138_v37   ;;  %v235_v45 = vadd.f32 %v234_v44, %v217_v38 }
  0xa3   :  { %177 = vst [vmem:[#allocation2 + $0x8] sm:$0xf0] %v138_v37  }
  0xa4   :  { %v232_v39 = vpop.f32.mrf.mxu3  ;;  %v3043_v49 = vmul.f32 -1.442695, %v235_v45 }
  0xa8   :  { %v236_v41 = vld [vmem:[#allocation3 + $0xe] sm:$0x3] }
  0xa9   :  { %v219_v42 = vpop.f32.mrf.mxu2  ;;  %v240_v43 = vadd.f32 %v238_v40, %v236_v41  ;;  %v366_v40 = vld [vmem:[#allocation3 + $0xc] sm:$0x3] }
  0xab   :  { %3258 = vtanh.f32 %v240_v43  ;;  %v3044_v48 = vmul.f32 -1.442695, %v240_v43 }
  0xac   :  { %3260 = vtanh.f32 %v235_v45 }
  0xad   :  { %3262 = vpow2.f32 %v3044_v48 }
  0xae   :  { %3264 = vpow2.f32 %v3043_v49 }
  0xb1   :  { %v3259_v46 = vpop.eup %3258 }
  0xb2   :  { %300 = vrot.lane.b32.xlu0 %v3259_v46, %s3622_s3  ;;  %v3261_v47 = vpop.eup %3260 }
  0xb3   :  { %v3263_v50 = vpop.eup %3262 }
  0xb4   :  { %v281_v51 = vadd.f32 1.0, %v3263_v50  ;;  %v3265_v52 = vpop.eup %3264 }
  0xb5   :  { %v244_v53 = vadd.f32 1.0, %v3265_v52 }
  0xb6   :  { %3266 = vrcp.f32 %v281_v51  ;;  %v293_v62 = vand.u32 2147483648, %v281_v51  ;;  %vm287_vm2 = vweird.f32 %v281_v51  ;;  %v291_v63 = vand.u32 2147483647, %v281_v51 }
  0xb7   :  { %3268 = vrcp.f32 %v244_v53  ;;  %vm250_vm5 = vweird.f32 %v244_v53  ;;  %v256_v5 = vand.u32 2147483648, %v244_v53  ;;  %v254_v9 = vand.u32 2147483647, %v244_v53 }
  0xb8   :  { %v294_v2 = vor.u32 1.1754944e-38, %v293_v62  ;;  %vm292_vm4 = vcmp.eq.f32.partialorder %v291_v63, 8.507059e+37 }
  0xb9   :  { %v257_v10 = vor.u32 1.1754944e-38, %v256_v5  ;;  %vm255_vm8 = vcmp.eq.f32.partialorder %v254_v9, 8.507059e+37 }
  0xba   :  { %263 = vrot.lane.b32.xlu0 %v3261_v47, %s3622_s3 }
  0xbc   :  { %v3267_v54 = vpop.eup %3266 }
  0xbd   :  { %v283_v55 = vmul.f32 %v3267_v54, %v281_v51  ;;  %v3269_v57 = vpop.eup %3268  ;;  %vm288_vm1 = vweird.f32 %v3267_v54 }
  0xbe   :  { %v246_v59 = vmul.f32 %v3269_v57, %v244_v53  ;;  %vm289_vm3 = vmor %vm287_vm2, %vm288_vm1  ;;  %vm251_vm6 = vweird.f32 %v3269_v57 }
  0xbf   :  { %v284_v56 = vsub.f32 1.0, %v283_v55  ;;  %vm252_vm7 = vmor %vm250_vm5, %vm251_vm6 }
  0xc0   :  { %v247_v61 = vsub.f32 1.0, %v246_v59 }
  0xc1   :  { %v285_v58 = vmul.f32 %v3267_v54, %v284_v56 }
  0xc2   :  { %v248_v1 = vmul.f32 %v3269_v57, %v247_v61 }
  0xc3   :  { %v286_v60 = vadd.f32 %v3267_v54, %v285_v58 }
  0xc4   :  { %v249_v8 = vadd.f32 %v3269_v57, %v248_v1 }
  0xc5   :  { %v290_v0 = vsel %vm289_vm3, %v3267_v54, %v286_v60 }
  0xc6   :  { %v295_v4 = vsel %vm292_vm4, %v294_v2, %v290_v0  ;;  %v253_v11 = vsel %vm252_vm7, %v3269_v57, %v249_v8 }
  0xc7   :  { %v258_v12 = vsel %vm255_vm8, %v257_v10, %v253_v11  ;;  %v298_v15 = vmul.f32 0.0, %v295_v4 }
  0xc8   :  { %v261_v19 = vmul.f32 0.0, %v258_v12 }
 0x124   :  { %v301_v3 = vpop.permute.xlu0 %300 }
 0x125   :  { %v303_v6 = vmul.f32 %v301_v3, %v295_v4 }
 0x127   :  { %305 = vrot.lane.b32.xlu1 %v303_v6, %s3622_s3 }
 0x12c   :  { %v264_v13 = vpop.permute.xlu0 %263 }
 0x12d   :  { %v266_v14 = vmul.f32 %v264_v13, %v258_v12 }
 0x12f   :  { %268 = vrot.lane.b32.xlu1 %v266_v14, %s3622_s3 }
 0x199   :  { %v306_v17 = vpop.permute.xlu1 %305 }
 0x19a   :  { %v3726_v18 = vadd.f32 %v306_v17, %v298_v15 }
 0x19c   :  { %3270 = vtanh.f32 %v3726_v18 }
 0x1a1   :  { %v269_v21 = vpop.permute.xlu1 %268 }
 0x1a2   :  { %v3271_v22 = vpop.eup %3270  ;;  %v3729_v23 = vadd.f32 %v269_v21, %v261_v19 }
 0x1a3   :  { %311 = vrot.lane.b32.xlu2 %v3271_v22, %s3622_s3 }
 0x1a4   :  { %3272 = vtanh.f32 %v3729_v23 }
 0x1aa   :  { %v3273_v26 = vpop.eup %3272 }
 0x1ab   :  { %274 = vrot.lane.b32.xlu2 %v3273_v26, %s3622_s3 }
 0x1fd   :  { %v312_v27 = vpop.permute.xlu2 %311 }
 0x1fe   :  { %v3734_v28 = vmul.f32 %v312_v27, %v295_v4 }
 0x200   :  { %v327_v30 = vrot.slane %v3734_v28, 6 }
 0x205   :  { %v275_v29 = vpop.permute.xlu2 %274 }
 0x206   :  { %v3737_v31 = vmul.f32 %v275_v29, %v258_v12 }
 0x208   :  { %v330_v32 = vsel %vm329_vm9, %v3737_v31, %v327_v30 }
 0x209   :  { %v331_v33 = vpack.c.bf16 %v330_v32, %v330_v32 }
 0x20b   :  { %333 = vrot.lane.b32.xlu0 %v331_v33, %s3623_s26 }
 0x27d   :  { %v334_v34 = vpop.permute.xlu0 %333 }
 0x27e   :  { %3045 = vmatmul.msk.bf16.vlgmr.msrb.gmra.mxu0 %vm122_vm0, %v334_v34  ;;  %3046 = vmatmul.msk.bf16.vlgmr.msrb.gmra.mxu1 %vm122_vm0, %v334_v34 }
 0x27f   :  { %873 = vmatpush.bf16.msrb.mxu1 %v3684_v7  ;;  %860 = vmatpush.bf16.msrb.mxu0 %v3689_v20 }
 0x283   :  { %874 = vmatpush.bf16.msrb.mxu1 %v3687_v16  ;;  %861 = vmatpush.bf16.msrb.mxu0 %v3696_v24 }
 0x2fb   :  { %v347_v35 = vpop.f32.mrf.mxu0  ;;  %v360_v37 = vpop.f32.mrf.mxu1 }
 0x2fc   :  { %v365_v38 = vadd.f32 %v364_v36, %v347_v35  ;;  %v368_v39 = vrot.slane %v360_v37, 2  ;;  %v493_v36 = vld [vmem:[#allocation2 + $0x4] sm:$0x3] }
 0x2fe   :  { %3274 = vtanh.f32 %v365_v38  ;;  %v370_v41 = vadd.f32 %v368_v39, %v366_v40  ;;  %v3047_v46 = vmul.f32 -1.442695, %v365_v38  ;;  %v495_v40 = vld [vmem:[#allocation3 + $0xa] sm:$0x3] }
 0x300   :  { %3276 = vtanh.f32 %v370_v41  ;;  %v3048_v51 = vmul.f32 -1.442695, %v370_v41 }
 0x301   :  { %3278 = vpow2.f32 %v3047_v46 }
 0x303   :  { %v349_v42 = vpop.f32.mrf.mxu0  ;;  %v362_v43 = vpop.f32.mrf.mxu1 }
 0x304   :  { %v3275_v44 = vpop.eup %3274 }
 0x305   :  { %393 = vrot.lane.b32.xlu2 %v3275_v44, %s3622_s3 }
 0x306   :  { %v3277_v45 = vpop.eup %3276 }
 0x307   :  { %430 = vrot.lane.b32.xlu1 %v3277_v45, %s3622_s3  ;;  %v3279_v47 = vpop.eup %3278 }
 0x308   :  { %v374_v48 = vadd.f32 1.0, %v3279_v47 }
 0x30a   :  { %3280 = vrcp.f32 %v374_v48  ;;  %v386_v56 = vand.u32 2147483648, %v374_v48  ;;  %vm380_vm11 = vweird.f32 %v374_v48  ;;  %v384_v58 = vand.u32 2147483647, %v374_v48 }
 0x30b   :  { %3282 = vpow2.f32 %v3048_v51 }
 0x30c   :  { %v387_v60 = vor.u32 1.1754944e-38, %v386_v56  ;;  %vm385_vm13 = vcmp.eq.f32.partialorder %v384_v58, 8.507059e+37 }
 0x310   :  { %v3281_v49 = vpop.eup %3280 }
 0x311   :  { %v376_v50 = vmul.f32 %v3281_v49, %v374_v48  ;;  %v3283_v54 = vpop.eup %3282  ;;  %vm381_vm10 = vweird.f32 %v3281_v49 }
 0x312   :  { %v411_v57 = vadd.f32 1.0, %v3283_v54  ;;  %vm382_vm12 = vmor %vm380_vm11, %vm381_vm10 }
 0x313   :  { %v377_v52 = vsub.f32 1.0, %v376_v50 }
 0x314   :  { %3284 = vrcp.f32 %v411_v57  ;;  %v423_v5 = vand.u32 2147483648, %v411_v57  ;;  %vm417_vm15 = vweird.f32 %v411_v57  ;;  %v421_v6 = vand.u32 2147483647, %v411_v57 }
 0x315   :  { %v378_v53 = vmul.f32 %v3281_v49, %v377_v52 }
 0x316   :  { %v424_v9 = vor.u32 1.1754944e-38, %v423_v5  ;;  %vm422_vm2 = vcmp.eq.f32.partialorder %v421_v6, 8.507059e+37 }
 0x317   :  { %v379_v55 = vadd.f32 %v3281_v49, %v378_v53 }
 0x319   :  { %v383_v59 = vsel %vm382_vm12, %v3281_v49, %v379_v55 }
 0x31a   :  { %v388_v62 = vsel %vm385_vm13, %v387_v60, %v383_v59  ;;  %v3285_v0 = vpop.eup %3284 }
 0x31b   :  { %v413_v1 = vmul.f32 %v3285_v0, %v411_v57  ;;  %vm418_vm14 = vweird.f32 %v3285_v0  ;;  %v391_v13 = vmul.f32 %v388_v62, %v3729_v23 }
 0x31c   :  { %vm419_vm1 = vmor %vm417_vm15, %vm418_vm14 }
 0x31d   :  { %v414_v2 = vsub.f32 1.0, %v413_v1 }
 0x31f   :  { %v415_v3 = vmul.f32 %v3285_v0, %v414_v2 }
 0x321   :  { %v416_v4 = vadd.f32 %v3285_v0, %v415_v3 }
 0x323   :  { %v420_v8 = vsel %vm419_vm1, %v3285_v0, %v416_v4 }
 0x324   :  { %v425_v11 = vsel %vm422_vm2, %v424_v9, %v420_v8 }
 0x325   :  { %v428_v19 = vmul.f32 %v425_v11, %v3726_v18 }
 0x35f   :  { %v394_v61 = vpop.permute.xlu2 %393 }
 0x360   :  { %v396_v63 = vmul.f32 %v394_v61, %v388_v62 }
 0x362   :  { %398 = vrot.lane.b32.xlu1 %v396_v63, %s3622_s3 }
 0x379   :  { %v431_v10 = vpop.permute.xlu1 %430 }
 0x37a   :  { %v433_v12 = vmul.f32 %v431_v10, %v425_v11 }
 0x37c   :  { %435 = vrot.lane.b32.xlu0 %v433_v12, %s3622_s3 }
 0x3d4   :  { %v399_v14 = vpop.permute.xlu1 %398 }
 0x3d5   :  { %v3753_v15 = vadd.f32 %v399_v14, %v391_v13 }
 0x3d7   :  { %3286 = vtanh.f32 %v3753_v15 }
 0x3dd   :  { %v3287_v17 = vpop.eup %3286 }
 0x3de   :  { %404 = vrot.lane.b32.xlu0 %v3287_v17, %s3622_s3 }
 0x3ee   :  { %v436_v21 = vpop.permute.xlu0 %435 }
 0x3ef   :  { %v3758_v22 = vadd.f32 %v436_v21, %v428_v19 }
 0x3f1   :  { %3288 = vtanh.f32 %v3758_v22 }
 0x3f7   :  { %v3289_v26 = vpop.eup %3288 }
 0x3f8   :  { %441 = vrot.lane.b32.xlu2 %v3289_v26, %s3622_s3 }
 0x450   :  { %v405_v27 = vpop.permute.xlu0 %404 }
 0x451   :  { %v3764_v30 = vmul.f32 %v405_v27, %v388_v62 }
 0x452   :  { %v442_v23 = vpop.permute.xlu2 %441 }
 0x453   :  { %v3762_v29 = vmul.f32 %v442_v23, %v425_v11 }
 0x455   :  { %v457_v32 = vrot.slane %v3762_v29, 6 }
 0x457   :  { %v459_v33 = vsel %vm329_vm9, %v3764_v30, %v457_v32 }
 0x458   :  { %v460_v18 = vpack.c.bf16 %v459_v33, %v459_v33 }
 0x45a   :  { %462 = vrot.lane.b32.xlu1 %v460_v18, %s3623_s26 }
 0x4cc   :  { %v463_v34 = vpop.permute.xlu1 %462 }
 0x4cd   :  { %3049 = vmatmul.msk.bf16.vlgmr.msrb.gmra.mxu2 %vm122_vm0, %v463_v34  ;;  %3050 = vmatmul.msk.bf16.vlgmr.msrb.gmra.mxu3 %vm122_vm0, %v463_v34 }
 0x4ce   :  { %1002 = vmatpush.bf16.msrb.mxu3 %v3684_v7  ;;  %989 = vmatpush.bf16.msrb.mxu2 %v3689_v20 }
 0x4d2   :  { %1003 = vmatpush.bf16.msrb.mxu3 %v3687_v16  ;;  %990 = vmatpush.bf16.msrb.mxu2 %v3696_v24 }
 0x550   :  { %v476_v35 = vpop.f32.mrf.mxu2  ;;  %v489_v37 = vpop.f32.mrf.mxu3 }
 0x551   :  { %v494_v38 = vadd.f32 %v493_v36, %v476_v35  ;;  %v497_v39 = vrot.slane %v489_v37, 2 }
 0x553   :  { %3290 = vtanh.f32 %v494_v38  ;;  %v499_v41 = vadd.f32 %v497_v39, %v495_v40  ;;  %v3051_v49 = vmul.f32 -1.442695, %v494_v38  ;;  %v622_v38 = vld [vmem:[#allocation2 + $0x6] sm:$0x3] }
 0x555   :  { %3292 = vtanh.f32 %v499_v41  ;;  %v3052_v46 = vmul.f32 -1.442695, %v499_v41 }
 0x557   :  { %3294 = vpow2.f32 %v3052_v46 }
 0x558   :  { %v478_v42 = vpop.f32.mrf.mxu2  ;;  %v491_v43 = vpop.f32.mrf.mxu3 }
 0x559   :  { %v3291_v44 = vpop.eup %3290  ;;  %v624_v42 = vld [vmem:[#allocation3 + $0x8] sm:$0x3] }
 0x55a   :  { %522 = vrot.lane.b32.xlu0 %v3291_v44, %s3622_s3 }
 0x55b   :  { %v3293_v45 = vpop.eup %3292 }
 0x55c   :  { %559 = vrot.lane.b32.xlu2 %v3293_v45, %s3622_s3 }
 0x55d   :  { %v3295_v47 = vpop.eup %3294 }
 0x55e   :  { %v540_v48 = vadd.f32 1.0, %v3295_v47 }
 0x560   :  { %3296 = vrcp.f32 %v540_v48  ;;  %v552_v57 = vand.u32 2147483648, %v540_v48  ;;  %vm546_vm4 = vweird.f32 %v540_v48  ;;  %v550_v58 = vand.u32 2147483647, %v540_v48 }
 0x561   :  { %3298 = vpow2.f32 %v3051_v49 }
 0x562   :  { %v553_v60 = vor.u32 1.1754944e-38, %v552_v57  ;;  %vm551_vm6 = vcmp.eq.f32.partialorder %v550_v58, 8.507059e+37 }
 0x566   :  { %v3297_v50 = vpop.eup %3296 }
 0x567   :  { %v542_v51 = vmul.f32 %v3297_v50, %v540_v48  ;;  %v3299_v53 = vpop.eup %3298  ;;  %vm547_vm3 = vweird.f32 %v3297_v50 }
 0x568   :  { %v503_v54 = vadd.f32 1.0, %v3299_v53  ;;  %vm548_vm5 = vmor %vm546_vm4, %vm547_vm3 }
 0x569   :  { %v543_v52 = vsub.f32 1.0, %v542_v51 }
 0x56a   :  { %3300 = vrcp.f32 %v503_v54  ;;  %v515_v5 = vand.u32 2147483648, %v503_v54  ;;  %vm509_vm8 = vweird.f32 %v503_v54  ;;  %v513_v6 = vand.u32 2147483647, %v503_v54 }
 0x56b   :  { %v544_v55 = vmul.f32 %v3297_v50, %v543_v52 }
 0x56c   :  { %v516_v9 = vor.u32 1.1754944e-38, %v515_v5  ;;  %vm514_vm11 = vcmp.eq.f32.partialorder %v513_v6, 8.507059e+37 }
 0x56d   :  { %v545_v56 = vadd.f32 %v3297_v50, %v544_v55 }
 0x56f   :  { %v549_v59 = vsel %vm548_vm5, %v3297_v50, %v545_v56 }
 0x570   :  { %v3301_v61 = vpop.eup %3300  ;;  %v554_v63 = vsel %vm551_vm6, %v553_v60, %v549_v59 }
 0x571   :  { %v505_v1 = vmul.f32 %v3301_v61, %v503_v54  ;;  %vm510_vm7 = vweird.f32 %v3301_v61  ;;  %v557_v19 = vmul.f32 %v554_v63, %v3758_v22 }
 0x572   :  { %vm511_vm10 = vmor %vm509_vm8, %vm510_vm7 }
 0x573   :  { %v506_v2 = vsub.f32 1.0, %v505_v1 }
 0x575   :  { %v507_v3 = vmul.f32 %v3301_v61, %v506_v2 }
 0x577   :  { %v508_v4 = vadd.f32 %v3301_v61, %v507_v3 }
 0x579   :  { %v512_v8 = vsel %vm511_vm10, %v3301_v61, %v508_v4 }
 0x57a   :  { %v517_v11 = vsel %vm514_vm11, %v516_v9, %v512_v8 }
 0x57b   :  { %v520_v13 = vmul.f32 %v517_v11, %v3753_v15 }
 0x5b6   :  { %v560_v62 = vpop.permute.xlu2 %559 }
 0x5b7   :  { %v562_v0 = vmul.f32 %v560_v62, %v554_v63 }
 0x5b9   :  { %564 = vrot.lane.b32.xlu1 %v562_v0, %s3622_s3 }
 0x5cc   :  { %v523_v10 = vpop.permute.xlu0 %522 }
 0x5cd   :  { %v525_v12 = vmul.f32 %v523_v10, %v517_v11 }
 0x5cf   :  { %527 = vrot.lane.b32.xlu2 %v525_v12, %s3622_s3 }
 0x629   :  { %v528_v14 = vpop.permute.xlu2 %527 }
 0x62a   :  { %v3781_v17 = vadd.f32 %v528_v14, %v520_v13 }
 0x62b   :  { %v565_v21 = vpop.permute.xlu1 %564 }
 0x62c   :  { %3302 = vtanh.f32 %v3781_v17  ;;  %v3785_v26 = vadd.f32 %v565_v21, %v557_v19 }
 0x62e   :  { %3304 = vtanh.f32 %v3785_v26 }
 0x632   :  { %v3303_v27 = vpop.eup %3302 }
 0x633   :  { %533 = vrot.lane.b32.xlu1 %v3303_v27, %s3622_s3 }
 0x634   :  { %v3305_v23 = vpop.eup %3304 }
 0x635   :  { %570 = vrot.lane.b32.xlu0 %v3305_v23, %s3622_s3 }
 0x6a5   :  { %v534_v32 = vpop.permute.xlu1 %533 }
 0x6a6   :  { %v3792_v18 = vmul.f32 %v534_v32, %v517_v11 }
 0x6a7   :  { %v571_v15 = vpop.permute.xlu0 %570 }
 0x6a8   :  { %v3790_v33 = vmul.f32 %v571_v15, %v554_v63 }
 0x6aa   :  { %v586_v22 = vrot.slane %v3790_v33, 6 }
 0x6ac   :  { %v588_v34 = vsel %vm329_vm9, %v3792_v18, %v586_v22 }
 0x6ad   :  { %v589_v35 = vpack.c.bf16 %v588_v34, %v588_v34 }
 0x6af   :  { %591 = vrot.lane.b32.xlu2 %v589_v35, %s3623_s26 }
 0x709   :  { %v592_v36 = vpop.permute.xlu2 %591 }
 0x70a   :  { %3053 = vmatmul.msk.bf16.vlgmr.msra.gmra.mxu0 %vm122_vm0, %v592_v36  ;;  %3054 = vmatmul.msk.bf16.vlgmr.msra.gmra.mxu1 %vm122_vm0, %v592_v36 }
 0x70b   :  { %1131 = vmatpush.bf16.msra.mxu1 %v3684_v7  ;;  %1118 = vmatpush.bf16.msra.mxu0 %v3689_v20 }
 0x70f   :  { %1132 = vmatpush.bf16.msra.mxu1 %v3687_v16  ;;  %1119 = vmatpush.bf16.msra.mxu0 %v3696_v24 }
 0x787   :  { %v605_v37 = vpop.f32.mrf.mxu0  ;;  %v618_v39 = vpop.f32.mrf.mxu1 }
 0x788   :  { %v623_v40 = vadd.f32 %v622_v38, %v605_v37  ;;  %v626_v41 = vrot.slane %v618_v39, 2  ;;  %v751_v38 = vld [vmem:[#allocation2 + $0x8] sm:$0x3] }
 0x78a   :  { %3306 = vtanh.f32 %v623_v40  ;;  %v628_v43 = vadd.f32 %v626_v41, %v624_v42  ;;  %v3055_v16 = vmul.f32 -1.442695, %v623_v40  ;;  %v753_v42 = vld [vmem:[#allocation3 + $0x6] sm:$0x3] }
 0x78c   :  { %3308 = vtanh.f32 %v628_v43  ;;  %v3056_v20 = vmul.f32 -1.442695, %v628_v43 }
 0x78d   :  { %3310 = vpow2.f32 %v3055_v16 }
 0x78e   :  { %3312 = vpow2.f32 %v3056_v20 }
 0x78f   :  { %v607_v44 = vpop.f32.mrf.mxu0  ;;  %v620_v45 = vpop.f32.mrf.mxu1 }
 0x790   :  { %v3307_v46 = vpop.eup %3306 }
 0x791   :  { %651 = vrot.lane.b32.xlu1 %v3307_v46, %s3622_s3 }
 0x792   :  { %v3309_v7 = vpop.eup %3308 }
 0x793   :  { %688 = vrot.lane.b32.xlu0 %v3309_v7, %s3622_s3  ;;  %v3311_v24 = vpop.eup %3310 }
 0x794   :  { %v3313_v47 = vpop.eup %3312  ;;  %v632_v48 = vadd.f32 1.0, %v3311_v24 }
 0x795   :  { %v669_v49 = vadd.f32 1.0, %v3313_v47 }
 0x796   :  { %3314 = vrcp.f32 %v632_v48  ;;  %v644_v59 = vand.u32 2147483648, %v632_v48  ;;  %vm638_vm13 = vweird.f32 %v632_v48  ;;  %v642_v60 = vand.u32 2147483647, %v632_v48 }
 0x797   :  { %3316 = vrcp.f32 %v669_v49  ;;  %v681_v63 = vand.u32 2147483648, %v669_v49  ;;  %vm675_vm1 = vweird.f32 %v669_v49  ;;  %v679_v1 = vand.u32 2147483647, %v669_v49 }
 0x798   :  { %v645_v0 = vor.u32 1.1754944e-38, %v644_v59  ;;  %vm643_vm2 = vcmp.eq.f32.partialorder %v642_v60, 8.507059e+37 }
 0x799   :  { %v682_v6 = vor.u32 1.1754944e-38, %v681_v63  ;;  %vm680_vm4 = vcmp.eq.f32.partialorder %v679_v1, 8.507059e+37 }
 0x79c   :  { %v3315_v50 = vpop.eup %3314 }
 0x79d   :  { %v3317_v51 = vpop.eup %3316  ;;  %v634_v52 = vmul.f32 %v3315_v50, %v632_v48  ;;  %vm639_vm12 = vweird.f32 %v3315_v50 }
 0x79e   :  { %v671_v53 = vmul.f32 %v3317_v51, %v669_v49  ;;  %vm640_vm14 = vmor %vm638_vm13, %vm639_vm12  ;;  %vm676_vm15 = vweird.f32 %v3317_v51 }
 0x79f   :  { %v635_v54 = vsub.f32 1.0, %v634_v52  ;;  %vm677_vm3 = vmor %vm675_vm1, %vm676_vm15 }
 0x7a0   :  { %v672_v55 = vsub.f32 1.0, %v671_v53 }
 0x7a1   :  { %v636_v56 = vmul.f32 %v3315_v50, %v635_v54 }
 0x7a2   :  { %v673_v57 = vmul.f32 %v3317_v51, %v672_v55 }
 0x7a3   :  { %v637_v58 = vadd.f32 %v3315_v50, %v636_v56 }
 0x7a4   :  { %v674_v61 = vadd.f32 %v3317_v51, %v673_v57 }
 0x7a5   :  { %v641_v62 = vsel %vm640_vm14, %v3315_v50, %v637_v58 }
 0x7a6   :  { %v646_v3 = vsel %vm643_vm2, %v645_v0, %v641_v62  ;;  %v678_v4 = vsel %vm677_vm3, %v3317_v51, %v674_v61 }
 0x7a7   :  { %v683_v9 = vsel %vm680_vm4, %v682_v6, %v678_v4  ;;  %v649_v19 = vmul.f32 %v646_v3, %v3781_v17 }
 0x7a8   :  { %v686_v11 = vmul.f32 %v683_v9, %v3785_v26 }
 0x803   :  { %v652_v2 = vpop.permute.xlu1 %651 }
 0x804   :  { %v654_v5 = vmul.f32 %v652_v2, %v646_v3 }
 0x805   :  { %v689_v8 = vpop.permute.xlu0 %688 }
 0x806   :  { %656 = vrot.lane.b32.xlu0 %v654_v5, %s3622_s3  ;;  %v691_v10 = vmul.f32 %v689_v8, %v683_v9 }
 0x808   :  { %693 = vrot.lane.b32.xlu2 %v691_v10, %s3622_s3 }
 0x862   :  { %v694_v12 = vpop.permute.xlu2 %693 }
 0x863   :  { %v3809_v13 = vadd.f32 %v694_v12, %v686_v11 }
 0x865   :  { %3318 = vtanh.f32 %v3809_v13 }
 0x86b   :  { %v3319_v14 = vpop.eup %3318 }
 0x86c   :  { %699 = vrot.lane.b32.xlu1 %v3319_v14, %s3622_s3 }
 0x878   :  { %v657_v21 = vpop.permute.xlu0 %656 }
 0x879   :  { %v3814_v27 = vadd.f32 %v657_v21, %v649_v19 }
 0x87b   :  { %3320 = vtanh.f32 %v3814_v27 }
 0x881   :  { %v3321_v23 = vpop.eup %3320 }
 0x882   :  { %662 = vrot.lane.b32.xlu2 %v3321_v23, %s3622_s3 }
 0x8dc   :  { %v663_v32 = vpop.permute.xlu2 %662 }
 0x8dd   :  { %v3820_v22 = vmul.f32 %v663_v32, %v646_v3 }
 0x8de   :  { %v700_v26 = vpop.permute.xlu1 %699 }
 0x8df   :  { %v3818_v15 = vmul.f32 %v700_v26, %v683_v9 }
 0x8e1   :  { %v715_v34 = vrot.slane %v3818_v15, 6 }
 0x8e3   :  { %v717_v35 = vsel %vm329_vm9, %v3820_v22, %v715_v34 }
 0x8e4   :  { %v718_v17 = vpack.c.bf16 %v717_v35, %v717_v35 }
 0x8e6   :  { %720 = vrot.lane.b32.xlu0 %v718_v17, %s3623_s26 }
 0x958   :  { %v721_v36 = vpop.permute.xlu0 %720 }
 0x959   :  { %3057 = vmatmul.msk.bf16.vlgmr.msra.gmra.mxu2 %vm122_vm0, %v721_v36  ;;  %3058 = vmatmul.msk.bf16.vlgmr.msra.gmra.mxu3 %vm122_vm0, %v721_v36 }
 0x9dc   :  { %v734_v37 = vpop.f32.mrf.mxu2  ;;  %v747_v39 = vpop.f32.mrf.mxu3 }
 0x9dd   :  { %v752_v40 = vadd.f32 %v751_v38, %v734_v37  ;;  %v755_v41 = vrot.slane %v747_v39, 2 }
 0x9df   :  { %3322 = vtanh.f32 %v752_v40  ;;  %v757_v43 = vadd.f32 %v755_v41, %v753_v42  ;;  %v3059_v16 = vmul.f32 -1.442695, %v752_v40  ;;  %v880_v40 = vld [vmem:[#allocation2 + $0xa] sm:$0x3] }
 0x9e1   :  { %3324 = vtanh.f32 %v757_v43  ;;  %v3060_v49 = vmul.f32 -1.442695, %v757_v43 }
 0x9e2   :  { %3326 = vpow2.f32 %v3059_v16 }
 0x9e4   :  { %v736_v44 = vpop.f32.mrf.mxu2  ;;  %v749_v45 = vpop.f32.mrf.mxu3 }
 0x9e5   :  { %v3323_v46 = vpop.eup %3322  ;;  %v882_v44 = vld [vmem:[#allocation3 + $0x4] sm:$0x3] }
 0x9e6   :  { %780 = vrot.lane.b32.xlu2 %v3323_v46, %s3622_s3 }
 0x9e7   :  { %v3325_v7 = vpop.eup %3324 }
 0x9e8   :  { %817 = vrot.lane.b32.xlu1 %v3325_v7, %s3622_s3  ;;  %v3327_v20 = vpop.eup %3326 }
 0x9e9   :  { %v761_v24 = vadd.f32 1.0, %v3327_v20 }
 0x9eb   :  { %3328 = vrcp.f32 %v761_v24  ;;  %v773_v54 = vand.u32 2147483648, %v761_v24  ;;  %vm767_vm6 = vweird.f32 %v761_v24  ;;  %v771_v56 = vand.u32 2147483647, %v761_v24 }
 0x9ec   :  { %3330 = vpow2.f32 %v3060_v49 }
 0x9ed   :  { %v774_v58 = vor.u32 1.1754944e-38, %v773_v54  ;;  %vm772_vm8 = vcmp.eq.f32.partialorder %v771_v56, 8.507059e+37 }
 0x9f1   :  { %v3329_v47 = vpop.eup %3328 }
 0x9f2   :  { %v763_v48 = vmul.f32 %v3329_v47, %v761_v24  ;;  %v3331_v52 = vpop.eup %3330  ;;  %vm768_vm5 = vweird.f32 %v3329_v47 }
 0x9f3   :  { %v798_v55 = vadd.f32 1.0, %v3331_v52  ;;  %vm769_vm7 = vmor %vm767_vm6, %vm768_vm5 }
 0x9f4   :  { %v764_v50 = vsub.f32 1.0, %v763_v48 }
 0x9f5   :  { %3332 = vrcp.f32 %v798_v55  ;;  %v810_v3 = vand.u32 2147483648, %v798_v55  ;;  %vm804_vm11 = vweird.f32 %v798_v55  ;;  %v808_v4 = vand.u32 2147483647, %v798_v55 }
 0x9f6   :  { %v765_v51 = vmul.f32 %v3329_v47, %v764_v50 }
 0x9f7   :  { %v811_v6 = vor.u32 1.1754944e-38, %v810_v3  ;;  %vm809_vm13 = vcmp.eq.f32.partialorder %v808_v4, 8.507059e+37 }
 0x9f8   :  { %v766_v53 = vadd.f32 %v3329_v47, %v765_v51 }
 0x9fa   :  { %v770_v57 = vsel %vm769_vm7, %v3329_v47, %v766_v53 }
 0x9fb   :  { %v775_v60 = vsel %vm772_vm8, %v774_v58, %v770_v57  ;;  %v3333_v62 = vpop.eup %3332 }
 0x9fc   :  { %v800_v63 = vmul.f32 %v3333_v62, %v798_v55  ;;  %vm805_vm10 = vweird.f32 %v3333_v62  ;;  %v778_v11 = vmul.f32 %v775_v60, %v3814_v27 }
 0x9fd   :  { %vm806_vm12 = vmor %vm804_vm11, %vm805_vm10 }
 0x9fe   :  { %v801_v0 = vsub.f32 1.0, %v800_v63 }
 0xa00   :  { %v802_v1 = vmul.f32 %v3333_v62, %v801_v0 }
 0xa02   :  { %v803_v2 = vadd.f32 %v3333_v62, %v802_v1 }
 0xa04   :  { %v807_v5 = vsel %vm806_vm12, %v3333_v62, %v803_v2 }
 0xa05   :  { %v812_v9 = vsel %vm809_vm13, %v811_v6, %v807_v5 }
 0xa06   :  { %v815_v21 = vmul.f32 %v812_v9, %v3809_v13 }
 0xa40   :  { %v781_v59 = vpop.permute.xlu2 %780 }
 0xa41   :  { %v783_v61 = vmul.f32 %v781_v59, %v775_v60 }
 0xa43   :  { %785 = vrot.lane.b32.xlu1 %v783_v61, %s3622_s3 }
 0xa5a   :  { %v818_v8 = vpop.permute.xlu1 %817 }
 0xa5b   :  { %v820_v10 = vmul.f32 %v818_v8, %v812_v9 }
 0xa5d   :  { %822 = vrot.lane.b32.xlu0 %v820_v10, %s3622_s3 }
 0xab5   :  { %v786_v12 = vpop.permute.xlu1 %785 }
 0xab6   :  { %v3833_v14 = vadd.f32 %v786_v12, %v778_v11 }
 0xab8   :  { %3334 = vtanh.f32 %v3833_v14 }
 0xabe   :  { %v3335_v19 = vpop.eup %3334 }
 0xabf   :  { %791 = vrot.lane.b32.xlu0 %v3335_v19, %s3622_s3 }
 0xacf   :  { %v823_v23 = vpop.permute.xlu0 %822 }
 0xad0   :  { %v3838_v32 = vadd.f32 %v823_v23, %v815_v21 }
 0xad2   :  { %3336 = vtanh.f32 %v3838_v32 }
 0xad8   :  { %v3337_v26 = vpop.eup %3336 }
 0xad9   :  { %828 = vrot.lane.b32.xlu2 %v3337_v26, %s3622_s3 }
 0xb31   :  { %v792_v34 = vpop.permute.xlu0 %791 }
 0xb32   :  { %v3844_v17 = vmul.f32 %v792_v34, %v775_v60 }
 0xb33   :  { %v829_v27 = vpop.permute.xlu2 %828 }
 0xb34   :  { %v3842_v35 = vmul.f32 %v829_v27, %v812_v9 }
 0xb36   :  { %v844_v36 = vrot.slane %v3842_v35, 6 }
 0xb38   :  { %v846_v37 = vsel %vm329_vm9, %v3844_v17, %v844_v36 }
 0xb39   :  { %v847_v13 = vpack.c.bf16 %v846_v37, %v846_v37 }
 0xb3b   :  { %849 = vrot.lane.b32.xlu1 %v847_v13, %s3623_s26 }
 0xbad   :  { %v850_v38 = vpop.permute.xlu1 %849 }
 0xbae   :  { %3061 = vmatmul.msk.bf16.vlgmr.msrb.gmra.mxu0 %vm122_vm0, %v850_v38  ;;  %3062 = vmatmul.msk.bf16.vlgmr.msrb.gmra.mxu1 %vm122_vm0, %v850_v38 }
 0xc2b   :  { %v863_v39 = vpop.f32.mrf.mxu0  ;;  %v876_v41 = vpop.f32.mrf.mxu1 }
 0xc2c   :  { %v881_v42 = vadd.f32 %v880_v40, %v863_v39  ;;  %v884_v43 = vrot.slane %v876_v41, 2 }
 0xc2e   :  { %3338 = vtanh.f32 %v881_v42  ;;  %v886_v45 = vadd.f32 %v884_v43, %v882_v44  ;;  %v3063_v49 = vmul.f32 -1.442695, %v881_v42  ;;  %v1009_v44 = vld [vmem:[#allocation2 + $0xc] sm:$0x3] }
 0xc30   :  { %3340 = vtanh.f32 %v886_v45  ;;  %v3064_v24 = vmul.f32 -1.442695, %v886_v45 }
 0xc32   :  { %3342 = vpow2.f32 %v3064_v24 }
 0xc33   :  { %v865_v46 = vpop.f32.mrf.mxu0  ;;  %v878_v7 = vpop.f32.mrf.mxu1 }
 0xc34   :  { %v3339_v16 = vpop.eup %3338 }
 0xc35   :  { %909 = vrot.lane.b32.xlu0 %v3339_v16, %s3622_s3  ;;  %v1011_v16 = vld [vmem:[#allocation3 + $0x2] sm:$0x3] }
 0xc36   :  { %v3341_v20 = vpop.eup %3340 }
 0xc37   :  { %946 = vrot.lane.b32.xlu2 %v3341_v20, %s3622_s3 }
 0xc38   :  { %v3343_v47 = vpop.eup %3342 }
 0xc39   :  { %v927_v48 = vadd.f32 1.0, %v3343_v47 }
 0xc3b   :  { %3344 = vrcp.f32 %v927_v48  ;;  %v939_v57 = vand.u32 2147483648, %v927_v48  ;;  %vm933_vm15 = vweird.f32 %v927_v48  ;;  %v937_v58 = vand.u32 2147483647, %v927_v48 }
 0xc3c   :  { %3346 = vpow2.f32 %v3063_v49 }
 0xc3d   :  { %v940_v60 = vor.u32 1.1754944e-38, %v939_v57  ;;  %vm938_vm2 = vcmp.eq.f32.partialorder %v937_v58, 8.507059e+37 }
 0xc41   :  { %v3345_v50 = vpop.eup %3344 }
 0xc42   :  { %v929_v51 = vmul.f32 %v3345_v50, %v927_v48  ;;  %v3347_v53 = vpop.eup %3346  ;;  %vm934_vm14 = vweird.f32 %v3345_v50 }
 0xc43   :  { %v890_v54 = vadd.f32 1.0, %v3347_v53  ;;  %vm935_vm1 = vmor %vm933_vm15, %vm934_vm14 }
 0xc44   :  { %v930_v52 = vsub.f32 1.0, %v929_v51 }
 0xc45   :  { %3348 = vrcp.f32 %v890_v54  ;;  %v902_v5 = vand.u32 2147483648, %v890_v54  ;;  %vm896_vm4 = vweird.f32 %v890_v54  ;;  %v900_v6 = vand.u32 2147483647, %v890_v54 }
 0xc46   :  { %v931_v55 = vmul.f32 %v3345_v50, %v930_v52 }
 0xc47   :  { %v903_v9 = vor.u32 1.1754944e-38, %v902_v5  ;;  %vm901_vm6 = vcmp.eq.f32.partialorder %v900_v6, 8.507059e+37 }
 0xc48   :  { %v932_v56 = vadd.f32 %v3345_v50, %v931_v55 }
 0xc4a   :  { %v936_v59 = vsel %vm935_vm1, %v3345_v50, %v932_v56 }
 0xc4b   :  { %v3349_v61 = vpop.eup %3348  ;;  %v941_v63 = vsel %vm938_vm2, %v940_v60, %v936_v59 }
 0xc4c   :  { %v892_v1 = vmul.f32 %v3349_v61, %v890_v54  ;;  %vm897_vm3 = vweird.f32 %v3349_v61  ;;  %v944_v26 = vmul.f32 %v941_v63, %v3838_v32 }
 0xc4d   :  { %vm898_vm5 = vmor %vm896_vm4, %vm897_vm3 }
 0xc4e   :  { %v893_v2 = vsub.f32 1.0, %v892_v1 }
 0xc50   :  { %v894_v3 = vmul.f32 %v3349_v61, %v893_v2 }
 0xc52   :  { %v895_v4 = vadd.f32 %v3349_v61, %v894_v3 }
 0xc54   :  { %v899_v8 = vsel %vm898_vm5, %v3349_v61, %v895_v4 }
 0xc55   :  { %v904_v11 = vsel %vm901_vm6, %v903_v9, %v899_v8 }
 0xc56   :  { %v907_v19 = vmul.f32 %v904_v11, %v3833_v14 }
 0xc91   :  { %v947_v62 = vpop.permute.xlu2 %946 }
 0xc92   :  { %v949_v0 = vmul.f32 %v947_v62, %v941_v63 }
 0xc94   :  { %951 = vrot.lane.b32.xlu1 %v949_v0, %s3622_s3 }
 0xca7   :  { %v910_v10 = vpop.permute.xlu0 %909 }
 0xca8   :  { %v912_v12 = vmul.f32 %v910_v10, %v904_v11 }
 0xcaa   :  { %914 = vrot.lane.b32.xlu2 %v912_v12, %s3622_s3 }
 0xd04   :  { %v915_v21 = vpop.permute.xlu2 %914 }
 0xd05   :  { %v3857_v23 = vadd.f32 %v915_v21, %v907_v19 }
 0xd06   :  { %v952_v34 = vpop.permute.xlu1 %951 }
 0xd07   :  { %3350 = vtanh.f32 %v3857_v23  ;;  %v3861_v27 = vadd.f32 %v952_v34, %v944_v26 }
 0xd09   :  { %3352 = vtanh.f32 %v3861_v27 }
 0xd0d   :  { %v3351_v36 = vpop.eup %3350 }
 0xd0e   :  { %920 = vrot.lane.b32.xlu1 %v3351_v36, %s3622_s3 }
 0xd0f   :  { %v3353_v37 = vpop.eup %3352 }
 0xd10   :  { %957 = vrot.lane.b32.xlu0 %v3353_v37, %s3622_s3 }
 0xd80   :  { %v921_v13 = vpop.permute.xlu1 %920 }
 0xd81   :  { %v3868_v39 = vmul.f32 %v921_v13, %v904_v11 }
 0xd82   :  { %v958_v14 = vpop.permute.xlu0 %957 }
 0xd83   :  { %v3866_v38 = vmul.f32 %v958_v14, %v941_v63 }
 0xd85   :  { %v973_v32 = vrot.slane %v3866_v38, 6 }
 0xd87   :  { %v975_v40 = vsel %vm329_vm9, %v3868_v39, %v973_v32 }
 0xd88   :  { %v976_v41 = vpack.c.bf16 %v975_v40, %v975_v40 }
 0xd8a   :  { %978 = vrot.lane.b32.xlu2 %v976_v41, %s3623_s26 }
 0xde4   :  { %v979_v42 = vpop.permute.xlu2 %978 }
 0xde5   :  { %3065 = vmatmul.msk.bf16.vlgmr.msrb.gmra.mxu2 %vm122_vm0, %v979_v42  ;;  %3066 = vmatmul.msk.bf16.vlgmr.msrb.gmra.mxu3 %vm122_vm0, %v979_v42 }
 0xe68   :  { %v992_v43 = vpop.f32.mrf.mxu2  ;;  %v1005_v45 = vpop.f32.mrf.mxu3 }
 0xe69   :  { %v1010_v46 = vadd.f32 %v1009_v44, %v992_v43  ;;  %v1013_v7 = vrot.slane %v1005_v45, 2 }
 0xe6b   :  { %3354 = vtanh.f32 %v1010_v46  ;;  %v1015_v20 = vadd.f32 %v1013_v7, %v1011_v16  ;;  %v3067_v50 = vmul.f32 -1.442695, %v1010_v46 }
 0xe6d   :  { %3356 = vtanh.f32 %v1015_v20  ;;  %v3068_v51 = vmul.f32 -1.442695, %v1015_v20 }
 0xe6e   :  { %3358 = vpow2.f32 %v3067_v50 }
 0xe6f   :  { %3360 = vpow2.f32 %v3068_v51 }
 0xe70   :  { %v994_v24 = vpop.f32.mrf.mxu2  ;;  %v1007_v47 = vpop.f32.mrf.mxu3 }
 0xe71   :  { %v3355_v48 = vpop.eup %3354 }
 0xe72   :  { %1038 = vrot.lane.b32.xlu1 %v3355_v48, %s3622_s3  ;;  %v1140_v48 = vld [vmem:[#allocation3] sm:$0x3] }
 0xe73   :  { %v3357_v49 = vpop.eup %3356 }
 0xe74   :  { %1075 = vrot.lane.b32.xlu0 %v3357_v49, %s3622_s3  ;;  %v3359_v52 = vpop.eup %3358 }
 0xe75   :  { %v3361_v53 = vpop.eup %3360  ;;  %v1019_v54 = vadd.f32 1.0, %v3359_v52  ;;  %v1138_v52 = vld [vmem:[#allocation2 + $0xe] sm:$0x3] }
 0xe76   :  { %v1056_v55 = vadd.f32 1.0, %v3361_v53 }
 0xe77   :  { %3362 = vrcp.f32 %v1019_v54  ;;  %v1031_v1 = vand.u32 2147483648, %v1019_v54  ;;  %vm1025_vm8 = vweird.f32 %v1019_v54  ;;  %v1029_v2 = vand.u32 2147483647, %v1019_v54 }
 0xe78   :  { %3364 = vrcp.f32 %v1056_v55  ;;  %v1068_v5 = vand.u32 2147483648, %v1056_v55  ;;  %vm1062_vm12 = vweird.f32 %v1056_v55  ;;  %v1066_v8 = vand.u32 2147483647, %v1056_v55 }
 0xe79   :  { %v1032_v6 = vor.u32 1.1754944e-38, %v1031_v1  ;;  %vm1030_vm13 = vcmp.eq.f32.partialorder %v1029_v2, 8.507059e+37 }
 0xe7a   :  { %v1069_v19 = vor.u32 1.1754944e-38, %v1068_v5  ;;  %vm1067_vm15 = vcmp.eq.f32.partialorder %v1066_v8, 8.507059e+37 }
 0xe7d   :  { %v3363_v56 = vpop.eup %3362 }
 0xe7e   :  { %v3365_v57 = vpop.eup %3364  ;;  %v1021_v58 = vmul.f32 %v3363_v56, %v1019_v54  ;;  %vm1026_vm7 = vweird.f32 %v3363_v56 }
 0xe7f   :  { %v1058_v59 = vmul.f32 %v3365_v57, %v1056_v55  ;;  %vm1027_vm10 = vmor %vm1025_vm8, %vm1026_vm7  ;;  %vm1063_vm11 = vweird.f32 %v3365_v57 }
 0xe80   :  { %v1022_v60 = vsub.f32 1.0, %v1021_v58  ;;  %vm1064_vm14 = vmor %vm1062_vm12, %vm1063_vm11 }
 0xe81   :  { %v1059_v61 = vsub.f32 1.0, %v1058_v59 }
 0xe82   :  { %v1023_v62 = vmul.f32 %v3363_v56, %v1022_v60 }
 0xe83   :  { %v1060_v63 = vmul.f32 %v3365_v57, %v1059_v61 }
 0xe84   :  { %v1024_v0 = vadd.f32 %v3363_v56, %v1023_v62 }
 0xe85   :  { %v1061_v3 = vadd.f32 %v3365_v57, %v1060_v63 }
 0xe86   :  { %v1028_v4 = vsel %vm1027_vm10, %v3363_v56, %v1024_v0  ;;  %vm319_vm10 = vcmask 254976  }
 0xe87   :  { %v1033_v10 = vsel %vm1030_vm13, %v1032_v6, %v1028_v4  ;;  %v1065_v11 = vsel %vm1064_vm14, %v3365_v57, %v1061_v3 }
 0xe88   :  { %v1070_v26 = vsel %vm1067_vm15, %v1069_v19, %v1065_v11  ;;  %v1036_v32 = vmul.f32 %v1033_v10, %v3857_v23 }
 0xe89   :  { %v1073_v36 = vmul.f32 %v1070_v26, %v3861_v27 }
 0xee4   :  { %v1039_v9 = vpop.permute.xlu1 %1038 }
 0xee5   :  { %v1041_v12 = vmul.f32 %v1039_v9, %v1033_v10 }
 0xee6   :  { %v1076_v21 = vpop.permute.xlu0 %1075 }
 0xee7   :  { %1043 = vrot.lane.b32.xlu0 %v1041_v12, %s3622_s3  ;;  %v1078_v34 = vmul.f32 %v1076_v21, %v1070_v26 }
 0xee9   :  { %1080 = vrot.lane.b32.xlu2 %v1078_v34, %s3622_s3 }
 0xf43   :  { %v1081_v37 = vpop.permute.xlu2 %1080 }
 0xf44   :  { %v3881_v13 = vadd.f32 %v1081_v37, %v1073_v36 }
 0xf46   :  { %3366 = vtanh.f32 %v3881_v13 }
 0xf4c   :  { %v3367_v14 = vpop.eup %3366 }
 0xf4d   :  { %1086 = vrot.lane.b32.xlu1 %v3367_v14, %s3622_s3 }
 0xf59   :  { %v1044_v40 = vpop.permute.xlu0 %1043 }
 0xf5a   :  { %v3886_v41 = vadd.f32 %v1044_v40, %v1036_v32 }
 0xf5c   :  { %3368 = vtanh.f32 %v3886_v41 }
 0xf62   :  { %v3369_v42 = vpop.eup %3368 }
 0xf63   :  { %1049 = vrot.lane.b32.xlu2 %v3369_v42, %s3622_s3 }
 0xfbd   :  { %v1050_v43 = vpop.permute.xlu2 %1049 }
 0xfbe   :  { %v3890_v45 = vmul.f32 %v1050_v43, %v1033_v10 }
 0xfbf   :  { %v1087_v27 = vpop.permute.xlu1 %1086 }
 0xfc0   :  { %v1089_v44 = vmul.f32 %v1087_v27, %v1070_v26 }
 0xfc2   :  { %v1102_v46 = vrot.slane %v1089_v44, 6 }
 0xfc4   :  { %v1104_v7 = vsel %vm329_vm9, %v3890_v45, %v1102_v46 }
 0xfc5   :  { %v1105_v16 = vpack.c.bf16 %v1104_v7, %v1104_v7 }
 0xfc7   :  { %1107 = vrot.lane.b32.xlu0 %v1105_v16, %s3623_s26 }
0x1039   :  { %v1108_v23 = vpop.permute.xlu0 %1107 }
0x103a   :  { %3069 = vmatmul.msk.bf16.vlgmr.msra.gmra.mxu0 %vm122_vm0, %v1108_v23  ;;  %3070 = vmatmul.msk.bf16.vlgmr.msra.gmra.mxu1 %vm122_vm0, %v1108_v23  ;;  %v3229_v23 = vld [vmem:[%s4444_s4 + $0x4] sm:$0xf0] }
0x10b7   :  { %v1121_v20 = vpop.f32.mrf.mxu0  ;;  %v1134_v24 = vpop.f32.mrf.mxu1 }
0x10b8   :  { %v1142_v47 = vrot.slane %v1134_v24, 2  ;;  %v1139_v53 = vadd.f32 %v1138_v52, %v1121_v20  ;;  %v3228_v20 = vld [vmem:[%s4444_s4 + $0x4] sm:$0xf] }
0x10ba   :  { %v1144_v49 = vadd.f32 %v1142_v47, %v1140_v48  ;;  %v3071_v57 = vmul.f32 -1.442695, %v1139_v53  ;;  %v3095_v47 = vld [vmem:[%s4444_s4 + $0x8] sm:$0xf0] }
0x10bb   :  { %v3961_v48 = vor.u32 %v3228_v20, %v3095_v47 }
0x10bc   :  { %3370 = vtanh.f32 %v1144_v49  ;;  %v3072_v56 = vmul.f32 -1.442695, %v1144_v49 }
0x10bd   :  { %3372 = vtanh.f32 %v1139_v53 }
0x10be   :  { %3374 = vpow2.f32 %v3072_v56 }
0x10bf   :  { %v1123_v50 = vpop.f32.mrf.mxu0  ;;  %v1136_v51 = vpop.f32.mrf.mxu1  ;;  %3376 = vpow2.f32 %v3071_v57 }
0x10c2   :  { %v3371_v54 = vpop.eup %3370 }
0x10c3   :  { %1204 = vrot.lane.b32.xlu1 %v3371_v54, %s3622_s3  ;;  %v3373_v55 = vpop.eup %3372 }
0x10c4   :  { %v3375_v58 = vpop.eup %3374 }
0x10c5   :  { %v1185_v59 = vadd.f32 1.0, %v3375_v58  ;;  %v3377_v60 = vpop.eup %3376 }
0x10c6   :  { %v1148_v61 = vadd.f32 1.0, %v3377_v60  ;;  %v3234_v60 = vld [vmem:[%s4444_s4 + $0x34] sm:$0xf] }
0x10c7   :  { %3378 = vrcp.f32 %v1185_v59  ;;  %v1197_v6 = vand.u32 2147483648, %v1185_v59  ;;  %vm1191_vm2 = vweird.f32 %v1185_v59  ;;  %v1195_v8 = vand.u32 2147483647, %v1185_v59 }
0x10c8   :  { %3380 = vrcp.f32 %v1148_v61  ;;  %v1160_v34 = vand.u32 2147483648, %v1148_v61  ;;  %vm1154_vm6 = vweird.f32 %v1148_v61  ;;  %v1158_v36 = vand.u32 2147483647, %v1148_v61 }
0x10c9   :  { %v1198_v11 = vor.u32 1.1754944e-38, %v1197_v6  ;;  %vm1196_vm4 = vcmp.eq.f32.partialorder %v1195_v8, 8.507059e+37 }
0x10ca   :  { %v1161_v14 = vor.u32 1.1754944e-38, %v1160_v34  ;;  %vm1159_vm8 = vcmp.eq.f32.partialorder %v1158_v36, 8.507059e+37 }
0x10cb   :  { %1167 = vrot.lane.b32.xlu1 %v3373_v55, %s3622_s3 }
0x10cd   :  { %v3379_v62 = vpop.eup %3378 }
0x10ce   :  { %v1187_v63 = vmul.f32 %v3379_v62, %v1185_v59  ;;  %v3381_v1 = vpop.eup %3380  ;;  %vm1192_vm1 = vweird.f32 %v3379_v62  ;;  %v3235_v59 = vld [vmem:[%s4444_s4 + $0x34] sm:$0xf0] }
0x10cf   :  { %v1150_v3 = vmul.f32 %v3381_v1, %v1148_v61  ;;  %vm1193_vm3 = vmor %vm1191_vm2, %vm1192_vm1  ;;  %vm1155_vm5 = vweird.f32 %v3381_v1 }
0x10d0   :  { %v1188_v0 = vsub.f32 1.0, %v1187_v63  ;;  %vm1156_vm7 = vmor %vm1154_vm6, %vm1155_vm5  ;;  %v3233_v63 = vld [vmem:[%s4444_s4 + $0x24] sm:$0xf0] }
0x10d1   :  { %v1151_v5 = vsub.f32 1.0, %v1150_v3 }
0x10d2   :  { %v1189_v2 = vmul.f32 %v3379_v62, %v1188_v0 }
0x10d3   :  { %1097 = vrot.lane.b32.xlu1 %v1089_v44, %s3623_s26  ;;  %v1152_v10 = vmul.f32 %v3381_v1, %v1151_v5 }
0x10d4   :  { %v1190_v4 = vadd.f32 %v3379_v62, %v1189_v2  ;;  %v3077_v2 = vld [vmem:[%s4444_s4 + $0x28] sm:$0xf0] }
0x10d5   :  { %v1153_v26 = vadd.f32 %v3381_v1, %v1152_v10 }
0x10d6   :  { %v1194_v9 = vsel %vm1193_vm3, %v3379_v62, %v1190_v4  ;;  %v3075_v62 = vld [vmem:[%s4444_s4 + $0x20] sm:$0xf] }
0x10d7   :  { %v1199_v19 = vsel %vm1196_vm4, %v1198_v11, %v1194_v9  ;;  %v1157_v37 = vsel %vm1156_vm7, %v3381_v1, %v1153_v26  ;;  %v3232_v1 = vld [vmem:[%s4444_s4 + $0x24] sm:$0xf]  ;;  %v4022_v3 = vor.u32 %v3233_v63, %v3075_v62 }
0x10d8   :  { %v3901_v32 = vsel %vm1159_vm8, %v1161_v14, %v1157_v37  ;;  %v1202_v27 = vmul.f32 %v1199_v19, %v3881_v13  ;;  %v4025_v4 = vor.u32 %v3232_v1, %v3077_v2 }
0x10d9   :  { %v1165_v55 = vmul.f32 %v3901_v32, %v3886_v41 }
0x1135   :  { %v1205_v12 = vpop.permute.xlu1 %1204 }
0x1136   :  { %v1207_v21 = vmul.f32 %v1205_v12, %v1199_v19 }
0x1138   :  { %1209 = vrot.lane.b32.xlu2 %v1207_v21, %s3622_s3 }
0x113d   :  { %v1168_v40 = vpop.permute.xlu1 %1167 }
0x113e   :  { %v1170_v42 = vmul.f32 %v1168_v40, %v3901_v32 }
0x1140   :  { %1172 = vrot.lane.b32.xlu1 %v1170_v42, %s3622_s3 }
0x1145   :  { %v1098_v43 = vpop.permute.xlu1 %1097 }
0x1146   :  { %1101 = vst.msk [vmem:[#allocation5 + $0x2] sm:$0x3] %vm319_vm10, %v1098_v43 }
0x1148   :  { %704 = vrot.lane.b32.xlu1 %v3820_v22, %s3623_s26 }
0x1150   :  { %581 = vrot.lane.b32.xlu1 %v3790_v33, %s3623_s26 }
0x1158   :  { %452 = vrot.lane.b32.xlu1 %v3762_v29, %s3623_s26 }
0x1192   :  { %v1210_v44 = vpop.permute.xlu2 %1209 }
0x1193   :  { %v1212_v46 = vadd.f32 %v1210_v44, %v1202_v27 }
0x1195   :  { %3382 = vtanh.f32 %v1212_v46 }
0x119b   :  { %v3383_v7 = vpop.eup %3382 }
0x119c   :  { %1215 = vrot.lane.b32.xlu0 %v3383_v7, %s3622_s3 }
0x11a4   :  { %316 = vrot.lane.b32.xlu0 %v3737_v31, %s3623_s26 }
0x11ac   :  { %968 = vrot.lane.b32.xlu0 %v3866_v38, %s3623_s26  ;;  %v3230_v38 = vld [vmem:[%s4444_s4 + $0x14] sm:$0xf] }
0x11b2   :  { %v1173_v22 = vpop.permute.xlu1 %1172 }
0x11b4   :  { %839 = vrot.lane.b32.xlu0 %v3842_v35, %s3623_s26  ;;  %v3101_v35 = vld [vmem:[%s4444_s4 + $0x10] sm:$0xf] }
0x11ba   :  { %v705_v33 = vpop.permute.xlu1 %704 }
0x11bb   :  { %708 = vst.msk [vmem:[#allocation4 + $0x6] sm:$0x3] %vm319_vm10, %v705_v33 }
0x11bc   :  { %833 = vrot.lane.b32.xlu0 %v3844_v17, %s3623_s26  ;;  %v3231_v17 = vld [vmem:[%s4444_s4 + $0x14] sm:$0xf0] }
0x11bd   :  { %v3938_v13 = vor.u32 %v3231_v17, %v3101_v35 }
0x11bf   :  { %1325 = vmatpush.bf16.msrb.mxu0 %v3938_v13 }
0x11c2   :  { %v582_v29 = vpop.permute.xlu1 %581 }
0x11c3   :  { %585 = vst.msk [vmem:[#allocation5 + $0xa] sm:$0x3] %vm319_vm10, %v582_v29 }
0x11c4   :  { %962 = vrot.lane.b32.xlu0 %v3868_v39, %s3623_s26  ;;  %v3103_v39 = vld [vmem:[%s4444_s4 + $0x18] sm:$0xf0] }
0x11c5   :  { %v3943_v16 = vor.u32 %v3230_v38, %v3103_v39 }
0x11c7   :  { %1338 = vmatpush.bf16.msrb.mxu1 %v3943_v16 }
0x11ca   :  { %v453_v31 = vpop.permute.xlu1 %452 }
0x11cb   :  { %456 = vst.msk [vmem:[#allocation5 + $0xc] sm:$0x3] %vm319_vm10, %v453_v31  ;;  %1339 = vmatpush.bf16.msrb.mxu1 %v3961_v48 }
0x11cc   :  { %322 = vrot.lane.b32.xlu0 %v3734_v28, %s3623_s26  ;;  %v3093_v28 = vld [vmem:[%s4444_s4] sm:$0xf] }
0x11cd   :  { %v3955_v24 = vor.u32 %v3229_v23, %v3093_v28  ;;  %v1620_v23 = vld [vmem:[#allocation5 + $0xa] sm:$0x3] }
0x11ce   :  { %v1621_v20 = vpack.c.bf16 %v1620_v23, %v1620_v23 }
0x11cf   :  { %1326 = vmatpush.bf16.msrb.mxu0 %v3955_v24  ;;  %1409 = vmatpush.bf16.msra.mxu1 %v3943_v16 }
0x11d3   :  { %1396 = vmatpush.bf16.msra.mxu0 %v3938_v13  ;;  %1410 = vmatpush.bf16.msra.mxu1 %v3961_v48 }
0x11d7   :  { %1397 = vmatpush.bf16.msra.mxu0 %v3955_v24 }
0x120e   :  { %v1216_v49 = vpop.permute.xlu0 %1215 }
0x120f   :  { %v1218_v50 = vmul.f32 %v1216_v49, %v1199_v19  ;;  %v1356_v19 = vld [vmem:[#allocation5 + $0x2] sm:$0x3] }
0x1210   :  { %v1357_v26 = vpack.c.bf16 %v1356_v19, %v1356_v19  ;;  %v3147_v49 = vld [vmem:[#allocation11 + $0x10] sm:$0xf] }
0x1211   :  { %1226 = vrot.lane.b32.xlu2 %v1218_v50, %s3623_s26  ;;  %v3239_v50 = vld [vmem:[#allocation11 + $0x14] sm:$0xf0] }
0x1216   :  { %v317_v51 = vpop.permute.xlu0 %316 }
0x1217   :  { %320 = vst.msk [vmem:[#allocation4] sm:$0x3] %vm319_vm10, %v317_v51  ;;  %v1686_v51 = vld [vmem:[#allocation5 + $0xc] sm:$0x3] }
0x1219   :  { %446 = vrot.lane.b32.xlu2 %v3764_v30, %s3623_s26  ;;  %v1175_v30 = vadd.f32 %v1173_v22, %v1165_v55  ;;  %v3149_v55 = vld [vmem:[#allocation11 + $0x18] sm:$0xf0] }
0x121b   :  { %3384 = vtanh.f32 %v1175_v30 }
0x121e   :  { %v969_v52 = vpop.permute.xlu0 %968  ;;  %v1243_v53 = vld [vmem:[#allocation4] sm:$0x3] }
0x121f   :  { %972 = vst.msk [vmem:[#allocation5 + $0x4] sm:$0x3] %vm319_vm10, %v969_v52  ;;  %v1244_v54 = vpack.c.bf16 %v1243_v53, %v1243_v53  ;;  %v1687_v53 = vpack.c.bf16 %v1686_v51, %v1686_v51 }
0x1221   :  { %575 = vrot.lane.b32.xlu2 %v3792_v18, %s3623_s26  ;;  %3107 = vmatmul.msk.bf16.vlgmr.msrb.gmra.mxu0 %vm122_vm0, %v1244_v54  ;;  %v3385_v57 = vpop.eup %3384 }
0x1222   :  { %3108 = vmatmul.msk.bf16.vlgmr.msrb.gmra.mxu1 %vm122_vm0, %v1244_v54  ;;  %1462 = vmatpush.bf16.msrb.mxu0 %v3938_v13  ;;  %v3238_v54 = vld [vmem:[#allocation11 + $0x14] sm:$0xf] }
0x1223   :  { %1475 = vmatpush.bf16.msrb.mxu1 %v3943_v16  ;;  %v4122_v30 = vor.u32 %v3238_v54, %v3149_v55 }
0x1226   :  { %v840_v56 = vpop.permute.xlu0 %839  ;;  %1463 = vmatpush.bf16.msrb.mxu0 %v3955_v24  ;;  %v1422_v40 = vld [vmem:[#allocation5 + $0x4] sm:$0x3] }
0x1227   :  { %843 = vst.msk [vmem:[#allocation5 + $0x6] sm:$0x3] %vm319_vm10, %v840_v56  ;;  %1476 = vmatpush.bf16.msrb.mxu1 %v3961_v48  ;;  %v1423_v43 = vpack.c.bf16 %v1422_v40, %v1422_v40 }
0x1229   :  { %710 = vrot.lane.b32.xlu2 %v3818_v15, %s3623_s26  ;;  %v3083_v15 = vld [vmem:[%s4444_s4 + $0x30] sm:$0xf] }
0x122a   :  { %v4002_v61 = vor.u32 %v3235_v59, %v3083_v15  ;;  %v1242_v15 = vld [vmem:[%s4446_s6] sm:$0x3] }
0x122b   :  { %v4143_v59 = vperm.slane %v1242_v15, 0 }
0x122c   :  { %1276 = vmatpush.bf16.msra.mxu2 %v4002_v61 }
0x122e   :  { %v834_v18 = vpop.permute.xlu0 %833  ;;  %v1488_v7 = vld [vmem:[#allocation5 + $0x6] sm:$0x3] }
0x122f   :  { %837 = vst.msk [vmem:[#allocation4 + $0x8] sm:$0x3] %vm319_vm10, %v834_v18  ;;  %v1489_v22 = vpack.c.bf16 %v1488_v7, %v1488_v7  ;;  %v3236_v18 = vld [vmem:[#allocation11 + $0x4] sm:$0xf] }
0x1230   :  { %1277 = vmatpush.bf16.msra.mxu2 %v4022_v3 }
0x1231   :  { %1178 = vrot.lane.b32.xlu2 %v3385_v57, %s3622_s3  ;;  %v3141_v57 = vld [vmem:[#allocation11 + $0x8] sm:$0xf0] }
0x1234   :  { %1367 = vmatpush.bf16.msrb.mxu2 %v4002_v61 }
0x1236   :  { %v963_v58 = vpop.permute.xlu0 %962  ;;  %v1552_v31 = vld [vmem:[#allocation4 + $0x8] sm:$0x3] }
0x1237   :  { %966 = vst.msk [vmem:[#allocation4 + $0xa] sm:$0x3] %vm319_vm10, %v963_v58  ;;  %v1553_v35 = vpack.c.bf16 %v1552_v31, %v1552_v31  ;;  %v4126_v58 = vor.u32 %v3236_v18, %v3141_v57 }
0x1238   :  { %1368 = vmatpush.bf16.msrb.mxu2 %v4022_v3 }
0x1239   :  { %1091 = vrot.lane.b32.xlu2 %v3890_v45, %s3623_s26  ;;  %v3085_v45 = vld [vmem:[%s4444_s4 + $0x38] sm:$0xf0] }
0x123a   :  { %v4013_v0 = vor.u32 %v3234_v60, %v3085_v45  ;;  %v4145_v60 = vperm.slane %v1242_v15, 1 }
0x123c   :  { %1289 = vmatpush.bf16.msra.mxu3 %v4013_v0 }
0x123e   :  { %v323_v41 = vpop.permute.xlu0 %322  ;;  %v1618_v39 = vld [vmem:[#allocation4 + $0xa] sm:$0x3] }
0x123f   :  { %326 = vst.msk [vmem:[#allocation5 + $0xe] sm:$0x3] %vm319_vm10, %v323_v41  ;;  %v1619_v28 = vpack.c.bf16 %v1618_v39, %v1618_v39 }
0x1240   :  { %1290 = vmatpush.bf16.msra.mxu3 %v4025_v4 }
0x1244   :  { %1380 = vmatpush.bf16.msrb.mxu3 %v4013_v0 }
0x1246   :  { %v1752_v56 = vld [vmem:[#allocation5 + $0xe] sm:$0x3] }
0x1247   :  { %v1753_v41 = vpack.c.bf16 %v1752_v56, %v1752_v56 }
0x1248   :  { %1381 = vmatpush.bf16.msrb.mxu3 %v4025_v4 }
0x126b   :  { %v1227_v5 = vpop.permute.xlu2 %1226 }
0x126c   :  { %1229 = vst.msk [vmem:[#allocation5] sm:$0x3] %vm319_vm10, %v1227_v5 }
0x1273   :  { %v447_v6 = vpop.permute.xlu2 %446  ;;  %v1245_v8 = vld [vmem:[#allocation5] sm:$0x3] }
0x1274   :  { %450 = vst.msk [vmem:[#allocation4 + $0x2] sm:$0x3] %vm319_vm10, %v447_v6  ;;  %v1246_v9 = vpack.c.bf16 %v1245_v8, %v1245_v8 }
0x1276   :  { %3089 = vmatmul.msk.bf16.vlgmr.msra.gmra.mxu2 %vm122_vm0, %v1246_v9  ;;  %3090 = vmatmul.msk.bf16.vlgmr.msra.gmra.mxu3 %vm122_vm0, %v1246_v9 }
0x1277   :  { %1433 = vmatpush.bf16.msra.mxu2 %v4002_v61  ;;  %1446 = vmatpush.bf16.msra.mxu3 %v4013_v0 }
0x127b   :  { %v576_v10 = vpop.permute.xlu2 %575  ;;  %v1354_v11 = vld [vmem:[#allocation4 + $0x2] sm:$0x3]  ;;  %1434 = vmatpush.bf16.msra.mxu2 %v4022_v3  ;;  %1447 = vmatpush.bf16.msra.mxu3 %v4025_v4 }
0x127c   :  { %579 = vst.msk [vmem:[#allocation4 + $0x4] sm:$0x3] %vm319_vm10, %v576_v10  ;;  %v1355_v12 = vpack.c.bf16 %v1354_v11, %v1354_v11 }
0x127e   :  { %3111 = vmatmul.msk.bf16.vlgmr.msra.gmra.mxu0 %vm122_vm0, %v1355_v12  ;;  %3112 = vmatmul.msk.bf16.vlgmr.msra.gmra.mxu1 %vm122_vm0, %v1355_v12 }
0x127f   :  { %1528 = vmatpush.bf16.msra.mxu0 %v3938_v13  ;;  %1541 = vmatpush.bf16.msra.mxu1 %v3943_v16 }
0x1283   :  { %v711_v21 = vpop.permute.xlu2 %710  ;;  %1529 = vmatpush.bf16.msra.mxu0 %v3955_v24  ;;  %1542 = vmatpush.bf16.msra.mxu1 %v3961_v48  ;;  %v1420_v34 = vld [vmem:[#allocation4 + $0x4] sm:$0x3] }
0x1284   :  { %714 = vst.msk [vmem:[#allocation5 + $0x8] sm:$0x3] %vm319_vm10, %v711_v21  ;;  %v1421_v14 = vpack.c.bf16 %v1420_v34, %v1420_v34 }
0x1286   :  { %3109 = vmatmul.msk.bf16.vlgmr.msrb.gmra.mxu2 %vm122_vm0, %v1357_v26  ;;  %3110 = vmatmul.msk.bf16.vlgmr.msrb.gmra.mxu3 %vm122_vm0, %v1357_v26 }
0x1287   :  { %1499 = vmatpush.bf16.msrb.mxu2 %v4002_v61  ;;  %1512 = vmatpush.bf16.msrb.mxu3 %v4013_v0 }
0x128b   :  { %v1179_v36 = vpop.permute.xlu2 %1178  ;;  %1500 = vmatpush.bf16.msrb.mxu2 %v4022_v3  ;;  %1513 = vmatpush.bf16.msrb.mxu3 %v4025_v4  ;;  %v1554_v17 = vld [vmem:[#allocation5 + $0x8] sm:$0x3] }
0x128c   :  { %v1181_v37 = vmul.f32 %v1179_v36, %v3901_v32  ;;  %v1486_v32 = vld [vmem:[#allocation4 + $0x6] sm:$0x3]  ;;  %v1555_v38 = vpack.c.bf16 %v1554_v17, %v1554_v17 }
0x128d   :  { %v1487_v27 = vpack.c.bf16 %v1486_v32, %v1486_v32 }
0x128e   :  { %1220 = vrot.lane.b32.xlu1 %v1181_v37, %s3623_s26  ;;  %3115 = vmatmul.msk.bf16.vlgmr.msrb.gmra.mxu0 %vm122_vm0, %v1421_v14 }
0x128f   :  { %3116 = vmatmul.msk.bf16.vlgmr.msrb.gmra.mxu1 %vm122_vm0, %v1421_v14  ;;  %1594 = vmatpush.bf16.msrb.mxu0 %v3938_v13 }
0x1290   :  { %1607 = vmatpush.bf16.msrb.mxu1 %v3943_v16 }
0x1293   :  { %v1092_v42 = vpop.permute.xlu2 %1091  ;;  %1595 = vmatpush.bf16.msrb.mxu0 %v3955_v24 }
0x1294   :  { %1095 = vst.msk [vmem:[#allocation4 + $0xc] sm:$0x3] %vm319_vm10, %v1092_v42  ;;  %1608 = vmatpush.bf16.msrb.mxu1 %v3961_v48 }
0x1296   :  { %3113 = vmatmul.msk.bf16.vlgmr.msra.gmra.mxu2 %vm122_vm0, %v1423_v43  ;;  %3114 = vmatmul.msk.bf16.vlgmr.msra.gmra.mxu3 %vm122_vm0, %v1423_v43 }
0x1297   :  { %1565 = vmatpush.bf16.msra.mxu2 %v4002_v61  ;;  %1578 = vmatpush.bf16.msra.mxu3 %v4013_v0 }
0x129b   :  { %1566 = vmatpush.bf16.msra.mxu2 %v4022_v3  ;;  %1579 = vmatpush.bf16.msra.mxu3 %v4025_v4  ;;  %v1684_v47 = vld [vmem:[#allocation4 + $0xc] sm:$0x3] }
0x129e   :  { %v4070_v44 = vpop.f32.mrf.mxu0  ;;  %3119 = vmatmul.msk.bf16.vlgmr.msra.gmra.mxu0 %vm122_vm0, %v1487_v27 }
0x129f   :  { %v4073_v46 = vpop.f32.mrf.mxu1  ;;  %3120 = vmatmul.msk.bf16.vlgmr.msra.gmra.mxu1 %vm122_vm0, %v1487_v27  ;;  %1660 = vmatpush.bf16.msra.mxu0 %v3938_v13 }
0x12a0   :  { %1673 = vmatpush.bf16.msra.mxu1 %v3943_v16 }
0x12a3   :  { %1661 = vmatpush.bf16.msra.mxu0 %v3955_v24 }
0x12a4   :  { %1674 = vmatpush.bf16.msra.mxu1 %v3961_v48 }
0x12a6   :  { %v1330_v33 = vpop.f32.mrf.mxu0  ;;  %3117 = vmatmul.msk.bf16.vlgmr.msrb.gmra.mxu2 %vm122_vm0, %v1489_v22  ;;  %3118 = vmatmul.msk.bf16.vlgmr.msrb.gmra.mxu3 %vm122_vm0, %v1489_v22 }
0x12a7   :  { %v1343_v29 = vpop.f32.mrf.mxu1  ;;  %1631 = vmatpush.bf16.msrb.mxu2 %v4002_v61  ;;  %1644 = vmatpush.bf16.msrb.mxu3 %v4013_v0 }
0x12ab   :  { %1632 = vmatpush.bf16.msrb.mxu2 %v4022_v3  ;;  %1645 = vmatpush.bf16.msrb.mxu3 %v4025_v4 }
0x12ae   :  { %3123 = vmatmul.msk.bf16.vlgmr.msrb.gmra.mxu0 %vm122_vm0, %v1553_v35 }
0x12af   :  { %3124 = vmatmul.msk.bf16.vlgmr.msrb.gmra.mxu1 %vm122_vm0, %v1553_v35  ;;  %1726 = vmatpush.bf16.msrb.mxu0 %v3938_v13 }
0x12b0   :  { %1739 = vmatpush.bf16.msrb.mxu1 %v3943_v16 }
0x12b3   :  { %1727 = vmatpush.bf16.msrb.mxu0 %v3955_v24 }
0x12b4   :  { %1740 = vmatpush.bf16.msrb.mxu1 %v3961_v48 }
0x12b6   :  { %3121 = vmatmul.msk.bf16.vlgmr.msra.gmra.mxu2 %vm122_vm0, %v1555_v38  ;;  %3122 = vmatmul.msk.bf16.vlgmr.msra.gmra.mxu3 %vm122_vm0, %v1555_v38 }
0x12b7   :  { %1697 = vmatpush.bf16.msra.mxu2 %v4002_v61  ;;  %1710 = vmatpush.bf16.msra.mxu3 %v4013_v0 }
0x12bb   :  { %1698 = vmatpush.bf16.msra.mxu2 %v4022_v3  ;;  %1711 = vmatpush.bf16.msra.mxu3 %v4025_v4 }
0x12be   :  { %3127 = vmatmul.msk.bf16.vlgmr.msra.gmra.mxu0 %vm122_vm0, %v1619_v28 }
0x12bf   :  { %3128 = vmatmul.msk.bf16.vlgmr.msra.gmra.mxu1 %vm122_vm0, %v1619_v28  ;;  %1792 = vmatpush.bf16.msra.mxu0 %v3938_v13  ;;  %v1685_v13 = vpack.c.bf16 %v1684_v47, %v1684_v47 }
0x12c0   :  { %1805 = vmatpush.bf16.msra.mxu1 %v3943_v16  ;;  %v4110_v16 = vor.u32 %v3239_v50, %v3147_v49 }
0x12c3   :  { %1793 = vmatpush.bf16.msra.mxu0 %v3955_v24  ;;  %v3139_v24 = vld [vmem:[#allocation11] sm:$0xf] }
0x12c4   :  { %1806 = vmatpush.bf16.msra.mxu1 %v3961_v48  ;;  %v3237_v48 = vld [vmem:[#allocation11 + $0x4] sm:$0xf0] }
0x12c5   :  { %v4115_v52 = vor.u32 %v3237_v48, %v3139_v24 }
0x12c6   :  { %3125 = vmatmul.msk.bf16.vlgmr.msrb.gmra.mxu2 %vm122_vm0, %v1621_v20  ;;  %3126 = vmatmul.msk.bf16.vlgmr.msrb.gmra.mxu3 %vm122_vm0, %v1621_v20 }
0x12c7   :  { %1763 = vmatpush.bf16.msrb.mxu2 %v4002_v61  ;;  %1776 = vmatpush.bf16.msrb.mxu3 %v4013_v0 }
0x12cb   :  { %1764 = vmatpush.bf16.msrb.mxu2 %v4022_v3  ;;  %1777 = vmatpush.bf16.msrb.mxu3 %v4025_v4 }
0x12ce   :  { %3131 = vmatmul.msk.bf16.vlgmr.msrb.gmra.mxu0 %vm122_vm0, %v1685_v13 }
0x12cf   :  { %3132 = vmatmul.msk.bf16.vlgmr.msrb.gmra.mxu1 %vm122_vm0, %v1685_v13  ;;  %1969 = vmatpush.bf16.msrb.mxu0 %v4110_v16 }
0x12d0   :  { %1982 = vmatpush.bf16.msrb.mxu1 %v4122_v30 }
0x12d3   :  { %1970 = vmatpush.bf16.msrb.mxu0 %v4115_v52 }
0x12d4   :  { %1983 = vmatpush.bf16.msrb.mxu1 %v4126_v58 }
0x12d6   :  { %3129 = vmatmul.msk.bf16.vlgmr.msra.gmra.mxu2 %vm122_vm0, %v1687_v53  ;;  %3130 = vmatmul.msk.bf16.vlgmr.msra.gmra.mxu3 %vm122_vm0, %v1687_v53 }
0x12d7   :  { %1842 = vmatpush.bf16.msra.mxu2 %v4110_v16  ;;  %1855 = vmatpush.bf16.msra.mxu3 %v4122_v30 }
0x12db   :  { %1843 = vmatpush.bf16.msra.mxu2 %v4115_v52  ;;  %1856 = vmatpush.bf16.msra.mxu3 %v4126_v58 }
0x12e6   :  { %3133 = vmatmul.msk.bf16.vlgmr.msrb.gmra.mxu2 %vm122_vm0, %v1753_v41  ;;  %3134 = vmatmul.msk.bf16.vlgmr.msrb.gmra.mxu3 %vm122_vm0, %v1753_v41 }
0x12e7   :  { %2109 = vmatpush.bf16.msrb.mxu3 %v4122_v30  ;;  %2096 = vmatpush.bf16.msrb.mxu2 %v4110_v16 }
0x12eb   :  { %2110 = vmatpush.bf16.msrb.mxu3 %v4126_v58  ;;  %2097 = vmatpush.bf16.msrb.mxu2 %v4115_v52 }
0x12f6   :  { %1844 = vmatmul.bf16.vlgmr.msra.gmra.mxu2 %v3621_v25  ;;  %1857 = vmatmul.bf16.vlgmr.msra.gmra.mxu3 %v3621_v25 }
0x12f7   :  { %2363 = vmatpush.bf16.msra.mxu3 %v4122_v30  ;;  %2350 = vmatpush.bf16.msra.mxu2 %v4110_v16 }
0x12f9   :  { %v1279_v61 = vpop.f32.mrf.mxu2  ;;  %v1292_v45 = vpop.f32.mrf.mxu3 }
0x12fa   :  { %v1329_v62 = vadd.f32 %v4070_v44, %v1279_v61  ;;  %v1342_v63 = vadd.f32 %v4073_v46, %v1292_v45 }
0x12fb   :  { %v1399_v0 = vpop.f32.mrf.mxu0  ;;  %v1412_v1 = vpop.f32.mrf.mxu1  ;;  %2364 = vmatpush.bf16.msra.mxu3 %v4126_v58  ;;  %2351 = vmatpush.bf16.msra.mxu2 %v4115_v52 }
0x12fc   :  { %v1350_v25 = vadd.f32 %v4143_v59, %v1329_v62  ;;  %v1351_v2 = vadd.f32 %v4145_v60, %v1342_v63 }
0x12fe   :  { %1352 = vst [vmem:[#allocation2] sm:$0x3] %v1350_v25 }
0x12ff   :  { %1353 = vst [vmem:[#allocation3] sm:$0x3] %v1351_v2 }
0x1300   :  { %v1221_v3 = vpop.permute.xlu1 %1220 }
0x1301   :  { %1224 = vst.msk [vmem:[#allocation4 + $0xe] sm:$0x3] %vm319_vm10, %v1221_v3  ;;  %v1281_v4 = vpop.f32.mrf.mxu2  ;;  %v1294_v5 = vpop.f32.mrf.mxu3 }
0x1303   :  { %v1401_v6 = vpop.f32.mrf.mxu0  ;;  %v1414_v8 = vpop.f32.mrf.mxu1 }
0x1308   :  { %v1750_v9 = vld [vmem:[#allocation4 + $0xe] sm:$0x3] }
0x1309   :  { %v1370_v10 = vpop.f32.mrf.mxu2  ;;  %v1383_v11 = vpop.f32.mrf.mxu3  ;;  %v1751_v12 = vpack.c.bf16 %v1750_v9, %v1750_v9 }
0x130a   :  { %v1400_v19 = vadd.f32 %v1399_v0, %v1370_v10  ;;  %v1413_v21 = vadd.f32 %v1412_v1, %v1383_v11 }
0x130b   :  { %v1465_v26 = vpop.f32.mrf.mxu0  ;;  %3135 = vmatmul.msk.bf16.vlgmr.msra.gmra.mxu0 %vm122_vm0, %v1751_v12  ;;  %3136 = vmatmul.msk.bf16.vlgmr.msra.gmra.mxu1 %vm122_vm0, %v1751_v12 }
0x130c   :  { %v1416_v34 = vadd.f32 %v1400_v19, %v4143_v59  ;;  %v1417_v36 = vadd.f32 %v1413_v21, %v4145_v60  ;;  %v1478_v37 = vpop.f32.mrf.mxu1  ;;  %2236 = vmatpush.bf16.msra.mxu1 %v4122_v30  ;;  %2223 = vmatpush.bf16.msra.mxu0 %v4110_v16 }
0x130e   :  { %1418 = vst [vmem:[#allocation2 + $0x2] sm:$0x3] %v1416_v34 }
0x130f   :  { %1419 = vst [vmem:[#allocation3 + $0x2] sm:$0x3] %v1417_v36 }
0x1310   :  { %2237 = vmatpush.bf16.msra.mxu1 %v4126_v58  ;;  %2224 = vmatpush.bf16.msra.mxu0 %v4115_v52 }
0x1311   :  { %v1372_v14 = vpop.f32.mrf.mxu2  ;;  %v1385_v40 = vpop.f32.mrf.mxu3 }
0x1313   :  { %v1467_v42 = vpop.f32.mrf.mxu0 }
0x1314   :  { %v1480_v43 = vpop.f32.mrf.mxu1 }
0x1319   :  { %v1436_v32 = vpop.f32.mrf.mxu2  ;;  %v1449_v27 = vpop.f32.mrf.mxu3 }
0x131a   :  { %v1466_v44 = vadd.f32 %v1465_v26, %v1436_v32  ;;  %v1479_v46 = vadd.f32 %v1478_v37, %v1449_v27 }
0x131b   :  { %v1531_v7 = vpop.f32.mrf.mxu0 }
0x131c   :  { %v1482_v22 = vadd.f32 %v1466_v44, %v4143_v59  ;;  %v1483_v33 = vadd.f32 %v1479_v46, %v4145_v60  ;;  %v1544_v29 = vpop.f32.mrf.mxu1  ;;  %v1862_v46 = vld [vmem:[#allocation2] sm:$0x3] }
0x131e   :  { %1484 = vst [vmem:[#allocation2 + $0x4] sm:$0x3] %v1482_v22 }
0x131f   :  { %1485 = vst [vmem:[#allocation3 + $0x4] sm:$0x3] %v1483_v33 }
0x1321   :  { %v1438_v31 = vpop.f32.mrf.mxu2  ;;  %v1451_v35 = vpop.f32.mrf.mxu3 }
0x1323   :  { %v1533_v17 = vpop.f32.mrf.mxu0 }
0x1324   :  { %v1546_v38 = vpop.f32.mrf.mxu1 }
0x1329   :  { %v1502_v39 = vpop.f32.mrf.mxu2  ;;  %v1515_v28 = vpop.f32.mrf.mxu3 }
0x132a   :  { %v1532_v23 = vadd.f32 %v1531_v7, %v1502_v39  ;;  %v1545_v20 = vadd.f32 %v1544_v29, %v1515_v28 }
0x132b   :  { %v1597_v47 = vpop.f32.mrf.mxu0 }
0x132c   :  { %v1548_v49 = vadd.f32 %v1532_v23, %v4143_v59  ;;  %v1549_v50 = vadd.f32 %v1545_v20, %v4145_v60  ;;  %v1610_v13 = vpop.f32.mrf.mxu1 }
0x132e   :  { %1550 = vst [vmem:[#allocation2 + $0x6] sm:$0x3] %v1548_v49 }
0x132f   :  { %1551 = vst [vmem:[#allocation3 + $0x6] sm:$0x3] %v1549_v50 }
0x1331   :  { %v1504_v24 = vpop.f32.mrf.mxu2  ;;  %v1517_v48 = vpop.f32.mrf.mxu3 }
0x1333   :  { %v1599_v51 = vpop.f32.mrf.mxu0 }
0x1334   :  { %v1612_v53 = vpop.f32.mrf.mxu1 }
0x1339   :  { %v1568_v54 = vpop.f32.mrf.mxu2  ;;  %v1581_v55 = vpop.f32.mrf.mxu3 }
0x133a   :  { %v1598_v56 = vadd.f32 %v1597_v47, %v1568_v54  ;;  %v1611_v18 = vadd.f32 %v1610_v13, %v1581_v55 }
0x133b   :  { %v1663_v57 = vpop.f32.mrf.mxu0 }
0x133c   :  { %v1614_v41 = vadd.f32 %v1598_v56, %v4143_v59  ;;  %v1615_v15 = vadd.f32 %v1611_v18, %v4145_v60  ;;  %v1676_v61 = vpop.f32.mrf.mxu1 }
0x133e   :  { %1616 = vst [vmem:[#allocation2 + $0x8] sm:$0x3] %v1614_v41 }
0x133f   :  { %1617 = vst [vmem:[#allocation3 + $0x8] sm:$0x3] %v1615_v15 }
0x1341   :  { %v1570_v45 = vpop.f32.mrf.mxu2  ;;  %v1583_v62 = vpop.f32.mrf.mxu3 }
0x1343   :  { %v1665_v63 = vpop.f32.mrf.mxu0 }
0x1344   :  { %v1678_v0 = vpop.f32.mrf.mxu1 }
0x1349   :  { %v1634_v1 = vpop.f32.mrf.mxu2  ;;  %v1647_v25 = vpop.f32.mrf.mxu3 }
0x134a   :  { %v1664_v2 = vadd.f32 %v1663_v57, %v1634_v1  ;;  %v1677_v3 = vadd.f32 %v1676_v61, %v1647_v25 }
0x134b   :  { %v1729_v4 = vpop.f32.mrf.mxu0 }
0x134c   :  { %v1680_v5 = vadd.f32 %v1664_v2, %v4143_v59  ;;  %v1681_v6 = vadd.f32 %v1677_v3, %v4145_v60  ;;  %v1742_v8 = vpop.f32.mrf.mxu1 }
0x134e   :  { %1682 = vst [vmem:[#allocation2 + $0xa] sm:$0x3] %v1680_v5 }
0x134f   :  { %1683 = vst [vmem:[#allocation3 + $0xa] sm:$0x3] %v1681_v6 }
0x1351   :  { %v1636_v9 = vpop.f32.mrf.mxu2  ;;  %v1649_v10 = vpop.f32.mrf.mxu3 }
0x1353   :  { %v1731_v11 = vpop.f32.mrf.mxu0 }
0x1354   :  { %v1744_v12 = vpop.f32.mrf.mxu1 }
0x1359   :  { %v1700_v19 = vpop.f32.mrf.mxu2  ;;  %v1713_v21 = vpop.f32.mrf.mxu3 }
0x135a   :  { %v1730_v26 = vadd.f32 %v1729_v4, %v1700_v19  ;;  %v1743_v34 = vadd.f32 %v1742_v8, %v1713_v21 }
0x135c   :  { %v1746_v36 = vadd.f32 %v1730_v26, %v4143_v59  ;;  %v1747_v37 = vadd.f32 %v1743_v34, %v4145_v60 }
0x135e   :  { %1748 = vst [vmem:[#allocation2 + $0xc] sm:$0x3] %v1746_v36 }
0x135f   :  { %1749 = vst [vmem:[#allocation3 + $0xc] sm:$0x3] %v1747_v37 }
0x1361   :  { %v1702_v14 = vpop.f32.mrf.mxu2  ;;  %v1715_v40 = vpop.f32.mrf.mxu3 }
0x1369   :  { %v1766_v42 = vpop.f32.mrf.mxu2  ;;  %v1779_v43 = vpop.f32.mrf.mxu3 }
0x1371   :  { %v1768_v32 = vpop.f32.mrf.mxu2  ;;  %v1781_v27 = vpop.f32.mrf.mxu3 }
0x1379   :  { %v1845_v44 = vpop.f32.mrf.mxu2  ;;  %v1858_v7 = vpop.f32.mrf.mxu3 }
0x137a   :  { %v1863_v22 = vadd.f32 %v1862_v46, %v1845_v44  ;;  %v1866_v49 = vrot.slane %v1858_v7, 2 }
0x137c   :  { %3386 = vtanh.f32 %v1863_v22  ;;  %v3153_v48 = vmul.f32 -1.442695, %v1863_v22 }
0x1381   :  { %v1860_v33 = vpop.f32.mrf.mxu3  ;;  %v1847_v29 = vpop.f32.mrf.mxu2 }
0x1382   :  { %v3387_v31 = vpop.eup %3386 }
0x1383   :  { %1891 = vrot.lane.b32.xlu0 %v3387_v31, %s3622_s3  ;;  %v1989_v31 = vld [vmem:[#allocation2 + $0x2] sm:$0x3] }
0x1388   :  { %v1795_v35 = vpop.f32.mrf.mxu0  ;;  %v1808_v17 = vpop.f32.mrf.mxu1 }
0x1389   :  { %v1796_v38 = vadd.f32 %v1795_v35, %v1766_v42  ;;  %v1809_v39 = vadd.f32 %v1808_v17, %v1779_v43 }
0x138b   :  { %v1812_v28 = vadd.f32 %v1796_v38, %v4143_v59  ;;  %v1813_v23 = vadd.f32 %v1809_v39, %v4145_v60  ;;  %v1991_v39 = vld [vmem:[#allocation3 + $0xc] sm:$0x3] }
0x138d   :  { %1814 = vst [vmem:[#allocation2 + $0xe] sm:$0x3] %v1812_v28 }
0x138e   :  { %1815 = vst [vmem:[#allocation3 + $0xe] sm:$0x3] %v1813_v23 }
0x1390   :  { %v1797_v20 = vpop.f32.mrf.mxu0  ;;  %v1810_v47 = vpop.f32.mrf.mxu1 }
0x1395   :  { %v1864_v50 = vld [vmem:[#allocation3 + $0xe] sm:$0x3] }
0x1396   :  { %v1868_v13 = vadd.f32 %v1866_v49, %v1864_v50 }
0x1398   :  { %3388 = vtanh.f32 %v1868_v13  ;;  %v3154_v51 = vmul.f32 -1.442695, %v1868_v13 }
0x1399   :  { %3390 = vpow2.f32 %v3153_v48 }
0x139a   :  { %3392 = vpow2.f32 %v3154_v51 }
0x139e   :  { %v3389_v24 = vpop.eup %3388 }
0x139f   :  { %1928 = vrot.lane.b32.xlu2 %v3389_v24, %s3622_s3  ;;  %v3391_v53 = vpop.eup %3390 }
0x13a0   :  { %v1872_v54 = vadd.f32 1.0, %v3391_v53  ;;  %v3393_v59 = vpop.eup %3392 }
0x13a1   :  { %v1909_v60 = vadd.f32 1.0, %v3393_v59 }
0x13a2   :  { %3394 = vrcp.f32 %v1872_v54  ;;  %v1884_v63 = vand.u32 2147483648, %v1872_v54  ;;  %vm1878_vm12 = vweird.f32 %v1872_v54  ;;  %v1882_v0 = vand.u32 2147483647, %v1872_v54 }
0x13a3   :  { %3396 = vrcp.f32 %v1909_v60  ;;  %v1921_v3 = vand.u32 2147483648, %v1909_v60  ;;  %vm1915_vm1 = vweird.f32 %v1909_v60  ;;  %v1919_v4 = vand.u32 2147483647, %v1909_v60 }
0x13a4   :  { %v1885_v2 = vor.u32 1.1754944e-38, %v1884_v63  ;;  %vm1883_vm15 = vcmp.eq.f32.partialorder %v1882_v0, 8.507059e+37 }
0x13a5   :  { %v1922_v10 = vor.u32 1.1754944e-38, %v1921_v3  ;;  %vm1920_vm3 = vcmp.eq.f32.partialorder %v1919_v4, 8.507059e+37 }
0x13a8   :  { %v3395_v55 = vpop.eup %3394 }
0x13a9   :  { %v1874_v56 = vmul.f32 %v3395_v55, %v1872_v54  ;;  %v3397_v18 = vpop.eup %3396  ;;  %vm1879_vm11 = vweird.f32 %v3395_v55 }
0x13aa   :  { %v1911_v41 = vmul.f32 %v3397_v18, %v1909_v60  ;;  %vm1880_vm13 = vmor %vm1878_vm12, %vm1879_vm11  ;;  %vm1916_vm14 = vweird.f32 %v3397_v18 }
0x13ab   :  { %v1875_v57 = vsub.f32 1.0, %v1874_v56  ;;  %vm1917_vm2 = vmor %vm1915_vm1, %vm1916_vm14 }
0x13ac   :  { %v1912_v61 = vsub.f32 1.0, %v1911_v41 }
0x13ad   :  { %v1876_v15 = vmul.f32 %v3395_v55, %v1875_v57 }
0x13ae   :  { %v1913_v62 = vmul.f32 %v3397_v18, %v1912_v61 }
0x13af   :  { %v1877_v45 = vadd.f32 %v3395_v55, %v1876_v15 }
0x13b0   :  { %v1914_v25 = vadd.f32 %v3397_v18, %v1913_v62 }
0x13b1   :  { %v1881_v1 = vsel %vm1880_vm13, %v3395_v55, %v1877_v45 }
0x13b2   :  { %v1886_v6 = vsel %vm1883_vm15, %v1885_v2, %v1881_v1  ;;  %v1918_v9 = vsel %vm1917_vm2, %v3397_v18, %v1914_v25 }
0x13b3   :  { %v1923_v12 = vsel %vm1920_vm3, %v1922_v10, %v1918_v9  ;;  %v1889_v21 = vmul.f32 0.0, %v1886_v6 }
0x13b4   :  { %v1926_v37 = vmul.f32 0.0, %v1923_v12 }
0x13f5   :  { %v1892_v5 = vpop.permute.xlu0 %1891 }
0x13f6   :  { %v1894_v8 = vmul.f32 %v1892_v5, %v1886_v6 }
0x13f8   :  { %1896 = vrot.lane.b32.xlu2 %v1894_v8, %s3622_s3 }
0x13f9   :  { %v1929_v11 = vpop.permute.xlu2 %1928 }
0x13fa   :  { %v1931_v19 = vmul.f32 %v1929_v11, %v1923_v12 }
0x13fc   :  { %1933 = vrot.lane.b32.xlu1 %v1931_v19, %s3622_s3 }
0x1452   :  { %v1897_v26 = vpop.permute.xlu2 %1896 }
0x1453   :  { %v4178_v34 = vadd.f32 %v1897_v26, %v1889_v21 }
0x1455   :  { %3398 = vtanh.f32 %v4178_v34 }
0x145b   :  { %v3399_v36 = vpop.eup %3398 }
0x145c   :  { %1902 = vrot.lane.b32.xlu1 %v3399_v36, %s3622_s3 }
0x146e   :  { %v1934_v14 = vpop.permute.xlu1 %1933 }
0x146f   :  { %v4182_v40 = vadd.f32 %v1934_v14, %v1926_v37 }
0x1471   :  { %3400 = vtanh.f32 %v4182_v40 }
0x1477   :  { %v3401_v42 = vpop.eup %3400 }
0x1478   :  { %1939 = vrot.lane.b32.xlu0 %v3401_v42, %s3622_s3 }
0x14ce   :  { %v1903_v43 = vpop.permute.xlu1 %1902 }
0x14cf   :  { %v4188_v44 = vmul.f32 %v1903_v43, %v1886_v6 }
0x14ea   :  { %v1940_v32 = vpop.permute.xlu0 %1939 }
0x14eb   :  { %v4186_v27 = vmul.f32 %v1940_v32, %v1923_v12 }
0x14ed   :  { %v1953_v46 = vrot.slane %v4186_v27, 6 }
0x14ef   :  { %v1955_v7 = vsel %vm329_vm9, %v4188_v44, %v1953_v46 }
0x14f0   :  { %v1956_v22 = vpack.c.bf16 %v1955_v7, %v1955_v7 }
0x14f2   :  { %1958 = vrot.lane.b32.xlu2 %v1956_v22, %s3623_s26 }
0x154c   :  { %v1959_v33 = vpop.permute.xlu2 %1958 }
0x154d   :  { %3155 = vmatmul.msk.bf16.vlgmr.msrb.gmra.mxu0 %vm122_vm0, %v1959_v33  ;;  %3156 = vmatmul.msk.bf16.vlgmr.msrb.gmra.mxu1 %vm122_vm0, %v1959_v33 }
0x154e   :  { %2490 = vmatpush.bf16.msrb.mxu1 %v4122_v30  ;;  %2477 = vmatpush.bf16.msrb.mxu0 %v4110_v16 }
0x1552   :  { %2491 = vmatpush.bf16.msrb.mxu1 %v4126_v58  ;;  %2478 = vmatpush.bf16.msrb.mxu0 %v4115_v52 }
0x15ca   :  { %v1972_v29 = vpop.f32.mrf.mxu0  ;;  %v1985_v35 = vpop.f32.mrf.mxu1 }
0x15cb   :  { %v1990_v17 = vadd.f32 %v1989_v31, %v1972_v29  ;;  %v1993_v38 = vrot.slane %v1985_v35, 2  ;;  %v2116_v29 = vld [vmem:[#allocation2 + $0x4] sm:$0x3] }
0x15cd   :  { %3402 = vtanh.f32 %v1990_v17  ;;  %v1995_v28 = vadd.f32 %v1993_v38, %v1991_v39  ;;  %v3157_v50 = vmul.f32 -1.442695, %v1990_v17  ;;  %v2118_v38 = vld [vmem:[#allocation3 + $0xa] sm:$0x3] }
0x15cf   :  { %3404 = vtanh.f32 %v1995_v28  ;;  %v3158_v13 = vmul.f32 -1.442695, %v1995_v28 }
0x15d0   :  { %3406 = vpow2.f32 %v3157_v50 }
0x15d1   :  { %3408 = vpow2.f32 %v3158_v13 }
0x15d2   :  { %v1974_v23 = vpop.f32.mrf.mxu0  ;;  %v1987_v20 = vpop.f32.mrf.mxu1 }
0x15d3   :  { %v3403_v47 = vpop.eup %3402 }
0x15d4   :  { %2018 = vrot.lane.b32.xlu1 %v3403_v47, %s3622_s3 }
0x15d5   :  { %v3405_v49 = vpop.eup %3404 }
0x15d6   :  { %2055 = vrot.lane.b32.xlu0 %v3405_v49, %s3622_s3  ;;  %v3407_v24 = vpop.eup %3406 }
0x15d7   :  { %v3409_v48 = vpop.eup %3408  ;;  %v1999_v51 = vadd.f32 1.0, %v3407_v24 }
0x15d8   :  { %v2036_v53 = vadd.f32 1.0, %v3409_v48 }
0x15d9   :  { %3410 = vrcp.f32 %v1999_v51  ;;  %v2011_v61 = vand.u32 2147483648, %v1999_v51  ;;  %vm2005_vm5 = vweird.f32 %v1999_v51  ;;  %v2009_v45 = vand.u32 2147483647, %v1999_v51 }
0x15da   :  { %3412 = vrcp.f32 %v2036_v53  ;;  %v2048_v0 = vand.u32 2147483648, %v2036_v53  ;;  %vm2042_vm8 = vweird.f32 %v2036_v53  ;;  %v2046_v25 = vand.u32 2147483647, %v2036_v53 }
0x15db   :  { %v2012_v1 = vor.u32 1.1754944e-38, %v2011_v61  ;;  %vm2010_vm11 = vcmp.eq.f32.partialorder %v2009_v45, 8.507059e+37 }
0x15dc   :  { %v2049_v6 = vor.u32 1.1754944e-38, %v2048_v0  ;;  %vm2047_vm13 = vcmp.eq.f32.partialorder %v2046_v25, 8.507059e+37 }
0x15df   :  { %v3411_v54 = vpop.eup %3410 }
0x15e0   :  { %v3413_v59 = vpop.eup %3412  ;;  %v2001_v60 = vmul.f32 %v3411_v54, %v1999_v51  ;;  %vm2006_vm4 = vweird.f32 %v3411_v54 }
0x15e1   :  { %v2038_v55 = vmul.f32 %v3413_v59, %v2036_v53  ;;  %vm2007_vm6 = vmor %vm2005_vm5, %vm2006_vm4  ;;  %vm2043_vm7 = vweird.f32 %v3413_v59 }
0x15e2   :  { %v2002_v56 = vsub.f32 1.0, %v2001_v60  ;;  %vm2044_vm12 = vmor %vm2042_vm8, %vm2043_vm7 }
0x15e3   :  { %v2039_v18 = vsub.f32 1.0, %v2038_v55 }
0x15e4   :  { %v2003_v57 = vmul.f32 %v3411_v54, %v2002_v56 }
0x15e5   :  { %v2040_v41 = vmul.f32 %v3413_v59, %v2039_v18 }
0x15e6   :  { %v2004_v15 = vadd.f32 %v3411_v54, %v2003_v57 }
0x15e7   :  { %v2041_v62 = vadd.f32 %v3413_v59, %v2040_v41 }
0x15e8   :  { %v2008_v63 = vsel %vm2007_vm6, %v3411_v54, %v2004_v15 }
0x15e9   :  { %v2013_v3 = vsel %vm2010_vm11, %v2012_v1, %v2008_v63  ;;  %v2045_v4 = vsel %vm2044_vm12, %v3413_v59, %v2041_v62 }
0x15ea   :  { %v2050_v9 = vsel %vm2047_vm13, %v2049_v6, %v2045_v4  ;;  %v2016_v26 = vmul.f32 %v2013_v3, %v4178_v34 }
0x15eb   :  { %v2053_v11 = vmul.f32 %v2050_v9, %v4182_v40 }
0x1646   :  { %v2019_v2 = vpop.permute.xlu1 %2018 }
0x1647   :  { %v2021_v5 = vmul.f32 %v2019_v2, %v2013_v3 }
0x1648   :  { %v2056_v8 = vpop.permute.xlu0 %2055 }
0x1649   :  { %2023 = vrot.lane.b32.xlu0 %v2021_v5, %s3622_s3  ;;  %v2058_v10 = vmul.f32 %v2056_v8, %v2050_v9 }
0x164b   :  { %2060 = vrot.lane.b32.xlu2 %v2058_v10, %s3622_s3 }
0x16a5   :  { %v2061_v12 = vpop.permute.xlu2 %2060 }
0x16a6   :  { %v4205_v19 = vadd.f32 %v2061_v12, %v2053_v11 }
0x16a8   :  { %3414 = vtanh.f32 %v4205_v19 }
0x16ae   :  { %v3415_v21 = vpop.eup %3414 }
0x16af   :  { %2066 = vrot.lane.b32.xlu1 %v3415_v21, %s3622_s3 }
0x16bb   :  { %v2024_v36 = vpop.permute.xlu0 %2023 }
0x16bc   :  { %v4210_v37 = vadd.f32 %v2024_v36, %v2016_v26 }
0x16be   :  { %3416 = vtanh.f32 %v4210_v37 }
0x16c4   :  { %v3417_v14 = vpop.eup %3416 }
0x16c5   :  { %2029 = vrot.lane.b32.xlu2 %v3417_v14, %s3622_s3 }
0x171f   :  { %v2030_v42 = vpop.permute.xlu2 %2029 }
0x1720   :  { %v4216_v32 = vmul.f32 %v2030_v42, %v2013_v3 }
0x1721   :  { %v2067_v40 = vpop.permute.xlu1 %2066 }
0x1722   :  { %v4214_v43 = vmul.f32 %v2067_v40, %v2050_v9 }
0x1724   :  { %v2080_v46 = vrot.slane %v4214_v43, 6 }
0x1726   :  { %v2082_v7 = vsel %vm329_vm9, %v4216_v32, %v2080_v46 }
0x1727   :  { %v2083_v34 = vpack.c.bf16 %v2082_v7, %v2082_v7 }
0x1729   :  { %2085 = vrot.lane.b32.xlu0 %v2083_v34, %s3623_s26 }
0x179b   :  { %v2086_v22 = vpop.permute.xlu0 %2085 }
0x179c   :  { %3159 = vmatmul.msk.bf16.vlgmr.msrb.gmra.mxu2 %vm122_vm0, %v2086_v22  ;;  %3160 = vmatmul.msk.bf16.vlgmr.msrb.gmra.mxu3 %vm122_vm0, %v2086_v22 }
0x179d   :  { %2617 = vmatpush.bf16.msrb.mxu3 %v4122_v30  ;;  %2604 = vmatpush.bf16.msrb.mxu2 %v4110_v16 }
0x17a1   :  { %2618 = vmatpush.bf16.msrb.mxu3 %v4126_v58  ;;  %2605 = vmatpush.bf16.msrb.mxu2 %v4115_v52 }
0x181f   :  { %v2099_v33 = vpop.f32.mrf.mxu2  ;;  %v2112_v31 = vpop.f32.mrf.mxu3 }
0x1820   :  { %v2117_v35 = vadd.f32 %v2116_v29, %v2099_v33  ;;  %v2120_v17 = vrot.slane %v2112_v31, 2  ;;  %v2243_v31 = vld [vmem:[#allocation2 + $0x6] sm:$0x3] }
0x1822   :  { %3418 = vtanh.f32 %v2117_v35  ;;  %v2122_v39 = vadd.f32 %v2120_v17, %v2118_v38  ;;  %v3161_v49 = vmul.f32 -1.442695, %v2117_v35 }
0x1824   :  { %3420 = vtanh.f32 %v2122_v39  ;;  %v3162_v51 = vmul.f32 -1.442695, %v2122_v39  ;;  %v2245_v39 = vld [vmem:[#allocation3 + $0x8] sm:$0x3] }
0x1825   :  { %3422 = vpow2.f32 %v3161_v49 }
0x1827   :  { %v2101_v28 = vpop.f32.mrf.mxu2  ;;  %v2114_v23 = vpop.f32.mrf.mxu3 }
0x1828   :  { %v3419_v20 = vpop.eup %3418 }
0x1829   :  { %2145 = vrot.lane.b32.xlu2 %v3419_v20, %s3622_s3 }
0x182a   :  { %v3421_v47 = vpop.eup %3420 }
0x182b   :  { %2182 = vrot.lane.b32.xlu1 %v3421_v47, %s3622_s3  ;;  %v3423_v50 = vpop.eup %3422 }
0x182c   :  { %v2126_v13 = vadd.f32 1.0, %v3423_v50 }
0x182e   :  { %3424 = vrcp.f32 %v2126_v13  ;;  %v2138_v55 = vand.u32 2147483648, %v2126_v13  ;;  %vm2132_vm15 = vweird.f32 %v2126_v13  ;;  %v2136_v18 = vand.u32 2147483647, %v2126_v13 }
0x182f   :  { %3426 = vpow2.f32 %v3162_v51 }
0x1830   :  { %v2139_v41 = vor.u32 1.1754944e-38, %v2138_v55  ;;  %vm2137_vm2 = vcmp.eq.f32.partialorder %v2136_v18, 8.507059e+37 }
0x1834   :  { %v3425_v24 = vpop.eup %3424 }
0x1835   :  { %v2128_v48 = vmul.f32 %v3425_v24, %v2126_v13  ;;  %v3427_v59 = vpop.eup %3426  ;;  %vm2133_vm14 = vweird.f32 %v3425_v24 }
0x1836   :  { %v2163_v56 = vadd.f32 1.0, %v3427_v59  ;;  %vm2134_vm1 = vmor %vm2132_vm15, %vm2133_vm14 }
0x1837   :  { %v2129_v53 = vsub.f32 1.0, %v2128_v48 }
0x1838   :  { %3428 = vrcp.f32 %v2163_v56  ;;  %v2175_v2 = vand.u32 2147483648, %v2163_v56  ;;  %vm2169_vm4 = vweird.f32 %v2163_v56  ;;  %v2173_v3 = vand.u32 2147483647, %v2163_v56 }
0x1839   :  { %v2130_v54 = vmul.f32 %v3425_v24, %v2129_v53 }
0x183a   :  { %v2176_v5 = vor.u32 1.1754944e-38, %v2175_v2  ;;  %vm2174_vm6 = vcmp.eq.f32.partialorder %v2173_v3, 8.507059e+37 }
0x183b   :  { %v2131_v60 = vadd.f32 %v3425_v24, %v2130_v54 }
0x183d   :  { %v2135_v57 = vsel %vm2134_vm1, %v3425_v24, %v2131_v60 }
0x183e   :  { %v2140_v61 = vsel %vm2137_vm2, %v2139_v41, %v2135_v57  ;;  %v3429_v62 = vpop.eup %3428 }
0x183f   :  { %v2165_v63 = vmul.f32 %v3429_v62, %v2163_v56  ;;  %vm2170_vm3 = vweird.f32 %v3429_v62  ;;  %v2143_v10 = vmul.f32 %v2140_v61, %v4210_v37 }
0x1840   :  { %vm2171_vm5 = vmor %vm2169_vm4, %vm2170_vm3 }
0x1841   :  { %v2166_v0 = vsub.f32 1.0, %v2165_v63 }
0x1843   :  { %v2167_v1 = vmul.f32 %v3429_v62, %v2166_v0 }
0x1845   :  { %v2168_v25 = vadd.f32 %v3429_v62, %v2167_v1 }
0x1847   :  { %v2172_v4 = vsel %vm2171_vm5, %v3429_v62, %v2168_v25 }
0x1848   :  { %v2177_v8 = vsel %vm2174_vm6, %v2176_v5, %v2172_v4 }
0x1849   :  { %v2180_v26 = vmul.f32 %v2177_v8, %v4205_v19 }
0x1883   :  { %v2146_v15 = vpop.permute.xlu2 %2145 }
0x1884   :  { %v2148_v45 = vmul.f32 %v2146_v15, %v2140_v61 }
0x1886   :  { %2150 = vrot.lane.b32.xlu1 %v2148_v45, %s3622_s3 }
0x189d   :  { %v2183_v6 = vpop.permute.xlu1 %2182 }
0x189e   :  { %v2185_v9 = vmul.f32 %v2183_v6, %v2177_v8 }
0x18a0   :  { %2187 = vrot.lane.b32.xlu0 %v2185_v9, %s3622_s3 }
0x18f8   :  { %v2151_v11 = vpop.permute.xlu1 %2150 }
0x18f9   :  { %v4233_v12 = vadd.f32 %v2151_v11, %v2143_v10 }
0x18fb   :  { %3430 = vtanh.f32 %v4233_v12 }
0x1901   :  { %v3431_v21 = vpop.eup %3430 }
0x1902   :  { %2156 = vrot.lane.b32.xlu0 %v3431_v21, %s3622_s3 }
0x1912   :  { %v2188_v36 = vpop.permute.xlu0 %2187 }
0x1913   :  { %v4238_v14 = vadd.f32 %v2188_v36, %v2180_v26 }
0x1915   :  { %3432 = vtanh.f32 %v4238_v14 }
0x191b   :  { %v3433_v42 = vpop.eup %3432 }
0x191c   :  { %2193 = vrot.lane.b32.xlu2 %v3433_v42, %s3622_s3 }
0x1974   :  { %v2157_v40 = vpop.permute.xlu0 %2156 }
0x1975   :  { %v4244_v7 = vmul.f32 %v2157_v40, %v2140_v61 }
0x1976   :  { %v2194_v37 = vpop.permute.xlu2 %2193 }
0x1977   :  { %v4242_v46 = vmul.f32 %v2194_v37, %v2177_v8 }
0x1979   :  { %v2207_v34 = vrot.slane %v4242_v46, 6 }
0x197b   :  { %v2209_v22 = vsel %vm329_vm9, %v4244_v7, %v2207_v34 }
0x197c   :  { %v2210_v19 = vpack.c.bf16 %v2209_v22, %v2209_v22 }
0x197e   :  { %2212 = vrot.lane.b32.xlu1 %v2210_v19, %s3623_s26 }
0x19f0   :  { %v2213_v33 = vpop.permute.xlu1 %2212 }
0x19f1   :  { %3163 = vmatmul.msk.bf16.vlgmr.msra.gmra.mxu0 %vm122_vm0, %v2213_v33  ;;  %3164 = vmatmul.msk.bf16.vlgmr.msra.gmra.mxu1 %vm122_vm0, %v2213_v33 }
0x19f2   :  { %2744 = vmatpush.bf16.msra.mxu1 %v4122_v30  ;;  %2731 = vmatpush.bf16.msra.mxu0 %v4110_v16 }
0x19f6   :  { %2745 = vmatpush.bf16.msra.mxu1 %v4126_v58  ;;  %2732 = vmatpush.bf16.msra.mxu0 %v4115_v52 }
0x1a6e   :  { %v2226_v29 = vpop.f32.mrf.mxu0  ;;  %v2239_v35 = vpop.f32.mrf.mxu1 }
0x1a6f   :  { %v2244_v17 = vadd.f32 %v2243_v31, %v2226_v29  ;;  %v2247_v38 = vrot.slane %v2239_v35, 2  ;;  %v2370_v29 = vld [vmem:[#allocation2 + $0x8] sm:$0x3] }
0x1a71   :  { %3434 = vtanh.f32 %v2244_v17  ;;  %v2249_v28 = vadd.f32 %v2247_v38, %v2245_v39  ;;  %v3165_v49 = vmul.f32 -1.442695, %v2244_v17  ;;  %v2372_v38 = vld [vmem:[#allocation3 + $0x6] sm:$0x3] }
0x1a73   :  { %3436 = vtanh.f32 %v2249_v28  ;;  %v3166_v16 = vmul.f32 -1.442695, %v2249_v28 }
0x1a75   :  { %3438 = vpow2.f32 %v3166_v16 }
0x1a76   :  { %v2228_v23 = vpop.f32.mrf.mxu0  ;;  %v2241_v20 = vpop.f32.mrf.mxu1 }
0x1a77   :  { %v3435_v47 = vpop.eup %3434 }
0x1a78   :  { %2272 = vrot.lane.b32.xlu0 %v3435_v47, %s3622_s3 }
0x1a79   :  { %v3437_v30 = vpop.eup %3436 }
0x1a7a   :  { %2309 = vrot.lane.b32.xlu2 %v3437_v30, %s3622_s3 }
0x1a7b   :  { %v3439_v52 = vpop.eup %3438 }
0x1a7c   :  { %v2290_v58 = vadd.f32 1.0, %v3439_v52 }
0x1a7e   :  { %3440 = vrcp.f32 %v2290_v58  ;;  %v2302_v59 = vand.u32 2147483648, %v2290_v58  ;;  %vm2296_vm8 = vweird.f32 %v2290_v58  ;;  %v2300_v60 = vand.u32 2147483647, %v2290_v58 }
0x1a7f   :  { %3442 = vpow2.f32 %v3165_v49 }
0x1a80   :  { %v2303_v56 = vor.u32 1.1754944e-38, %v2302_v59  ;;  %vm2301_vm12 = vcmp.eq.f32.partialorder %v2300_v60, 8.507059e+37 }
0x1a84   :  { %v3441_v50 = vpop.eup %3440 }
0x1a85   :  { %v2292_v13 = vmul.f32 %v3441_v50, %v2290_v58  ;;  %v3443_v48 = vpop.eup %3442  ;;  %vm2297_vm7 = vweird.f32 %v3441_v50 }
0x1a86   :  { %v2253_v51 = vadd.f32 1.0, %v3443_v48  ;;  %vm2298_vm11 = vmor %vm2296_vm8, %vm2297_vm7 }
0x1a87   :  { %v2293_v24 = vsub.f32 1.0, %v2292_v13 }
0x1a88   :  { %3444 = vrcp.f32 %v2253_v51  ;;  %v2265_v0 = vand.u32 2147483648, %v2253_v51  ;;  %vm2259_vm14 = vweird.f32 %v2253_v51  ;;  %v2263_v1 = vand.u32 2147483647, %v2253_v51 }
0x1a89   :  { %v2294_v53 = vmul.f32 %v3441_v50, %v2293_v24 }
0x1a8a   :  { %v2266_v2 = vor.u32 1.1754944e-38, %v2265_v0  ;;  %vm2264_vm1 = vcmp.eq.f32.partialorder %v2263_v1, 8.507059e+37 }
0x1a8b   :  { %v2295_v54 = vadd.f32 %v3441_v50, %v2294_v53 }
0x1a8d   :  { %v2299_v55 = vsel %vm2298_vm11, %v3441_v50, %v2295_v54 }
0x1a8e   :  { %v3445_v18 = vpop.eup %3444  ;;  %v2304_v41 = vsel %vm2301_vm12, %v2303_v56, %v2299_v55 }
0x1a8f   :  { %v2255_v61 = vmul.f32 %v3445_v18, %v2253_v51  ;;  %vm2260_vm13 = vweird.f32 %v3445_v18  ;;  %v2307_v10 = vmul.f32 %v2304_v41, %v4238_v14 }
0x1a90   :  { %vm2261_vm15 = vmor %vm2259_vm14, %vm2260_vm13 }
0x1a91   :  { %v2256_v45 = vsub.f32 1.0, %v2255_v61 }
0x1a93   :  { %v2257_v62 = vmul.f32 %v3445_v18, %v2256_v45 }
0x1a95   :  { %v2258_v63 = vadd.f32 %v3445_v18, %v2257_v62 }
0x1a97   :  { %v2262_v25 = vsel %vm2261_vm15, %v3445_v18, %v2258_v63 }
0x1a98   :  { %v2267_v4 = vsel %vm2264_vm1, %v2266_v2, %v2262_v25 }
0x1a99   :  { %v2270_v6 = vmul.f32 %v2267_v4, %v4233_v12 }
0x1ad4   :  { %v2310_v57 = vpop.permute.xlu2 %2309 }
0x1ad5   :  { %v2312_v15 = vmul.f32 %v2310_v57, %v2304_v41 }
0x1ad7   :  { %2314 = vrot.lane.b32.xlu1 %v2312_v15, %s3622_s3 }
0x1aea   :  { %v2273_v3 = vpop.permute.xlu0 %2272 }
0x1aeb   :  { %v2275_v5 = vmul.f32 %v2273_v3, %v2267_v4 }
0x1aed   :  { %2277 = vrot.lane.b32.xlu2 %v2275_v5, %s3622_s3 }
0x1b47   :  { %v2278_v8 = vpop.permute.xlu2 %2277 }
0x1b48   :  { %v4261_v9 = vadd.f32 %v2278_v8, %v2270_v6 }
0x1b49   :  { %v2315_v11 = vpop.permute.xlu1 %2314 }
0x1b4a   :  { %3446 = vtanh.f32 %v4261_v9  ;;  %v4265_v21 = vadd.f32 %v2315_v11, %v2307_v10 }
0x1b4c   :  { %3448 = vtanh.f32 %v4265_v21 }
0x1b50   :  { %v3447_v26 = vpop.eup %3446 }
0x1b51   :  { %2283 = vrot.lane.b32.xlu1 %v3447_v26, %s3622_s3 }
0x1b52   :  { %v3449_v36 = vpop.eup %3448 }
0x1b53   :  { %2320 = vrot.lane.b32.xlu0 %v3449_v36, %s3622_s3 }
0x1bc3   :  { %v2284_v42 = vpop.permute.xlu1 %2283 }
0x1bc4   :  { %v4272_v37 = vmul.f32 %v2284_v42, %v2267_v4 }
0x1bc5   :  { %v2321_v12 = vpop.permute.xlu0 %2320 }
0x1bc6   :  { %v4270_v40 = vmul.f32 %v2321_v12, %v2304_v41 }
0x1bc8   :  { %v2334_v14 = vrot.slane %v4270_v40, 6 }
0x1bca   :  { %v2336_v34 = vsel %vm329_vm9, %v4272_v37, %v2334_v14 }
0x1bcb   :  { %v2337_v22 = vpack.c.bf16 %v2336_v34, %v2336_v34 }
0x1bcd   :  { %2339 = vrot.lane.b32.xlu2 %v2337_v22, %s3623_s26 }
0x1c27   :  { %v2340_v19 = vpop.permute.xlu2 %2339 }
0x1c28   :  { %3167 = vmatmul.msk.bf16.vlgmr.msra.gmra.mxu2 %vm122_vm0, %v2340_v19  ;;  %3168 = vmatmul.msk.bf16.vlgmr.msra.gmra.mxu3 %vm122_vm0, %v2340_v19 }
0x1cab   :  { %v2353_v33 = vpop.f32.mrf.mxu2  ;;  %v2366_v31 = vpop.f32.mrf.mxu3 }
0x1cac   :  { %v2371_v35 = vadd.f32 %v2370_v29, %v2353_v33  ;;  %v2374_v17 = vrot.slane %v2366_v31, 2  ;;  %v2497_v31 = vld [vmem:[#allocation2 + $0xa] sm:$0x3] }
0x1cae   :  { %3450 = vtanh.f32 %v2371_v35  ;;  %v2376_v39 = vadd.f32 %v2374_v17, %v2372_v38  ;;  %v3169_v30 = vmul.f32 -1.442695, %v2371_v35 }
0x1cb0   :  { %3452 = vtanh.f32 %v2376_v39  ;;  %v3170_v16 = vmul.f32 -1.442695, %v2376_v39  ;;  %v2499_v39 = vld [vmem:[#allocation3 + $0x4] sm:$0x3] }
0x1cb1   :  { %3454 = vpow2.f32 %v3169_v30 }
0x1cb2   :  { %3456 = vpow2.f32 %v3170_v16 }
0x1cb3   :  { %v2355_v28 = vpop.f32.mrf.mxu2  ;;  %v2368_v23 = vpop.f32.mrf.mxu3 }
0x1cb4   :  { %v3451_v20 = vpop.eup %3450 }
0x1cb5   :  { %2399 = vrot.lane.b32.xlu1 %v3451_v20, %s3622_s3 }
0x1cb6   :  { %v3453_v47 = vpop.eup %3452 }
0x1cb7   :  { %2436 = vrot.lane.b32.xlu0 %v3453_v47, %s3622_s3  ;;  %v3455_v52 = vpop.eup %3454 }
0x1cb8   :  { %v3457_v58 = vpop.eup %3456  ;;  %v2380_v49 = vadd.f32 1.0, %v3455_v52 }
0x1cb9   :  { %v2417_v50 = vadd.f32 1.0, %v3457_v58 }
0x1cba   :  { %3458 = vrcp.f32 %v2380_v49  ;;  %v2392_v56 = vand.u32 2147483648, %v2380_v49  ;;  %vm2386_vm3 = vweird.f32 %v2380_v49  ;;  %v2390_v18 = vand.u32 2147483647, %v2380_v49 }
0x1cbb   :  { %3460 = vrcp.f32 %v2417_v50  ;;  %v2429_v15 = vand.u32 2147483648, %v2417_v50  ;;  %vm2423_vm6 = vweird.f32 %v2417_v50  ;;  %v2427_v45 = vand.u32 2147483647, %v2417_v50 }
0x1cbc   :  { %v2393_v61 = vor.u32 1.1754944e-38, %v2392_v56  ;;  %vm2391_vm7 = vcmp.eq.f32.partialorder %v2390_v18, 8.507059e+37 }
0x1cbd   :  { %v2430_v25 = vor.u32 1.1754944e-38, %v2429_v15  ;;  %vm2428_vm11 = vcmp.eq.f32.partialorder %v2427_v45, 8.507059e+37 }
0x1cc0   :  { %v3459_v13 = vpop.eup %3458 }
0x1cc1   :  { %v3461_v24 = vpop.eup %3460  ;;  %v2382_v48 = vmul.f32 %v3459_v13, %v2380_v49  ;;  %vm2387_vm2 = vweird.f32 %v3459_v13 }
0x1cc2   :  { %v2419_v51 = vmul.f32 %v3461_v24, %v2417_v50  ;;  %vm2388_vm4 = vmor %vm2386_vm3, %vm2387_vm2  ;;  %vm2424_vm5 = vweird.f32 %v3461_v24 }
0x1cc3   :  { %v2383_v53 = vsub.f32 1.0, %v2382_v48  ;;  %vm2425_vm8 = vmor %vm2423_vm6, %vm2424_vm5 }
0x1cc4   :  { %v2420_v54 = vsub.f32 1.0, %v2419_v51 }
0x1cc5   :  { %v2384_v59 = vmul.f32 %v3459_v13, %v2383_v53 }
0x1cc6   :  { %v2421_v60 = vmul.f32 %v3461_v24, %v2420_v54 }
0x1cc7   :  { %v2385_v55 = vadd.f32 %v3459_v13, %v2384_v59 }
0x1cc8   :  { %v2422_v57 = vadd.f32 %v3461_v24, %v2421_v60 }
0x1cc9   :  { %v2389_v41 = vsel %vm2388_vm4, %v3459_v13, %v2385_v55 }
0x1cca   :  { %v2394_v63 = vsel %vm2391_vm7, %v2393_v61, %v2389_v41  ;;  %v2426_v0 = vsel %vm2425_vm8, %v3461_v24, %v2422_v57 }
0x1ccb   :  { %v2431_v3 = vsel %vm2428_vm11, %v2430_v25, %v2426_v0  ;;  %v2397_v11 = vmul.f32 %v2394_v63, %v4261_v9 }
0x1ccc   :  { %v2434_v5 = vmul.f32 %v2431_v3, %v4265_v21 }
0x1d27   :  { %v2400_v62 = vpop.permute.xlu1 %2399 }
0x1d28   :  { %v2402_v1 = vmul.f32 %v2400_v62, %v2394_v63 }
0x1d29   :  { %v2437_v2 = vpop.permute.xlu0 %2436 }
0x1d2a   :  { %2404 = vrot.lane.b32.xlu0 %v2402_v1, %s3622_s3  ;;  %v2439_v4 = vmul.f32 %v2437_v2, %v2431_v3 }
0x1d2c   :  { %2441 = vrot.lane.b32.xlu2 %v2439_v4, %s3622_s3 }
0x1d86   :  { %v2442_v6 = vpop.permute.xlu2 %2441 }
0x1d87   :  { %v4285_v8 = vadd.f32 %v2442_v6, %v2434_v5 }
0x1d89   :  { %3462 = vtanh.f32 %v4285_v8 }
0x1d8f   :  { %v3463_v10 = vpop.eup %3462 }
0x1d90   :  { %2447 = vrot.lane.b32.xlu1 %v3463_v10, %s3622_s3 }
0x1d9c   :  { %v2405_v26 = vpop.permute.xlu0 %2404 }
0x1d9d   :  { %v4290_v36 = vadd.f32 %v2405_v26, %v2397_v11 }
0x1d9f   :  { %3464 = vtanh.f32 %v4290_v36 }
0x1da5   :  { %v3465_v42 = vpop.eup %3464 }
0x1da6   :  { %2410 = vrot.lane.b32.xlu2 %v3465_v42, %s3622_s3 }
0x1e00   :  { %v2411_v12 = vpop.permute.xlu2 %2410 }
0x1e01   :  { %v4296_v34 = vmul.f32 %v2411_v12, %v2394_v63 }
0x1e02   :  { %v2448_v21 = vpop.permute.xlu1 %2447 }
0x1e03   :  { %v4294_v14 = vmul.f32 %v2448_v21, %v2431_v3 }
0x1e05   :  { %v2461_v22 = vrot.slane %v4294_v14, 6 }
0x1e07   :  { %v2463_v19 = vsel %vm329_vm9, %v4296_v34, %v2461_v22 }
0x1e08   :  { %v2464_v9 = vpack.c.bf16 %v2463_v19, %v2463_v19 }
0x1e0a   :  { %2466 = vrot.lane.b32.xlu0 %v2464_v9, %s3623_s26 }
0x1e7c   :  { %v2467_v33 = vpop.permute.xlu0 %2466 }
0x1e7d   :  { %3171 = vmatmul.msk.bf16.vlgmr.msrb.gmra.mxu0 %vm122_vm0, %v2467_v33  ;;  %3172 = vmatmul.msk.bf16.vlgmr.msrb.gmra.mxu1 %vm122_vm0, %v2467_v33 }
0x1efa   :  { %v2480_v29 = vpop.f32.mrf.mxu0  ;;  %v2493_v35 = vpop.f32.mrf.mxu1 }
0x1efb   :  { %v2498_v17 = vadd.f32 %v2497_v31, %v2480_v29  ;;  %v2501_v38 = vrot.slane %v2493_v35, 2 }
0x1efd   :  { %3466 = vtanh.f32 %v2498_v17  ;;  %v2503_v28 = vadd.f32 %v2501_v38, %v2499_v39  ;;  %v3173_v16 = vmul.f32 -1.442695, %v2498_v17  ;;  %v2624_v38 = vld [vmem:[#allocation2 + $0xc] sm:$0x3] }
0x1eff   :  { %3468 = vtanh.f32 %v2503_v28  ;;  %v3174_v13 = vmul.f32 -1.442695, %v2503_v28 }
0x1f00   :  { %3470 = vpow2.f32 %v3173_v16 }
0x1f02   :  { %v2482_v23 = vpop.f32.mrf.mxu0  ;;  %v2495_v20 = vpop.f32.mrf.mxu1 }
0x1f03   :  { %v3467_v47 = vpop.eup %3466  ;;  %v2626_v20 = vld [vmem:[#allocation3 + $0x2] sm:$0x3] }
0x1f04   :  { %2526 = vrot.lane.b32.xlu2 %v3467_v47, %s3622_s3 }
0x1f05   :  { %v3469_v30 = vpop.eup %3468 }
0x1f06   :  { %2563 = vrot.lane.b32.xlu1 %v3469_v30, %s3622_s3  ;;  %v3471_v52 = vpop.eup %3470 }
0x1f07   :  { %v2507_v58 = vadd.f32 1.0, %v3471_v52 }
0x1f09   :  { %3472 = vrcp.f32 %v2507_v58  ;;  %v2519_v54 = vand.u32 2147483648, %v2507_v58  ;;  %vm2513_vm13 = vweird.f32 %v2507_v58  ;;  %v2517_v60 = vand.u32 2147483647, %v2507_v58 }
0x1f0a   :  { %3474 = vpow2.f32 %v3174_v13 }
0x1f0b   :  { %v2520_v56 = vor.u32 1.1754944e-38, %v2519_v54  ;;  %vm2518_vm15 = vcmp.eq.f32.partialorder %v2517_v60, 8.507059e+37 }
0x1f0f   :  { %v3473_v49 = vpop.eup %3472 }
0x1f10   :  { %v2509_v50 = vmul.f32 %v3473_v49, %v2507_v58  ;;  %v3475_v51 = vpop.eup %3474  ;;  %vm2514_vm12 = vweird.f32 %v3473_v49 }
0x1f11   :  { %v2544_v59 = vadd.f32 1.0, %v3475_v51  ;;  %vm2515_vm14 = vmor %vm2513_vm13, %vm2514_vm12 }
0x1f12   :  { %v2510_v24 = vsub.f32 1.0, %v2509_v50 }
0x1f13   :  { %3476 = vrcp.f32 %v2544_v59  ;;  %v2556_v0 = vand.u32 2147483648, %v2544_v59  ;;  %vm2550_vm2 = vweird.f32 %v2544_v59  ;;  %v2554_v1 = vand.u32 2147483647, %v2544_v59 }
0x1f14   :  { %v2511_v48 = vmul.f32 %v3473_v49, %v2510_v24 }
0x1f15   :  { %v2557_v2 = vor.u32 1.1754944e-38, %v2556_v0  ;;  %vm2555_vm4 = vcmp.eq.f32.partialorder %v2554_v1, 8.507059e+37 }
0x1f16   :  { %v2512_v53 = vadd.f32 %v3473_v49, %v2511_v48 }
0x1f18   :  { %v2516_v55 = vsel %vm2515_vm14, %v3473_v49, %v2512_v53 }
0x1f19   :  { %v2521_v57 = vsel %vm2518_vm15, %v2520_v56, %v2516_v55  ;;  %v3477_v15 = vpop.eup %3476 }
0x1f1a   :  { %v2546_v61 = vmul.f32 %v3477_v15, %v2544_v59  ;;  %vm2551_vm1 = vweird.f32 %v3477_v15  ;;  %v2524_v6 = vmul.f32 %v2521_v57, %v4290_v36 }
0x1f1b   :  { %vm2552_vm3 = vmor %vm2550_vm2, %vm2551_vm1 }
0x1f1c   :  { %v2547_v45 = vsub.f32 1.0, %v2546_v61 }
0x1f1e   :  { %v2548_v62 = vmul.f32 %v3477_v15, %v2547_v45 }
0x1f20   :  { %v2549_v63 = vadd.f32 %v3477_v15, %v2548_v62 }
0x1f22   :  { %v2553_v25 = vsel %vm2552_vm3, %v3477_v15, %v2549_v63 }
0x1f23   :  { %v2558_v4 = vsel %vm2555_vm4, %v2557_v2, %v2553_v25 }
0x1f24   :  { %v2561_v42 = vmul.f32 %v2558_v4, %v4285_v8 }
0x1f5e   :  { %v2527_v18 = vpop.permute.xlu2 %2526 }
0x1f5f   :  { %v2529_v41 = vmul.f32 %v2527_v18, %v2521_v57 }
0x1f61   :  { %2531 = vrot.lane.b32.xlu1 %v2529_v41, %s3622_s3 }
0x1f78   :  { %v2564_v3 = vpop.permute.xlu1 %2563 }
0x1f79   :  { %v2566_v5 = vmul.f32 %v2564_v3, %v2558_v4 }
0x1f7b   :  { %2568 = vrot.lane.b32.xlu0 %v2566_v5, %s3622_s3 }
0x1fd3   :  { %v2532_v10 = vpop.permute.xlu1 %2531 }
0x1fd4   :  { %v4309_v11 = vadd.f32 %v2532_v10, %v2524_v6 }
0x1fd6   :  { %3478 = vtanh.f32 %v4309_v11 }
0x1fdc   :  { %v3479_v26 = vpop.eup %3478 }
0x1fdd   :  { %2537 = vrot.lane.b32.xlu0 %v3479_v26, %s3622_s3 }
0x1fed   :  { %v2569_v12 = vpop.permute.xlu0 %2568 }
0x1fee   :  { %v4314_v21 = vadd.f32 %v2569_v12, %v2561_v42 }
0x1ff0   :  { %3480 = vtanh.f32 %v4314_v21 }
0x1ff6   :  { %v3481_v22 = vpop.eup %3480 }
0x1ff7   :  { %2574 = vrot.lane.b32.xlu2 %v3481_v22, %s3622_s3 }
0x204f   :  { %v2538_v19 = vpop.permute.xlu0 %2537 }
0x2050   :  { %v4320_v33 = vmul.f32 %v2538_v19, %v2521_v57 }
0x2051   :  { %v2575_v36 = vpop.permute.xlu2 %2574 }
0x2052   :  { %v4318_v9 = vmul.f32 %v2575_v36, %v2558_v4 }
0x2054   :  { %v2588_v29 = vrot.slane %v4318_v9, 6 }
0x2056   :  { %v2590_v31 = vsel %vm329_vm9, %v4320_v33, %v2588_v29 }
0x2057   :  { %v2591_v8 = vpack.c.bf16 %v2590_v31, %v2590_v31 }
0x2059   :  { %2593 = vrot.lane.b32.xlu1 %v2591_v8, %s3623_s26 }
0x20cb   :  { %v2594_v35 = vpop.permute.xlu1 %2593 }
0x20cc   :  { %3175 = vmatmul.msk.bf16.vlgmr.msrb.gmra.mxu2 %vm122_vm0, %v2594_v35  ;;  %3176 = vmatmul.msk.bf16.vlgmr.msrb.gmra.mxu3 %vm122_vm0, %v2594_v35 }
0x214f   :  { %v2607_v17 = vpop.f32.mrf.mxu2  ;;  %v2620_v39 = vpop.f32.mrf.mxu3 }
0x2150   :  { %v2625_v28 = vadd.f32 %v2624_v38, %v2607_v17  ;;  %v2628_v23 = vrot.slane %v2620_v39, 2 }
0x2152   :  { %3482 = vtanh.f32 %v2625_v28  ;;  %v2630_v47 = vadd.f32 %v2628_v23, %v2626_v20  ;;  %v3177_v24 = vmul.f32 -1.442695, %v2625_v28 }
0x2154   :  { %3484 = vtanh.f32 %v2630_v47  ;;  %v3178_v49 = vmul.f32 -1.442695, %v2630_v47  ;;  %v2751_v47 = vld [vmem:[#allocation2 + $0xe] sm:$0x3] }
0x2156   :  { %3486 = vpow2.f32 %v3178_v49 }
0x2157   :  { %v2609_v30 = vpop.f32.mrf.mxu2  ;;  %v2622_v16 = vpop.f32.mrf.mxu3 }
0x2158   :  { %v3483_v52 = vpop.eup %3482 }
0x2159   :  { %2653 = vrot.lane.b32.xlu0 %v3483_v52, %s3622_s3 }
0x215a   :  { %v3485_v58 = vpop.eup %3484 }
0x215b   :  { %2690 = vrot.lane.b32.xlu2 %v3485_v58, %s3622_s3  ;;  %v2753_v58 = vld [vmem:[#allocation3] sm:$0x3] }
0x215c   :  { %v3487_v50 = vpop.eup %3486 }
0x215d   :  { %v2671_v13 = vadd.f32 1.0, %v3487_v50 }
0x215f   :  { %3488 = vrcp.f32 %v2671_v13  ;;  %v2683_v56 = vand.u32 2147483648, %v2671_v13  ;;  %vm2677_vm6 = vweird.f32 %v2671_v13  ;;  %v2681_v18 = vand.u32 2147483647, %v2671_v13 }
0x2160   :  { %3490 = vpow2.f32 %v3177_v24 }
0x2161   :  { %v2684_v41 = vor.u32 1.1754944e-38, %v2683_v56  ;;  %vm2682_vm8 = vcmp.eq.f32.partialorder %v2681_v18, 8.507059e+37 }
0x2165   :  { %v3489_v48 = vpop.eup %3488 }
0x2166   :  { %v2673_v51 = vmul.f32 %v3489_v48, %v2671_v13  ;;  %v3491_v54 = vpop.eup %3490  ;;  %vm2678_vm5 = vweird.f32 %v3489_v48 }
0x2167   :  { %v2634_v59 = vadd.f32 1.0, %v3491_v54  ;;  %vm2679_vm7 = vmor %vm2677_vm6, %vm2678_vm5 }
0x2168   :  { %v2674_v53 = vsub.f32 1.0, %v2673_v51 }
0x2169   :  { %3492 = vrcp.f32 %v2634_v59  ;;  %v2646_v2 = vand.u32 2147483648, %v2634_v59  ;;  %vm2640_vm12 = vweird.f32 %v2634_v59  ;;  %v2644_v3 = vand.u32 2147483647, %v2634_v59 }
0x216a   :  { %v2675_v60 = vmul.f32 %v3489_v48, %v2674_v53 }
0x216b   :  { %v2647_v5 = vor.u32 1.1754944e-38, %v2646_v2  ;;  %vm2645_vm14 = vcmp.eq.f32.partialorder %v2644_v3, 8.507059e+37 }
0x216c   :  { %v2676_v55 = vadd.f32 %v3489_v48, %v2675_v60 }
0x216e   :  { %v2680_v57 = vsel %vm2679_vm7, %v3489_v48, %v2676_v55 }
0x216f   :  { %v3493_v15 = vpop.eup %3492  ;;  %v2685_v45 = vsel %vm2682_vm8, %v2684_v41, %v2680_v57 }
0x2170   :  { %v2636_v63 = vmul.f32 %v3493_v15, %v2634_v59  ;;  %vm2641_vm11 = vweird.f32 %v3493_v15  ;;  %v2688_v19 = vmul.f32 %v2685_v45, %v4314_v21 }
0x2171   :  { %vm2642_vm13 = vmor %vm2640_vm12, %vm2641_vm11 }
0x2172   :  { %v2637_v0 = vsub.f32 1.0, %v2636_v63 }
0x2174   :  { %v2638_v1 = vmul.f32 %v3493_v15, %v2637_v0 }
0x2176   :  { %v2639_v25 = vadd.f32 %v3493_v15, %v2638_v1 }
0x2178   :  { %v2643_v4 = vsel %vm2642_vm13, %v3493_v15, %v2639_v25 }
0x2179   :  { %v2648_v10 = vsel %vm2645_vm14, %v2647_v5, %v2643_v4 }
0x217a   :  { %v2651_v42 = vmul.f32 %v2648_v10, %v4309_v11 }
0x21b5   :  { %v2691_v61 = vpop.permute.xlu2 %2690 }
0x21b6   :  { %v2693_v62 = vmul.f32 %v2691_v61, %v2685_v45 }
0x21b8   :  { %2695 = vrot.lane.b32.xlu1 %v2693_v62, %s3622_s3 }
0x21cb   :  { %v2654_v6 = vpop.permute.xlu0 %2653 }
0x21cc   :  { %v2656_v26 = vmul.f32 %v2654_v6, %v2648_v10 }
0x21ce   :  { %2658 = vrot.lane.b32.xlu2 %v2656_v26, %s3622_s3 }
0x2228   :  { %v2659_v12 = vpop.permute.xlu2 %2658 }
0x2229   :  { %v4333_v22 = vadd.f32 %v2659_v12, %v2651_v42 }
0x222a   :  { %v2696_v36 = vpop.permute.xlu1 %2695 }
0x222b   :  { %3494 = vtanh.f32 %v4333_v22  ;;  %v4337_v29 = vadd.f32 %v2696_v36, %v2688_v19 }
0x222d   :  { %3496 = vtanh.f32 %v4337_v29 }
0x2231   :  { %v3495_v31 = vpop.eup %3494 }
0x2232   :  { %2664 = vrot.lane.b32.xlu1 %v3495_v31, %s3622_s3 }
0x2233   :  { %v3497_v8 = vpop.eup %3496 }
0x2234   :  { %2701 = vrot.lane.b32.xlu0 %v3497_v8, %s3622_s3 }
0x22a4   :  { %v2665_v35 = vpop.permute.xlu1 %2664 }
0x22a5   :  { %v4344_v38 = vmul.f32 %v2665_v35, %v2648_v10  ;;  %v3241_v35 = vld [vmem:[%s4447_s7 + $0x8] sm:$0xff] }
0x22a6   :  { %v2702_v11 = vpop.permute.xlu0 %2701  ;;  %2913 = vmatpush.bf16.msra.mxu3 %v3241_v35 }
0x22a7   :  { %v4342_v17 = vmul.f32 %v2702_v11, %v2685_v45 }
0x22a9   :  { %v2715_v21 = vrot.slane %v4342_v17, 6 }
0x22ab   :  { %v2717_v39 = vsel %vm329_vm9, %v4344_v38, %v2715_v21 }
0x22ac   :  { %v2718_v28 = vpack.c.bf16 %v2717_v39, %v2717_v39  ;;  %v3240_v39 = vld [vmem:[%s4447_s7] sm:$0xff] }
0x22ad   :  { %2914 = vmatpush.bf16.msra.mxu3 %v3240_v39 }
0x22ae   :  { %2720 = vrot.lane.b32.xlu2 %v2718_v28, %s3623_s26 }
0x2308   :  { %v2721_v23 = vpop.permute.xlu2 %2720 }
0x2309   :  { %3179 = vmatmul.msk.bf16.vlgmr.msra.gmra.mxu0 %vm122_vm0, %v2721_v23  ;;  %3180 = vmatmul.msk.bf16.vlgmr.msra.gmra.mxu1 %vm122_vm0, %v2721_v23 }
0x2386   :  { %v2734_v20 = vpop.f32.mrf.mxu0  ;;  %v2747_v30 = vpop.f32.mrf.mxu1 }
0x2387   :  { %v2752_v16 = vadd.f32 %v2751_v47, %v2734_v20  ;;  %v2755_v52 = vrot.slane %v2747_v30, 2 }
0x2389   :  { %3498 = vtanh.f32 %v2752_v16  ;;  %v2757_v49 = vadd.f32 %v2755_v52, %v2753_v58  ;;  %v3181_v51 = vmul.f32 -1.442695, %v2752_v16 }
0x238b   :  { %3500 = vtanh.f32 %v2757_v49  ;;  %v3182_v53 = vmul.f32 -1.442695, %v2757_v49 }
0x238c   :  { %3502 = vpow2.f32 %v3181_v51 }
0x238d   :  { %3504 = vpow2.f32 %v3182_v53 }
0x238e   :  { %v2736_v50 = vpop.f32.mrf.mxu0  ;;  %v2749_v13 = vpop.f32.mrf.mxu1 }
0x238f   :  { %v3499_v24 = vpop.eup %3498 }
0x2390   :  { %2780 = vrot.lane.b32.xlu1 %v3499_v24, %s3622_s3 }
0x2391   :  { %v3501_v48 = vpop.eup %3500 }
0x2392   :  { %2817 = vrot.lane.b32.xlu0 %v3501_v48, %s3622_s3  ;;  %v3503_v54 = vpop.eup %3502 }
0x2393   :  { %v3505_v59 = vpop.eup %3504  ;;  %v2761_v60 = vadd.f32 1.0, %v3503_v54 }
0x2394   :  { %v2798_v55 = vadd.f32 1.0, %v3505_v59 }
0x2395   :  { %3506 = vrcp.f32 %v2761_v60  ;;  %v2773_v0 = vand.u32 2147483648, %v2761_v60  ;;  %vm2767_vm15 = vweird.f32 %v2761_v60  ;;  %v2771_v1 = vand.u32 2147483647, %v2761_v60 }
0x2396   :  { %3508 = vrcp.f32 %v2798_v55  ;;  %v2810_v3 = vand.u32 2147483648, %v2798_v55  ;;  %vm2804_vm3 = vweird.f32 %v2798_v55  ;;  %v2808_v5 = vand.u32 2147483647, %v2798_v55 }
0x2397   :  { %v2774_v4 = vor.u32 1.1754944e-38, %v2773_v0  ;;  %vm2772_vm4 = vcmp.eq.f32.partialorder %v2771_v1, 8.507059e+37 }
0x2398   :  { %v2811_v12 = vor.u32 1.1754944e-38, %v2810_v3  ;;  %vm2809_vm6 = vcmp.eq.f32.partialorder %v2808_v5, 8.507059e+37  ;;  %v3257_v3 = vld [vmem:[%s4448_s8] ss:$0 sm:$0xff] }
0x239b   :  { %v3507_v56 = vpop.eup %3506 }
0x239c   :  { %v3509_v18 = vpop.eup %3508  ;;  %v2763_v57 = vmul.f32 %v3507_v56, %v2761_v60  ;;  %vm2768_vm9 = vweird.f32 %v3507_v56 }
0x239d   :  { %v2800_v41 = vmul.f32 %v3509_v18, %v2798_v55  ;;  %vm2769_vm1 = vmor %vm2767_vm15, %vm2768_vm9  ;;  %vm2805_vm2 = vweird.f32 %v3509_v18 }
0x239e   :  { %v2764_v15 = vsub.f32 1.0, %v2763_v57  ;;  %vm2806_vm5 = vmor %vm2804_vm3, %vm2805_vm2 }
0x239f   :  { %v2801_v61 = vsub.f32 1.0, %v2800_v41 }
0x23a0   :  { %v2765_v45 = vmul.f32 %v3507_v56, %v2764_v15 }
0x23a1   :  { %v2802_v62 = vmul.f32 %v3509_v18, %v2801_v61 }
0x23a2   :  { %v2766_v63 = vadd.f32 %v3507_v56, %v2765_v45 }
0x23a3   :  { %v2803_v25 = vadd.f32 %v3509_v18, %v2802_v62 }
0x23a4   :  { %v2770_v2 = vsel %vm2769_vm1, %v3507_v56, %v2766_v63 }
0x23a5   :  { %v2775_v10 = vsel %vm2772_vm4, %v2774_v4, %v2770_v2  ;;  %v2807_v26 = vsel %vm2806_vm5, %v3509_v18, %v2803_v25 }
0x23a6   :  { %v2812_v36 = vsel %vm2809_vm6, %v2811_v12, %v2807_v26 }
0x23a7   :  { %v2815_v8 = vmul.f32 %v2812_v36, %v4337_v29 }
0x2402   :  { %v2781_v6 = vpop.permute.xlu1 %2780 }
0x2403   :  { %v2783_v42 = vmul.f32 %v2781_v6, %v2775_v10 }
0x2404   :  { %v2818_v19 = vpop.permute.xlu0 %2817 }
0x2405   :  { %2785 = vrot.lane.b32.xlu0 %v2783_v42, %s3622_s3  ;;  %v2820_v31 = vmul.f32 %v2818_v19, %v2812_v36 }
0x2407   :  { %2822 = vrot.lane.b32.xlu2 %v2820_v31, %s3622_s3 }
0x240d   :  { %1944 = vrot.lane.b32.xlu0 %v4188_v44, %s3623_s26  ;;  %v2778_v44 = vmul.f32 %v2775_v10, %v4333_v22  ;;  %v3247_v22 = vld [vmem:[%s4447_s7 + $0x38] sm:$0xff] }
0x240e   :  { %2972 = vmatpush.bf16.msrb.mxu1 %v3247_v22 }
0x2461   :  { %v2823_v11 = vpop.permute.xlu2 %2822 }
0x2462   :  { %v2825_v21 = vadd.f32 %v2823_v11, %v2815_v8 }
0x2464   :  { %3510 = vtanh.f32 %v2825_v21 }
0x246a   :  { %v3511_v28 = vpop.eup %3510 }
0x246b   :  { %2828 = vrot.lane.b32.xlu1 %v3511_v28, %s3622_s3 }
0x2477   :  { %v2786_v23 = vpop.permute.xlu0 %2785 }
0x2478   :  { %v2788_v29 = vadd.f32 %v2786_v23, %v2778_v44 }
0x247a   :  { %3512 = vtanh.f32 %v2788_v29 }
0x247f   :  { %v1945_v20 = vpop.permute.xlu0 %1944 }
0x2480   :  { %v3513_v47 = vpop.eup %3512  ;;  %1947 = vst.msk [vmem:[#allocation4] sm:$0x3] %vm319_vm10, %v1945_v20 }
0x2481   :  { %2791 = vrot.lane.b32.xlu2 %v3513_v47, %s3622_s3 }
0x2487   :  { %v2858_v30 = vld [vmem:[#allocation4] sm:$0x3] }
0x2488   :  { %v2862_v16 = vpack.c.bf16 %v2858_v30, %v2858_v30 }
0x2489   :  { %1949 = vrot.lane.b32.xlu2 %v4186_v27, %s3623_s26  ;;  %v3246_v27 = vld [vmem:[%s4447_s7 + $0x30] sm:$0xff] }
0x248a   :  { %3200 = vmatmul.msk.bf16.vlgmr.msra.gmra.mxu3 %vm122_vm0, %v2862_v16  ;;  %2973 = vmatpush.bf16.msrb.mxu1 %v3246_v27 }
0x2491   :  { %2076 = vrot.lane.b32.xlu2 %v4214_v43, %s3623_s26 }
0x2499   :  { %2325 = vrot.lane.b32.xlu2 %v4272_v37, %s3623_s26 }
0x24a1   :  { %2457 = vrot.lane.b32.xlu2 %v4294_v14, %s3623_s26 }
0x24a9   :  { %2706 = vrot.lane.b32.xlu2 %v4344_v38, %s3623_s26 }
0x24db   :  { %v2792_v43 = vpop.permute.xlu2 %2791 }
0x24dc   :  { %v2794_v52 = vmul.f32 %v2792_v43, %v2775_v10 }
0x24dd   :  { %v2829_v58 = vpop.permute.xlu1 %2828 }
0x24de   :  { %2833 = vrot.lane.b32.xlu0 %v2794_v52, %s3623_s26  ;;  %v2831_v37 = vmul.f32 %v2829_v58, %v2812_v36 }
0x24e0   :  { %2838 = vrot.lane.b32.xlu1 %v2831_v37, %s3623_s26 }
0x24e3   :  { %v1950_v14 = vpop.permute.xlu2 %1949 }
0x24e4   :  { %1952 = vst.msk [vmem:[#allocation5 + $0xe] sm:$0x3] %vm319_vm10, %v1950_v14 }
0x24e6   :  { %2198 = vrot.lane.b32.xlu0 %v4244_v7, %s3623_s26 }
0x24e8   :  { %2071 = vrot.lane.b32.xlu1 %v4216_v32, %s3623_s26  ;;  %v3243_v32 = vld [vmem:[%s4447_s7 + $0x18] sm:$0xff] }
0x24e9   :  { %2885 = vmatpush.bf16.msra.mxu2 %v3243_v32 }
0x24eb   :  { %v2077_v38 = vpop.permute.xlu2 %2076  ;;  %v2861_v49 = vld [vmem:[#allocation5 + $0xe] sm:$0x3] }
0x24ec   :  { %2079 = vst.msk [vmem:[#allocation5 + $0xc] sm:$0x3] %vm319_vm10, %v2077_v38  ;;  %v2950_v50 = vpack.c.bf16 %v2861_v49, %v2861_v49 }
0x24ee   :  { %2330 = vrot.lane.b32.xlu0 %v4270_v40, %s3623_s26  ;;  %3218 = vmatmul.msk.bf16.vlgmr.msrb.gmra.mxu1 %vm122_vm0, %v2950_v50 }
0x24f0   :  { %2203 = vrot.lane.b32.xlu1 %v4242_v46, %s3623_s26 }
0x24f3   :  { %v2326_v13 = vpop.permute.xlu2 %2325 }
0x24f4   :  { %2328 = vst.msk [vmem:[#allocation4 + $0x6] sm:$0x3] %vm319_vm10, %v2326_v13 }
0x24f6   :  { %2579 = vrot.lane.b32.xlu0 %v4320_v33, %s3623_s26  ;;  %v3245_v33 = vld [vmem:[%s4447_s7 + $0x28] sm:$0xff] }
0x24f7   :  { %2942 = vmatpush.bf16.msrb.mxu0 %v3245_v33 }
0x24f8   :  { %2452 = vrot.lane.b32.xlu1 %v4296_v34, %s3623_s26  ;;  %v3242_v34 = vld [vmem:[%s4447_s7 + $0x10] sm:$0xff] }
0x24f9   :  { %2886 = vmatpush.bf16.msra.mxu2 %v3242_v34 }
0x24fb   :  { %v2458_v7 = vpop.permute.xlu2 %2457 }
0x24fc   :  { %2460 = vst.msk [vmem:[#allocation5 + $0x6] sm:$0x3] %vm319_vm10, %v2458_v7 }
0x24fe   :  { %2711 = vrot.lane.b32.xlu0 %v4342_v17, %s3623_s26  ;;  %v3244_v17 = vld [vmem:[%s4447_s7 + $0x20] sm:$0xff] }
0x24ff   :  { %2943 = vmatpush.bf16.msrb.mxu0 %v3244_v17 }
0x2500   :  { %2584 = vrot.lane.b32.xlu1 %v4318_v9, %s3623_s26 }
0x2503   :  { %v2707_v46 = vpop.permute.xlu2 %2706 }
0x2504   :  { %2709 = vst.msk [vmem:[#allocation4 + $0xc] sm:$0x3] %vm319_vm10, %v2707_v46 }
0x250d   :  { %v2916_v40 = vpop.f32.mrf.mxu3 }
0x2515   :  { %v2918_v24 = vpop.f32.mrf.mxu3 }
0x2550   :  { %v2834_v9 = vpop.permute.xlu0 %2833 }
0x2551   :  { %2836 = vst.msk [vmem:[#allocation4 + $0xe] sm:$0x3] %vm319_vm10, %v2834_v9 }
0x2552   :  { %v2839_v48 = vpop.permute.xlu1 %2838 }
0x2553   :  { %2841 = vst.msk [vmem:[#allocation5] sm:$0x3] %vm319_vm10, %v2839_v48 }
0x2558   :  { %v2199_v51 = vpop.permute.xlu0 %2198  ;;  %v2860_v53 = vld [vmem:[#allocation4 + $0xe] sm:$0x3] }
0x2559   :  { %2201 = vst.msk [vmem:[#allocation4 + $0x4] sm:$0x3] %vm319_vm10, %v2199_v51  ;;  %v2920_v54 = vpack.c.bf16 %v2860_v53, %v2860_v53 }
0x255a   :  { %v2072_v59 = vpop.permute.xlu1 %2071  ;;  %v2859_v60 = vld [vmem:[#allocation5] sm:$0x3] }
0x255b   :  { %3209 = vmatmul.msk.bf16.vlgmr.msrb.gmra.mxu0 %vm122_vm0, %v2920_v54  ;;  %2074 = vst.msk [vmem:[#allocation4 + $0x2] sm:$0x3] %vm319_vm10, %v2072_v59  ;;  %v2863_v55 = vpack.c.bf16 %v2859_v60, %v2859_v60 }
0x255d   :  { %3191 = vmatmul.msk.bf16.vlgmr.msra.gmra.mxu2 %vm122_vm0, %v2863_v55  ;;  %vm2985_vm0 = vcmask 9216  }
0x2560   :  { %v2331_v56 = vpop.permute.xlu0 %2330 }
0x2561   :  { %2333 = vst.msk [vmem:[#allocation5 + $0x8] sm:$0x3] %vm319_vm10, %v2331_v56 }
0x2562   :  { %v2204_v18 = vpop.permute.xlu1 %2203 }
0x2563   :  { %2206 = vst.msk [vmem:[#allocation5 + $0xa] sm:$0x3] %vm319_vm10, %v2204_v18 }
0x2568   :  { %v2580_v57 = vpop.permute.xlu0 %2579 }
0x2569   :  { %2582 = vst.msk [vmem:[#allocation4 + $0xa] sm:$0x3] %vm319_vm10, %v2580_v57 }
0x256a   :  { %v2453_v41 = vpop.permute.xlu1 %2452 }
0x256b   :  { %v2975_v15 = vpop.f32.mrf.mxu1  ;;  %2455 = vst.msk [vmem:[#allocation4 + $0x8] sm:$0x3] %vm319_vm10, %v2453_v41 }
0x2570   :  { %v2712_v61 = vpop.permute.xlu0 %2711 }
0x2571   :  { %2714 = vst.msk [vmem:[#allocation5 + $0x2] sm:$0x3] %vm319_vm10, %v2712_v61 }
0x2572   :  { %v2585_v45 = vpop.permute.xlu1 %2584 }
0x2573   :  { %v2977_v62 = vpop.f32.mrf.mxu1  ;;  %2587 = vst.msk [vmem:[#allocation5 + $0x4] sm:$0x3] %vm319_vm10, %v2585_v45 }
0x25d8   :  { %v2945_v63 = vpop.f32.mrf.mxu0 }
0x25e0   :  { %v2947_v0 = vpop.f32.mrf.mxu0  ;;  %v2888_v1 = vpop.f32.mrf.mxu2 }
0x25e1   :  { %v2917_v25 = vadd.f32 %v2916_v40, %v2888_v1 }
0x25e3   :  { %v2949_v2 = vadd.f32 %v2945_v63, %v2917_v25 }
0x25e5   :  { %v2979_v4 = vadd.f32 %v2975_v15, %v2949_v2 }
0x25e7   :  { %v2984_v5 = vadd.f32 %v3257_v3, %v2979_v4 }
0x25e8   :  { %v2890_v6 = vpop.f32.mrf.mxu2 }
0x25e9   :  { %2986 = vst.msk [vmem:[#allocation12] sm:$0x3] %vm2985_vm0, %v2984_v5 }
0x25ea   :  { %2997 = dma.vmem_to_hbm [thread:$0]  %s2993_s27, 32, %s2995_s30, [#allocation8]  }
0x25eb   :  { %3614 = dma.done.wait [#allocation8], 32  }
0x25ec   :  { %3615 = vsyncadd [#allocation8], 4294967264 }
0x25ed   :  { %3002 = vsyncpa [#allocation7], 1 }
0x25ee   :  { %3003 = vsyncpa [#allocation10], 1 }
0x25ef   :  { %3004 = vsyncpa [#allocation8], 1 }

</bundles_post_ra>
